<compile_context>
chip_gen: v7x
topology: tpu7x:2x2x1
jax: 0.10.0
libtpu: 0.0.40
codegen_flags: <defaults>
</compile_context>

<pallas_src>
import jax
import jax.numpy as jnp
from jax.experimental import pallas as pl
from jax.experimental.pallas import tpu as pltpu

# ------------------------------ configuration ------------------------------
B = 2                                  # batch
NUM_CLASSES = 5
# text tower
VOCAB = 100
T_TEXT = 8
# vision tower
IMG = 32
PATCH = 8
N_PATCH = (IMG // PATCH) ** 2          # 16
T_VIS = N_PATCH + 1                    # 17 (class token + patches)
PATCH_IN = 3 * PATCH * PATCH           # 192
# shared
T_PAD = 24                             # both towers padded to 24 rows (sublane multiple of 8)
D_MODEL = 64
N_HEADS = 4
DH = D_MODEL // N_HEADS                # 16
N_LAYERS = 2
MLP_RATIO = 4
PROJ_DIM = 512                         # CLIP projection dim -> head input is 512 + 512
HIDDEN_CLS = 256
EPS = 1e-5

LAYER_WEIGHT_NAMES = ("ln1_g", "ln1_b", "w_qkv", "b_qkv", "wo", "bo",
                      "ln2_g", "ln2_b", "w1", "b1", "w2", "b2")


# ------------------------------ in-kernel helpers ------------------------------
def _ln(x, g, b):
    """Row-wise layernorm in f32 (g, b broadcast from (1, D))."""
    mu = jnp.mean(x, axis=-1, keepdims=True)
    var = jnp.mean(jnp.square(x - mu), axis=-1, keepdims=True)
    return (x - mu) * jax.lax.rsqrt(var + EPS) * g + b


# ------------------------------ kernel 1: both towers ------------------------------
def _tower_kernel(eot_ref, len_ref,
                  txt_x_ref, patch_ref, patch_w_ref, pos_ref, preg_ref, preb_ref,
                  ln1g_ref, ln1b_ref, wqkv_ref, bqkv_ref, wo_ref, bo_ref,
                  ln2g_ref, ln2b_ref, w1_ref, b1_ref, w2_ref, b2_ref,
                  flng_ref, flnb_ref, proj_ref,
                  emb_ref, x_ref):
    """One grid step = (tower t, layer l).  Residual stream lives in VMEM scratch x_ref."""
    bf16 = jnp.bfloat16
    t = pl.program_id(0)                      # 0 = text tower, 1 = vision tower
    l = pl.program_id(1)                      # encoder layer
    is_text = t == 0

    # ---- layer 0: materialize the residual stream in VMEM (no HBM activations) ----
    @pl.when(jnp.logical_and(l == 0, is_text))
    def _():
        x_ref[...] = txt_x_ref[...]           # token emb + pos, zero-padded to T_PAD rows

    @pl.when(jnp.logical_and(l == 0, jnp.logical_not(is_text)))
    def _():
        pe = jnp.dot(patch_ref[...], patch_w_ref[...],
                     preferred_element_type=jnp.float32)          # (B*T_PAD, D)
        pe = pe + jnp.concatenate([pos_ref[...]] * B, axis=0)     # cls emb folded into row 0
        x_ref[...] = _ln(pe, preg_ref[...], preb_ref[...])        # vision pre-LN fused
        # NOTE: pad rows T_VIS..T_PAD-1 carry LN-bias garbage through the layers; this is
        # safe only because pad keys are masked below and only row 0 is pooled at the end.

    # ---- encoder layer (same structure for both towers; weights indexed by (t, l)) ----
    x = x_ref[...]                                                # (B*T_PAD, D) f32
    h = _ln(x, ln1g_ref[0], ln1b_ref[0]).astype(bf16)
    # Three chunked QKV dots off the (3, D, D) stacked weight (no lane-slicing of a fused
    # (T, 3D) result).  1/sqrt(dh) is folded into the Q weight + bias at init time.
    q = jnp.dot(h, wqkv_ref[0, 0], preferred_element_type=jnp.float32) + bqkv_ref[0, 0]
    k = jnp.dot(h, wqkv_ref[0, 1], preferred_element_type=jnp.float32) + bqkv_ref[0, 1]
    v = jnp.dot(h, wqkv_ref[0, 2], preferred_element_type=jnp.float32) + bqkv_ref[0, 2]

    col = jax.lax.broadcasted_iota(jnp.int32, (T_PAD, T_PAD), 1)
    row = jax.lax.broadcasted_iota(jnp.int32, (T_PAD, T_PAD), 0)

    attn_rows = []
    for b in range(B):                        # B is a compile-time constant -> static slices
        r0 = b * T_PAD
        q_b = q[r0:r0 + T_PAD].astype(bf16)
        kT_b = jnp.transpose(k[r0:r0 + T_PAD]).astype(bf16)      # one K transpose / example
        v_b = v[r0:r0 + T_PAD].astype(bf16)
        # In-kernel additive mask: text = causal + per-example padding (valid length from
        # SMEM scalar prefetch); vision = mask only the sublane-pad keys (cols >= T_VIS).
        limit = jnp.where(is_text, len_ref[b], T_VIS)
        allow = jnp.logical_and(col < limit,
                                jnp.logical_or(col <= row, jnp.logical_not(is_text)))
        mbias = jnp.where(allow, 0.0, -1e9).astype(jnp.float32)  # single -1e9 term
        head_outs = []
        for hd in range(N_HEADS):
            c0 = hd * DH
            s = jnp.dot(q_b[:, c0:c0 + DH], kT_b[c0:c0 + DH, :],
                        preferred_element_type=jnp.float32) + mbias
            s = s - jnp.max(s, axis=-1, keepdims=True)
            p = jnp.exp(s)
            # approx reciprocal + bf16 probs: ~1e-3 rel error vs an f32 reference.
            p = p * pl.reciprocal(jnp.sum(p, axis=-1, keepdims=True), approx=True)
            head_outs.append(jnp.dot(p.astype(bf16), v_b[:, c0:c0 + DH],
                                     preferred_element_type=jnp.float32))   # (T_PAD, DH)
        attn_rows.append(jnp.concatenate(head_outs, axis=-1))    # (T_PAD, D)
    attn = jnp.concatenate(attn_rows, axis=0).astype(bf16)       # (B*T_PAD, D)
    # one fat out-projection matmul for all heads / examples, residual fused
    x = x + jnp.dot(attn, wo_ref[0], preferred_element_type=jnp.float32) + bo_ref[0]

    h = _ln(x, ln2g_ref[0], ln2b_ref[0]).astype(bf16)
    h = jnp.dot(h, w1_ref[0], preferred_element_type=jnp.float32) + b1_ref[0]
    h = h * jax.nn.sigmoid(1.702 * h)                             # QuickGELU
    h = jnp.dot(h.astype(bf16), w2_ref[0], preferred_element_type=jnp.float32) + b2_ref[0]
    x = x + h                                                     # residual 2 (fused)
    x_ref[...] = x

    # ---- last layer: pool + final LN + projection + L2 norm (per tower) ----
    @pl.when(l == N_LAYERS - 1)
    def _():
        ridx = jax.lax.broadcasted_iota(jnp.int32, (T_PAD, 1), 0)
        rows_t, rows_v = [], []
        for b in range(B):
            xb = x[b * T_PAD:(b + 1) * T_PAD]                     # (T_PAD, D)
            sel = (ridx == eot_ref[b]).astype(jnp.float32)        # EOT one-hot (text pool)
            rows_t.append(jnp.sum(xb * sel, axis=0, keepdims=True))
            rows_v.append(xb[0:1, :])                             # class token (vision pool)
        pooled = jnp.where(is_text,
                           jnp.concatenate(rows_t, axis=0),
                           jnp.concatenate(rows_v, axis=0))       # (B, D)
        # row-wise final LN, so pool-then-LN == LN-then-pool (matches HF CLIP).
        y = _ln(pooled, flng_ref[0], flnb_ref[0]).astype(bf16)
        e = jnp.dot(y, proj_ref[0], preferred_element_type=jnp.float32)     # (B, PROJ_DIM)
        e = e * jax.lax.rsqrt(jnp.sum(e * e, axis=-1, keepdims=True) + 1e-12)
        emb_ref[0] = e


def clip_towers(params, txt_x, vis_patches, eot, valid_len):
    def const_spec(a):
        nd = a.ndim
        return pl.BlockSpec(a.shape, lambda t, l, *_: (0,) * nd)

    def tower_spec(a):                       # leading axis = tower
        nd = a.ndim
        return pl.BlockSpec((1,) + a.shape[1:],
                            lambda t, l, *_: (t,) + (0,) * (nd - 1))

    def layer_spec(a):                       # leading axis = tower * N_LAYERS + layer
        nd = a.ndim
        return pl.BlockSpec((1,) + a.shape[1:],
                            lambda t, l, *_: (t * N_LAYERS + l,) + (0,) * (nd - 1))

    inputs, in_specs = [], []
    for a in (txt_x, vis_patches, params["patch_w"], params["vis_pos_cls"],
              params["vis_preln_g"], params["vis_preln_b"]):
        inputs.append(a)
        in_specs.append(const_spec(a))
    for n in LAYER_WEIGHT_NAMES:
        inputs.append(params[n])
        in_specs.append(layer_spec(params[n]))
    for n in ("fln_g", "fln_b", "proj"):
        inputs.append(params[n])
        in_specs.append(tower_spec(params[n]))

    return pl.pallas_call(
        _tower_kernel,
        out_shape=jax.ShapeDtypeStruct((2, B, PROJ_DIM), jnp.float32),
        grid_spec=pltpu.PrefetchScalarGridSpec(
            num_scalar_prefetch=2,
            grid=(2, N_LAYERS),
            in_specs=in_specs,
            out_specs=pl.BlockSpec((1, B, PROJ_DIM), lambda t, l, *_: (t, 0, 0)),
            scratch_shapes=[pltpu.VMEM((B * T_PAD, D_MODEL), jnp.float32)]),
        compiler_params=pltpu.CompilerParams(
            dimension_semantics=("parallel", "arbitrary")),
    )(eot, valid_len, *inputs)


# ------------------------------ kernel 2: classifier head ------------------------------
def _head_kernel(emb_ref, w1_ref, b1_ref, w2_ref, b2_ref, out_ref, acc_ref):
    k = pl.program_id(0)

    @pl.when(k == 0)
    def _():
        acc_ref[...] = jnp.zeros_like(acc_ref)

    # concat([text, image]) @ W1 computed as a 2-step K split so the second 256 KB half of
    # cls_w1 prefetches under the first half's matmul (no exposed tail weight DMA).
    acc_ref[...] += jnp.dot(emb_ref[0].astype(jnp.bfloat16), w1_ref[0],
                            preferred_element_type=jnp.float32)

    @pl.when(k == pl.num_programs(0) - 1)
    def _():
        h = jnp.maximum(acc_ref[...] + b1_ref[...], 0.0)          # ReLU
        y = jnp.dot(h.astype(jnp.bfloat16), w2_ref[...],
                    preferred_element_type=jnp.float32) + b2_ref[...]
        out_ref[...] = jax.nn.sigmoid(y)                          # Sigmoid


def clip_head(emb, params):
    return pl.pallas_call(
        _head_kernel,
        out_shape=jax.ShapeDtypeStruct((B, NUM_CLASSES), jnp.float32),
        grid=(2,),
        in_specs=[pl.BlockSpec((1, B, PROJ_DIM), lambda k: (k, 0, 0)),
                  pl.BlockSpec((1, PROJ_DIM, HIDDEN_CLS), lambda k: (k, 0, 0)),
                  pl.BlockSpec((1, HIDDEN_CLS), lambda k: (0, 0)),
                  pl.BlockSpec((HIDDEN_CLS, NUM_CLASSES), lambda k: (0, 0)),
                  pl.BlockSpec((1, NUM_CLASSES), lambda k: (0, 0))],
        out_specs=pl.BlockSpec((B, NUM_CLASSES), lambda k: (0, 0)),
        scratch_shapes=[pltpu.VMEM((B, HIDDEN_CLS), jnp.float32)],
        compiler_params=pltpu.CompilerParams(dimension_semantics=("arbitrary",)),
    )(emb, params["cls_w1"], params["cls_b1"], params["cls_w2"], params["cls_b2"])


# ------------------------------ parameters ------------------------------
def init_params(key):
    keys = iter(jax.random.split(key, 64))
    f32, bf16 = jnp.float32, jnp.bfloat16
    D, L2, HID = D_MODEL, 2 * N_LAYERS, MLP_RATIO * D_MODEL

    def nrm(shape, scale=0.02):
        return scale * jax.random.normal(next(keys), shape, f32)

    # 1/sqrt(dh) folded into the Q projection (weight AND bias) at init.
    scale_q = DH ** -0.5
    w_qkv = nrm((L2, 3, D, D))
    w_qkv = w_qkv.at[:, 0].multiply(scale_q).astype(bf16)
    b_qkv = jnp.zeros((L2, 3, 1, D), f32).at[:, 0].multiply(scale_q)

    cls_emb = nrm((1, D))
    vis_pos = nrm((T_VIS, D))
    # class embedding folded into row 0 of the (padded) position table.
    vis_pos_cls = jnp.concatenate(
        [vis_pos[:1] + cls_emb, vis_pos[1:], jnp.zeros((T_PAD - T_VIS, D), f32)], axis=0)

    return dict(
        # embeddings
        tok_emb=nrm((VOCAB, D)),
        txt_pos=nrm((T_TEXT, D)),
        patch_w=nrm((PATCH_IN, D)).astype(bf16),          # CLIP patch conv has no bias
        vis_pos_cls=vis_pos_cls,
        vis_preln_g=jnp.ones((1, D), f32), vis_preln_b=jnp.zeros((1, D), f32),
        # per-(tower, layer) encoder weights stacked on one leading axis (text 0..L-1, vis L..2L-1)
        ln1_g=jnp.ones((L2, 1, D), f32), ln1_b=jnp.zeros((L2, 1, D), f32),
        w_qkv=w_qkv, b_qkv=b_qkv,
        wo=nrm((L2, D, D)).astype(bf16), bo=jnp.zeros((L2, 1, D), f32),
        ln2_g=jnp.ones((L2, 1, D), f32), ln2_b=jnp.zeros((L2, 1, D), f32),
        w1=nrm((L2, D, HID)).astype(bf16), b1=jnp.zeros((L2, 1, HID), f32),
        w2=nrm((L2, HID, D)).astype(bf16), b2=jnp.zeros((L2, 1, D), f32),
        # per-tower final LN + projection
        fln_g=jnp.ones((2, 1, D), f32), fln_b=jnp.zeros((2, 1, D), f32),
        proj=nrm((2, D, PROJ_DIM)).astype(bf16),
        # classification head: Linear(1024, 256) -> ReLU -> Linear(256, num_classes) -> Sigmoid
        cls_w1=nrm((2, PROJ_DIM, HIDDEN_CLS)).astype(bf16),   # [text half; image half]
        cls_b1=jnp.zeros((1, HIDDEN_CLS), f32),
        cls_w2=nrm((HIDDEN_CLS, NUM_CLASSES)).astype(bf16),
        cls_b2=jnp.zeros((1, NUM_CLASSES), f32),
    )


# ------------------------------ model glue ------------------------------
def clip_class_forward(params, input_ids, attention_mask, pixel_values):
    Bx, T = input_ids.shape
    # text embeddings: vocab gather + positional add in XLA (tiny), zero-padded to T_PAD rows.
    tx = params["tok_emb"][input_ids] + params["txt_pos"][None, :T]      # (B, T_TEXT, D)
    tx = jnp.pad(tx, ((0, 0), (0, T_PAD - T), (0, 0)))                   # (B, T_PAD, D)
    tx = tx.reshape(Bx * T_PAD, D_MODEL)
    # patch extraction (conv-as-matmul layout); row 0 per example = class-token slot.
    g = IMG // PATCH
    p = pixel_values.reshape(Bx, 3, g, PATCH, g, PATCH)
    p = p.transpose(0, 2, 4, 1, 3, 5).reshape(Bx, N_PATCH, PATCH_IN)
    p = jnp.pad(p, ((0, 0), (1, T_PAD - T_VIS), (0, 0)))                 # (B, T_PAD, 192)
    p = p.reshape(Bx * T_PAD, PATCH_IN).astype(jnp.bfloat16)
    # scalars for in-kernel mask build + EOT pooling (SMEM scalar prefetch).
    eot = jnp.argmax(input_ids, axis=-1).astype(jnp.int32)               # (B,)
    valid_len = jnp.sum(attention_mask, axis=-1).astype(jnp.int32)       # (B,)

    emb = clip_towers(params, tx, p, eot, valid_len)                     # (2, B, PROJ_DIM)
    return clip_head(emb, params)                                        # (B, num_classes)


# ------------------------------ main ------------------------------
if __name__ == "__main__":
    key = jax.random.PRNGKey(0)
    pkey, k_ids, k_pix = jax.random.split(key, 3)
    params = init_params(pkey)

    input_ids = jax.random.randint(k_ids, (B, T_TEXT), 1, VOCAB - 1).astype(jnp.int32)
    eot_pos = jnp.array([5, 6], dtype=jnp.int32)
    input_ids = input_ids.at[jnp.arange(B), eot_pos].set(VOCAB - 1)      # EOT = highest id
    attention_mask = (jnp.arange(T_TEXT)[None, :] <= eot_pos[:, None]).astype(jnp.int32)
    pixel_values = jax.random.normal(k_pix, (B, 3, IMG, IMG), jnp.float32)

    forward = jax.jit(clip_class_forward)
    out = forward(params, input_ids, attention_mask, pixel_values)
    out = jax.block_until_ready(out)
    assert out.shape == (B, NUM_CLASSES)
    assert bool(jnp.all((out >= 0.0) & (out <= 1.0)))
    assert bool(jnp.all(jnp.isfinite(out)))
    print("KERNEL_OK")
</pallas_src>

<mosaic_0001>
module attributes {stable_mosaic.version = 11 : i64} {
  func.func @_tower_kernel(%arg0: i32, %arg1: i32, %arg2: memref<2xi32, #tpu.memory_space<smem>>, %arg3: memref<2xi32, #tpu.memory_space<smem>>, %arg4: memref<48x64xf32, #tpu.memory_space<vmem>>, %arg5: memref<48x192xbf16, #tpu.memory_space<vmem>>, %arg6: memref<192x64xbf16, #tpu.memory_space<vmem>>, %arg7: memref<24x64xf32, #tpu.memory_space<vmem>>, %arg8: memref<1x64xf32, #tpu.memory_space<vmem>>, %arg9: memref<1x64xf32, #tpu.memory_space<vmem>>, %arg10: memref<1x1x64xf32, #tpu.memory_space<vmem>>, %arg11: memref<1x1x64xf32, #tpu.memory_space<vmem>>, %arg12: memref<1x3x64x64xbf16, #tpu.memory_space<vmem>>, %arg13: memref<1x3x1x64xf32, #tpu.memory_space<vmem>>, %arg14: memref<1x64x64xbf16, #tpu.memory_space<vmem>>, %arg15: memref<1x1x64xf32, #tpu.memory_space<vmem>>, %arg16: memref<1x1x64xf32, #tpu.memory_space<vmem>>, %arg17: memref<1x1x64xf32, #tpu.memory_space<vmem>>, %arg18: memref<1x64x256xbf16, #tpu.memory_space<vmem>>, %arg19: memref<1x1x256xf32, #tpu.memory_space<vmem>>, %arg20: memref<1x256x64xbf16, #tpu.memory_space<vmem>>, %arg21: memref<1x1x64xf32, #tpu.memory_space<vmem>>, %arg22: memref<1x1x64xf32, #tpu.memory_space<vmem>>, %arg23: memref<1x1x64xf32, #tpu.memory_space<vmem>>, %arg24: memref<1x64x512xbf16, #tpu.memory_space<vmem>>, %arg25: memref<1x2x512xf32, #tpu.memory_space<vmem>>, %arg26: memref<48x64xf32, #tpu.memory_space<vmem>>) attributes {dimension_semantics = [#tpu.dimension_semantics<parallel>, #tpu.dimension_semantics<arbitrary>], iteration_bounds = array<i64: 2, 2>, scalar_prefetch = 2 : i64, scratch_operands = 1 : i64, tpu.core_type = #tpu.core_type<tc>, window_params = [{pipeline_mode = #tpu.pipeline_mode<synchronous>, transform_indices = @transform_0, window_bounds = array<i64: 48, 64>}, {pipeline_mode = #tpu.pipeline_mode<synchronous>, transform_indices = @transform_1, window_bounds = array<i64: 48, 192>}, {pipeline_mode = #tpu.pipeline_mode<synchronous>, transform_indices = @transform_2, window_bounds = array<i64: 192, 64>}, {pipeline_mode = #tpu.pipeline_mode<synchronous>, transform_indices = @transform_3, window_bounds = array<i64: 24, 64>}, {pipeline_mode = #tpu.pipeline_mode<synchronous>, transform_indices = @transform_4, window_bounds = array<i64: 1, 64>}, {pipeline_mode = #tpu.pipeline_mode<synchronous>, transform_indices = @transform_5, window_bounds = array<i64: 1, 64>}, {transform_indices = @transform_6, window_bounds = array<i64: 1, 1, 64>}, {transform_indices = @transform_7, window_bounds = array<i64: 1, 1, 64>}, {transform_indices = @transform_8, window_bounds = array<i64: 1, 3, 64, 64>}, {transform_indices = @transform_9, window_bounds = array<i64: 1, 3, 1, 64>}, {transform_indices = @transform_10, window_bounds = array<i64: 1, 64, 64>}, {transform_indices = @transform_11, window_bounds = array<i64: 1, 1, 64>}, {transform_indices = @transform_12, window_bounds = array<i64: 1, 1, 64>}, {transform_indices = @transform_13, window_bounds = array<i64: 1, 1, 64>}, {transform_indices = @transform_14, window_bounds = array<i64: 1, 64, 256>}, {transform_indices = @transform_15, window_bounds = array<i64: 1, 1, 256>}, {transform_indices = @transform_16, window_bounds = array<i64: 1, 256, 64>}, {transform_indices = @transform_17, window_bounds = array<i64: 1, 1, 64>}, {transform_indices = @transform_18, window_bounds = array<i64: 1, 1, 64>}, {transform_indices = @transform_19, window_bounds = array<i64: 1, 1, 64>}, {transform_indices = @transform_20, window_bounds = array<i64: 1, 64, 512>}, {transform_indices = @transform_21, window_bounds = array<i64: 1, 2, 512>}]} {
    %c0_i32 = arith.constant 0 : i32
    %0 = arith.cmpi eq, %arg0, %c0_i32 : i32
    %c0_i32_0 = arith.constant 0 : i32
    %1 = arith.cmpi eq, %arg1, %c0_i32_0 : i32
    %2 = arith.andi %1, %0 : i1
    %3 = arith.extui %2 : i1 to i32
    %c0_i32_1 = arith.constant 0 : i32
    %4 = arith.cmpi ne, %3, %c0_i32_1 : i32
    scf.if %4 {
      %c0_118 = arith.constant 0 : index
      %c0_119 = arith.constant 0 : index
      %302 = vector.load %arg4[%c0_118, %c0_119] : memref<48x64xf32, #tpu.memory_space<vmem>>, vector<48x64xf32>
      %c0_120 = arith.constant 0 : index
      %c0_121 = arith.constant 0 : index
      %303 = vector.load %arg26[%c0_120, %c0_121] : memref<48x64xf32, #tpu.memory_space<vmem>>, vector<48x64xf32>
      tpu.vector_store %arg26[%c0_120, %c0_121], %302 {strides = array<i32>} : memref<48x64xf32, #tpu.memory_space<vmem>>, vector<48x64xf32>,
    } else {
    }
    %c0_i32_2 = arith.constant 0 : i32
    %5 = arith.cmpi eq, %arg1, %c0_i32_2 : i32
    %true = arith.constant true
    %6 = arith.xori %0, %true : i1
    %7 = arith.andi %5, %6 : i1
    %8 = arith.extui %7 : i1 to i32
    %c0_i32_3 = arith.constant 0 : i32
    %9 = arith.cmpi ne, %8, %c0_i32_3 : i32
    scf.if %9 {
      %c0_118 = arith.constant 0 : index
      %c0_119 = arith.constant 0 : index
      %302 = vector.load %arg5[%c0_118, %c0_119] : memref<48x192xbf16, #tpu.memory_space<vmem>>, vector<48x192xbf16>
      %c0_120 = arith.constant 0 : index
      %c0_121 = arith.constant 0 : index
      %303 = vector.load %arg6[%c0_120, %c0_121] : memref<192x64xbf16, #tpu.memory_space<vmem>>, vector<192x64xbf16>
      %cst_122 = arith.constant dense<0.000000e+00> : vector<48x64xf32>
      %304 = tpu.matmul %302, %303, %cst_122 {dimension_numbers = #tpu.dot_dimension_numbers<[1], [0], [0], [1], [0, 0, 1, 1], [], []>} : vector<48x192xbf16>, vector<192x64xbf16>, vector<48x64xf32> -> vector<48x64xf32>
      %c0_123 = arith.constant 0 : index
      %c0_124 = arith.constant 0 : index
      %305 = vector.load %arg7[%c0_123, %c0_124] : memref<24x64xf32, #tpu.memory_space<vmem>>, vector<24x64xf32>
      %306 = tpu.concatenate %305, %305 in 0 : vector<24x64xf32>, vector<24x64xf32> -> vector<48x64xf32>
      %307 = arith.addf %304, %306 : vector<48x64xf32>
      %c0_125 = arith.constant 0 : index
      %c0_126 = arith.constant 0 : index
      %308 = vector.load %arg8[%c0_125, %c0_126] : memref<1x64xf32, #tpu.memory_space<vmem>>, vector<1x64xf32>
      %c0_127 = arith.constant 0 : index
      %c0_128 = arith.constant 0 : index
      %309 = vector.load %arg9[%c0_127, %c0_128] : memref<1x64xf32, #tpu.memory_space<vmem>>, vector<1x64xf32>
      %cst_129 = arith.constant dense<0.000000e+00> : vector<48xf32>
      %310 = vector.multi_reduction <add>, %307, %cst_129 [1] : vector<48x64xf32> to vector<48xf32>
      %311 = vector.shape_cast %310 : vector<48xf32> to vector<48x1xf32>
      %cst_130 = arith.constant 6.400000e+01 : f32
      %312 = vector.broadcast %cst_130 : f32 to vector<48x1xf32>
      %313 = arith.divf %311, %312 : vector<48x1xf32>
      %314 = vector.broadcast %313 : vector<48x1xf32> to vector<48x64xf32>
      %315 = arith.subf %307, %314 : vector<48x64xf32>
      %316 = arith.mulf %315, %315 : vector<48x64xf32>
      %cst_131 = arith.constant dense<0.000000e+00> : vector<48xf32>
      %317 = vector.multi_reduction <add>, %316, %cst_131 [1] : vector<48x64xf32> to vector<48xf32>
      %318 = vector.shape_cast %317 : vector<48xf32> to vector<48x1xf32>
      %cst_132 = arith.constant 6.400000e+01 : f32
      %319 = vector.broadcast %cst_132 : f32 to vector<48x1xf32>
      %320 = arith.divf %318, %319 : vector<48x1xf32>
      %321 = vector.broadcast %313 : vector<48x1xf32> to vector<48x64xf32>
      %322 = arith.subf %307, %321 : vector<48x64xf32>
      %cst_133 = arith.constant 9.99999974E-6 : f32
      %323 = vector.broadcast %cst_133 : f32 to vector<48x1xf32>
      %324 = arith.addf %320, %323 : vector<48x1xf32>
      %325 = math.rsqrt %324 : vector<48x1xf32>
      %326 = vector.broadcast %325 : vector<48x1xf32> to vector<48x64xf32>
      %327 = arith.mulf %322, %326 : vector<48x64xf32>
      %328 = vector.broadcast %308 : vector<1x64xf32> to vector<48x64xf32>
      %329 = arith.mulf %327, %328 : vector<48x64xf32>
      %330 = vector.broadcast %309 : vector<1x64xf32> to vector<48x64xf32>
      %331 = arith.addf %329, %330 : vector<48x64xf32>
      %c0_134 = arith.constant 0 : index
      %c0_135 = arith.constant 0 : index
      %332 = vector.load %arg26[%c0_134, %c0_135] : memref<48x64xf32, #tpu.memory_space<vmem>>, vector<48x64xf32>
      tpu.vector_store %arg26[%c0_134, %c0_135], %331 {strides = array<i32>} : memref<48x64xf32, #tpu.memory_space<vmem>>, vector<48x64xf32>,
    } else {
    }
    %c0 = arith.constant 0 : index
    %c0_4 = arith.constant 0 : index
    %10 = vector.load %arg26[%c0, %c0_4] : memref<48x64xf32, #tpu.memory_space<vmem>>, vector<48x64xf32>
    %c0_5 = arith.constant 0 : index
    %c0_6 = arith.constant 0 : index
    %c0_7 = arith.constant 0 : index
    %11 = vector.load %arg10[%c0_5, %c0_6, %c0_7] : memref<1x1x64xf32, #tpu.memory_space<vmem>>, vector<1x1x64xf32>
    %12 = vector.shape_cast %11 : vector<1x1x64xf32> to vector<1x64xf32>
    %c0_8 = arith.constant 0 : index
    %c0_9 = arith.constant 0 : index
    %c0_10 = arith.constant 0 : index
    %13 = vector.load %arg11[%c0_8, %c0_9, %c0_10] : memref<1x1x64xf32, #tpu.memory_space<vmem>>, vector<1x1x64xf32>
    %14 = vector.shape_cast %13 : vector<1x1x64xf32> to vector<1x64xf32>
    %cst = arith.constant dense<0.000000e+00> : vector<48xf32>
    %15 = vector.multi_reduction <add>, %10, %cst [1] : vector<48x64xf32> to vector<48xf32>
    %16 = vector.shape_cast %15 : vector<48xf32> to vector<48x1xf32>
    %cst_11 = arith.constant 6.400000e+01 : f32
    %17 = vector.broadcast %cst_11 : f32 to vector<48x1xf32>
    %18 = arith.divf %16, %17 : vector<48x1xf32>
    %19 = vector.broadcast %18 : vector<48x1xf32> to vector<48x64xf32>
    %20 = arith.subf %10, %19 : vector<48x64xf32>
    %21 = arith.mulf %20, %20 : vector<48x64xf32>
    %cst_12 = arith.constant dense<0.000000e+00> : vector<48xf32>
    %22 = vector.multi_reduction <add>, %21, %cst_12 [1] : vector<48x64xf32> to vector<48xf32>
    %23 = vector.shape_cast %22 : vector<48xf32> to vector<48x1xf32>
    %cst_13 = arith.constant 6.400000e+01 : f32
    %24 = vector.broadcast %cst_13 : f32 to vector<48x1xf32>
    %25 = arith.divf %23, %24 : vector<48x1xf32>
    %26 = vector.broadcast %18 : vector<48x1xf32> to vector<48x64xf32>
    %27 = arith.subf %10, %26 : vector<48x64xf32>
    %cst_14 = arith.constant 9.99999974E-6 : f32
    %28 = vector.broadcast %cst_14 : f32 to vector<48x1xf32>
    %29 = arith.addf %25, %28 : vector<48x1xf32>
    %30 = math.rsqrt %29 : vector<48x1xf32>
    %31 = vector.broadcast %30 : vector<48x1xf32> to vector<48x64xf32>
    %32 = arith.mulf %27, %31 : vector<48x64xf32>
    %33 = vector.broadcast %12 : vector<1x64xf32> to vector<48x64xf32>
    %34 = arith.mulf %32, %33 : vector<48x64xf32>
    %35 = vector.broadcast %14 : vector<1x64xf32> to vector<48x64xf32>
    %36 = arith.addf %34, %35 : vector<48x64xf32>
    %37 = arith.truncf %36 : vector<48x64xf32> to vector<48x64xbf16>
    %c0_15 = arith.constant 0 : index
    %c0_16 = arith.constant 0 : index
    %c0_17 = arith.constant 0 : index
    %c0_18 = arith.constant 0 : index
    %38 = vector.load %arg12[%c0_15, %c0_16, %c0_17, %c0_18] : memref<1x3x64x64xbf16, #tpu.memory_space<vmem>>, vector<1x1x64x64xbf16>
    %39 = vector.shape_cast %38 : vector<1x1x64x64xbf16> to vector<64x64xbf16>
    %cst_19 = arith.constant dense<0.000000e+00> : vector<48x64xf32>
    %40 = tpu.matmul %37, %39, %cst_19 {dimension_numbers = #tpu.dot_dimension_numbers<[1], [0], [0], [1], [0, 0, 1, 1], [], []>} : vector<48x64xbf16>, vector<64x64xbf16>, vector<48x64xf32> -> vector<48x64xf32>
    %c0_20 = arith.constant 0 : index
    %c0_21 = arith.constant 0 : index
    %c0_22 = arith.constant 0 : index
    %c0_23 = arith.constant 0 : index
    %41 = vector.load %arg13[%c0_20, %c0_21, %c0_22, %c0_23] : memref<1x3x1x64xf32, #tpu.memory_space<vmem>>, vector<1x1x1x64xf32>
    %42 = vector.shape_cast %41 : vector<1x1x1x64xf32> to vector<1x64xf32>
    %43 = vector.broadcast %42 : vector<1x64xf32> to vector<48x64xf32>
    %44 = arith.addf %40, %43 : vector<48x64xf32>
    %c0_24 = arith.constant 0 : index
    %c1 = arith.constant 1 : index
    %c0_25 = arith.constant 0 : index
    %c0_26 = arith.constant 0 : index
    %45 = vector.load %arg12[%c0_24, %c1, %c0_25, %c0_26] : memref<1x3x64x64xbf16, #tpu.memory_space<vmem>>, vector<1x1x64x64xbf16>
    %46 = vector.shape_cast %45 : vector<1x1x64x64xbf16> to vector<64x64xbf16>
    %cst_27 = arith.constant dense<0.000000e+00> : vector<48x64xf32>
    %47 = tpu.matmul %37, %46, %cst_27 {dimension_numbers = #tpu.dot_dimension_numbers<[1], [0], [0], [1], [0, 0, 1, 1], [], []>} : vector<48x64xbf16>, vector<64x64xbf16>, vector<48x64xf32> -> vector<48x64xf32>
    %c0_28 = arith.constant 0 : index
    %c1_29 = arith.constant 1 : index
    %c0_30 = arith.constant 0 : index
    %c0_31 = arith.constant 0 : index
    %48 = vector.load %arg13[%c0_28, %c1_29, %c0_30, %c0_31] : memref<1x3x1x64xf32, #tpu.memory_space<vmem>>, vector<1x1x1x64xf32>
    %49 = vector.shape_cast %48 : vector<1x1x1x64xf32> to vector<1x64xf32>
    %50 = vector.broadcast %49 : vector<1x64xf32> to vector<48x64xf32>
    %51 = arith.addf %47, %50 : vector<48x64xf32>
    %c0_32 = arith.constant 0 : index
    %c2 = arith.constant 2 : index
    %c0_33 = arith.constant 0 : index
    %c0_34 = arith.constant 0 : index
    %52 = vector.load %arg12[%c0_32, %c2, %c0_33, %c0_34] : memref<1x3x64x64xbf16, #tpu.memory_space<vmem>>, vector<1x1x64x64xbf16>
    %53 = vector.shape_cast %52 : vector<1x1x64x64xbf16> to vector<64x64xbf16>
    %cst_35 = arith.constant dense<0.000000e+00> : vector<48x64xf32>
    %54 = tpu.matmul %37, %53, %cst_35 {dimension_numbers = #tpu.dot_dimension_numbers<[1], [0], [0], [1], [0, 0, 1, 1], [], []>} : vector<48x64xbf16>, vector<64x64xbf16>, vector<48x64xf32> -> vector<48x64xf32>
    %c0_36 = arith.constant 0 : index
    %c2_37 = arith.constant 2 : index
    %c0_38 = arith.constant 0 : index
    %c0_39 = arith.constant 0 : index
    %55 = vector.load %arg13[%c0_36, %c2_37, %c0_38, %c0_39] : memref<1x3x1x64xf32, #tpu.memory_space<vmem>>, vector<1x1x1x64xf32>
    %56 = vector.shape_cast %55 : vector<1x1x1x64xf32> to vector<1x64xf32>
    %57 = vector.broadcast %56 : vector<1x64xf32> to vector<48x64xf32>
    %58 = arith.addf %54, %57 : vector<48x64xf32>
    %59 = tpu.iota {dimensions = array<i32: 1>} : vector<24x24xi32>
    %60 = tpu.iota {dimensions = array<i32: 0>} : vector<24x24xi32>
    %61 = vector.extract_strided_slice %44 {offsets = [0, 0], sizes = [24, 64], strides = [1, 1]} : vector<48x64xf32> to vector<24x64xf32>
    %62 = arith.truncf %61 : vector<24x64xf32> to vector<24x64xbf16>
    %63 = vector.extract_strided_slice %51 {offsets = [0, 0], sizes = [24, 64], strides = [1, 1]} : vector<48x64xf32> to vector<24x64xf32>
    %64 = tpu.transpose %63, [1, 0] : vector<24x64xf32> -> vector<64x24xf32>
    %65 = arith.truncf %64 : vector<64x24xf32> to vector<64x24xbf16>
    %66 = vector.extract_strided_slice %58 {offsets = [0, 0], sizes = [24, 64], strides = [1, 1]} : vector<48x64xf32> to vector<24x64xf32>
    %67 = arith.truncf %66 : vector<24x64xf32> to vector<24x64xbf16>
    %c0_40 = arith.constant 0 : index
    %68 = memref.load %arg3[%c0_40] : memref<2xi32, #tpu.memory_space<smem>>
    %c17_i32 = arith.constant 17 : i32
    %69 = arith.select %0, %68, %c17_i32 : i32
    %70 = vector.broadcast %69 : i32 to vector<24x24xi32>
    %71 = arith.cmpi slt, %59, %70 : vector<24x24xi32>
    %72 = arith.cmpi sle, %59, %60 : vector<24x24xi32>
    %true_41 = arith.constant true
    %73 = arith.xori %0, %true_41 : i1
    %74 = vector.broadcast %73 : i1 to vector<24x24xi1>
    %75 = arith.ori %72, %74 : vector<24x24xi1>
    %76 = arith.andi %71, %75 : vector<24x24xi1>
    %cst_42 = arith.constant 0.000000e+00 : f32
    %cst_43 = arith.constant -1.000000e+09 : f32
    %77 = vector.broadcast %cst_42 : f32 to vector<24x24xf32>
    %78 = vector.broadcast %cst_43 : f32 to vector<24x24xf32>
    %79 = arith.select %76, %77, %78 : vector<24x24xi1>, vector<24x24xf32>
    %80 = vector.extract_strided_slice %62 {offsets = [0, 0], sizes = [24, 16], strides = [1, 1]} : vector<24x64xbf16> to vector<24x16xbf16>
    %81 = vector.extract_strided_slice %65 {offsets = [0, 0], sizes = [16, 24], strides = [1, 1]} : vector<64x24xbf16> to vector<16x24xbf16>
    %cst_44 = arith.constant dense<0.000000e+00> : vector<24x24xf32>
    %82 = tpu.matmul %80, %81, %cst_44 {dimension_numbers = #tpu.dot_dimension_numbers<[1], [0], [0], [1], [0, 0, 1, 1], [], []>} : vector<24x16xbf16>, vector<16x24xbf16>, vector<24x24xf32> -> vector<24x24xf32>
    %83 = arith.addf %82, %79 : vector<24x24xf32>
    %cst_45 = arith.constant dense<0xFF800000> : vector<24xf32>
    %84 = vector.multi_reduction <maximumf>, %83, %cst_45 [1] : vector<24x24xf32> to vector<24xf32>
    %85 = vector.shape_cast %84 : vector<24xf32> to vector<24x1xf32>
    %86 = vector.broadcast %85 : vector<24x1xf32> to vector<24x24xf32>
    %87 = arith.subf %83, %86 : vector<24x24xf32>
    %88 = math.exp %87 : vector<24x24xf32>
    %cst_46 = arith.constant dense<0.000000e+00> : vector<24xf32>
    %89 = vector.multi_reduction <add>, %88, %cst_46 [1] : vector<24x24xf32> to vector<24xf32>
    %90 = vector.shape_cast %89 : vector<24xf32> to vector<24x1xf32>
    %91 = tpu.reciprocal %90 {approx = true} : vector<24x1xf32> -> vector<24x1xf32>
    %92 = vector.broadcast %91 : vector<24x1xf32> to vector<24x24xf32>
    %93 = arith.mulf %88, %92 : vector<24x24xf32>
    %94 = arith.truncf %93 : vector<24x24xf32> to vector<24x24xbf16>
    %95 = vector.extract_strided_slice %67 {offsets = [0, 0], sizes = [24, 16], strides = [1, 1]} : vector<24x64xbf16> to vector<24x16xbf16>
    %cst_47 = arith.constant dense<0.000000e+00> : vector<24x16xf32>
    %96 = tpu.matmul %94, %95, %cst_47 {dimension_numbers = #tpu.dot_dimension_numbers<[1], [0], [0], [1], [0, 0, 1, 1], [], []>} : vector<24x24xbf16>, vector<24x16xbf16>, vector<24x16xf32> -> vector<24x16xf32>
    %97 = vector.extract_strided_slice %62 {offsets = [0, 16], sizes = [24, 16], strides = [1, 1]} : vector<24x64xbf16> to vector<24x16xbf16>
    %98 = vector.extract_strided_slice %65 {offsets = [16, 0], sizes = [16, 24], strides = [1, 1]} : vector<64x24xbf16> to vector<16x24xbf16>
    %cst_48 = arith.constant dense<0.000000e+00> : vector<24x24xf32>
    %99 = tpu.matmul %97, %98, %cst_48 {dimension_numbers = #tpu.dot_dimension_numbers<[1], [0], [0], [1], [0, 0, 1, 1], [], []>} : vector<24x16xbf16>, vector<16x24xbf16>, vector<24x24xf32> -> vector<24x24xf32>
    %100 = arith.addf %99, %79 : vector<24x24xf32>
    %cst_49 = arith.constant dense<0xFF800000> : vector<24xf32>
    %101 = vector.multi_reduction <maximumf>, %100, %cst_49 [1] : vector<24x24xf32> to vector<24xf32>
    %102 = vector.shape_cast %101 : vector<24xf32> to vector<24x1xf32>
    %103 = vector.broadcast %102 : vector<24x1xf32> to vector<24x24xf32>
    %104 = arith.subf %100, %103 : vector<24x24xf32>
    %105 = math.exp %104 : vector<24x24xf32>
    %cst_50 = arith.constant dense<0.000000e+00> : vector<24xf32>
    %106 = vector.multi_reduction <add>, %105, %cst_50 [1] : vector<24x24xf32> to vector<24xf32>
    %107 = vector.shape_cast %106 : vector<24xf32> to vector<24x1xf32>
    %108 = tpu.reciprocal %107 {approx = true} : vector<24x1xf32> -> vector<24x1xf32>
    %109 = vector.broadcast %108 : vector<24x1xf32> to vector<24x24xf32>
    %110 = arith.mulf %105, %109 : vector<24x24xf32>
    %111 = arith.truncf %110 : vector<24x24xf32> to vector<24x24xbf16>
    %112 = vector.extract_strided_slice %67 {offsets = [0, 16], sizes = [24, 16], strides = [1, 1]} : vector<24x64xbf16> to vector<24x16xbf16>
    %cst_51 = arith.constant dense<0.000000e+00> : vector<24x16xf32>
    %113 = tpu.matmul %111, %112, %cst_51 {dimension_numbers = #tpu.dot_dimension_numbers<[1], [0], [0], [1], [0, 0, 1, 1], [], []>} : vector<24x24xbf16>, vector<24x16xbf16>, vector<24x16xf32> -> vector<24x16xf32>
    %114 = vector.extract_strided_slice %62 {offsets = [0, 32], sizes = [24, 16], strides = [1, 1]} : vector<24x64xbf16> to vector<24x16xbf16>
    %115 = vector.extract_strided_slice %65 {offsets = [32, 0], sizes = [16, 24], strides = [1, 1]} : vector<64x24xbf16> to vector<16x24xbf16>
    %cst_52 = arith.constant dense<0.000000e+00> : vector<24x24xf32>
    %116 = tpu.matmul %114, %115, %cst_52 {dimension_numbers = #tpu.dot_dimension_numbers<[1], [0], [0], [1], [0, 0, 1, 1], [], []>} : vector<24x16xbf16>, vector<16x24xbf16>, vector<24x24xf32> -> vector<24x24xf32>
    %117 = arith.addf %116, %79 : vector<24x24xf32>
    %cst_53 = arith.constant dense<0xFF800000> : vector<24xf32>
    %118 = vector.multi_reduction <maximumf>, %117, %cst_53 [1] : vector<24x24xf32> to vector<24xf32>
    %119 = vector.shape_cast %118 : vector<24xf32> to vector<24x1xf32>
    %120 = vector.broadcast %119 : vector<24x1xf32> to vector<24x24xf32>
    %121 = arith.subf %117, %120 : vector<24x24xf32>
    %122 = math.exp %121 : vector<24x24xf32>
    %cst_54 = arith.constant dense<0.000000e+00> : vector<24xf32>
    %123 = vector.multi_reduction <add>, %122, %cst_54 [1] : vector<24x24xf32> to vector<24xf32>
    %124 = vector.shape_cast %123 : vector<24xf32> to vector<24x1xf32>
    %125 = tpu.reciprocal %124 {approx = true} : vector<24x1xf32> -> vector<24x1xf32>
    %126 = vector.broadcast %125 : vector<24x1xf32> to vector<24x24xf32>
    %127 = arith.mulf %122, %126 : vector<24x24xf32>
    %128 = arith.truncf %127 : vector<24x24xf32> to vector<24x24xbf16>
    %129 = vector.extract_strided_slice %67 {offsets = [0, 32], sizes = [24, 16], strides = [1, 1]} : vector<24x64xbf16> to vector<24x16xbf16>
    %cst_55 = arith.constant dense<0.000000e+00> : vector<24x16xf32>
    %130 = tpu.matmul %128, %129, %cst_55 {dimension_numbers = #tpu.dot_dimension_numbers<[1], [0], [0], [1], [0, 0, 1, 1], [], []>} : vector<24x24xbf16>, vector<24x16xbf16>, vector<24x16xf32> -> vector<24x16xf32>
    %131 = vector.extract_strided_slice %62 {offsets = [0, 48], sizes = [24, 16], strides = [1, 1]} : vector<24x64xbf16> to vector<24x16xbf16>
    %132 = vector.extract_strided_slice %65 {offsets = [48, 0], sizes = [16, 24], strides = [1, 1]} : vector<64x24xbf16> to vector<16x24xbf16>
    %cst_56 = arith.constant dense<0.000000e+00> : vector<24x24xf32>
    %133 = tpu.matmul %131, %132, %cst_56 {dimension_numbers = #tpu.dot_dimension_numbers<[1], [0], [0], [1], [0, 0, 1, 1], [], []>} : vector<24x16xbf16>, vector<16x24xbf16>, vector<24x24xf32> -> vector<24x24xf32>
    %134 = arith.addf %133, %79 : vector<24x24xf32>
    %cst_57 = arith.constant dense<0xFF800000> : vector<24xf32>
    %135 = vector.multi_reduction <maximumf>, %134, %cst_57 [1] : vector<24x24xf32> to vector<24xf32>
    %136 = vector.shape_cast %135 : vector<24xf32> to vector<24x1xf32>
    %137 = vector.broadcast %136 : vector<24x1xf32> to vector<24x24xf32>
    %138 = arith.subf %134, %137 : vector<24x24xf32>
    %139 = math.exp %138 : vector<24x24xf32>
    %cst_58 = arith.constant dense<0.000000e+00> : vector<24xf32>
    %140 = vector.multi_reduction <add>, %139, %cst_58 [1] : vector<24x24xf32> to vector<24xf32>
    %141 = vector.shape_cast %140 : vector<24xf32> to vector<24x1xf32>
    %142 = tpu.reciprocal %141 {approx = true} : vector<24x1xf32> -> vector<24x1xf32>
    %143 = vector.broadcast %142 : vector<24x1xf32> to vector<24x24xf32>
    %144 = arith.mulf %139, %143 : vector<24x24xf32>
    %145 = arith.truncf %144 : vector<24x24xf32> to vector<24x24xbf16>
    %146 = vector.extract_strided_slice %67 {offsets = [0, 48], sizes = [24, 16], strides = [1, 1]} : vector<24x64xbf16> to vector<24x16xbf16>
    %cst_59 = arith.constant dense<0.000000e+00> : vector<24x16xf32>
    %147 = tpu.matmul %145, %146, %cst_59 {dimension_numbers = #tpu.dot_dimension_numbers<[1], [0], [0], [1], [0, 0, 1, 1], [], []>} : vector<24x24xbf16>, vector<24x16xbf16>, vector<24x16xf32> -> vector<24x16xf32>
    %148 = tpu.concatenate %96, %113, %130, %147 in 1 : vector<24x16xf32>, vector<24x16xf32>, vector<24x16xf32>, vector<24x16xf32> -> vector<24x64xf32>
    %149 = vector.extract_strided_slice %44 {offsets = [24, 0], sizes = [24, 64], strides = [1, 1]} : vector<48x64xf32> to vector<24x64xf32>
    %150 = arith.truncf %149 : vector<24x64xf32> to vector<24x64xbf16>
    %151 = vector.extract_strided_slice %51 {offsets = [24, 0], sizes = [24, 64], strides = [1, 1]} : vector<48x64xf32> to vector<24x64xf32>
    %152 = tpu.transpose %151, [1, 0] : vector<24x64xf32> -> vector<64x24xf32>
    %153 = arith.truncf %152 : vector<64x24xf32> to vector<64x24xbf16>
    %154 = vector.extract_strided_slice %58 {offsets = [24, 0], sizes = [24, 64], strides = [1, 1]} : vector<48x64xf32> to vector<24x64xf32>
    %155 = arith.truncf %154 : vector<24x64xf32> to vector<24x64xbf16>
    %c1_60 = arith.constant 1 : index
    %156 = memref.load %arg3[%c1_60] : memref<2xi32, #tpu.memory_space<smem>>
    %c17_i32_61 = arith.constant 17 : i32
    %157 = arith.select %0, %156, %c17_i32_61 : i32
    %158 = vector.broadcast %157 : i32 to vector<24x24xi32>
    %159 = arith.cmpi slt, %59, %158 : vector<24x24xi32>
    %160 = arith.cmpi sle, %59, %60 : vector<24x24xi32>
    %true_62 = arith.constant true
    %161 = arith.xori %0, %true_62 : i1
    %162 = vector.broadcast %161 : i1 to vector<24x24xi1>
    %163 = arith.ori %160, %162 : vector<24x24xi1>
    %164 = arith.andi %159, %163 : vector<24x24xi1>
    %cst_63 = arith.constant 0.000000e+00 : f32
    %cst_64 = arith.constant -1.000000e+09 : f32
    %165 = vector.broadcast %cst_63 : f32 to vector<24x24xf32>
    %166 = vector.broadcast %cst_64 : f32 to vector<24x24xf32>
    %167 = arith.select %164, %165, %166 : vector<24x24xi1>, vector<24x24xf32>
    %168 = vector.extract_strided_slice %150 {offsets = [0, 0], sizes = [24, 16], strides = [1, 1]} : vector<24x64xbf16> to vector<24x16xbf16>
    %169 = vector.extract_strided_slice %153 {offsets = [0, 0], sizes = [16, 24], strides = [1, 1]} : vector<64x24xbf16> to vector<16x24xbf16>
    %cst_65 = arith.constant dense<0.000000e+00> : vector<24x24xf32>
    %170 = tpu.matmul %168, %169, %cst_65 {dimension_numbers = #tpu.dot_dimension_numbers<[1], [0], [0], [1], [0, 0, 1, 1], [], []>} : vector<24x16xbf16>, vector<16x24xbf16>, vector<24x24xf32> -> vector<24x24xf32>
    %171 = arith.addf %170, %167 : vector<24x24xf32>
    %cst_66 = arith.constant dense<0xFF800000> : vector<24xf32>
    %172 = vector.multi_reduction <maximumf>, %171, %cst_66 [1] : vector<24x24xf32> to vector<24xf32>
    %173 = vector.shape_cast %172 : vector<24xf32> to vector<24x1xf32>
    %174 = vector.broadcast %173 : vector<24x1xf32> to vector<24x24xf32>
    %175 = arith.subf %171, %174 : vector<24x24xf32>
    %176 = math.exp %175 : vector<24x24xf32>
    %cst_67 = arith.constant dense<0.000000e+00> : vector<24xf32>
    %177 = vector.multi_reduction <add>, %176, %cst_67 [1] : vector<24x24xf32> to vector<24xf32>
    %178 = vector.shape_cast %177 : vector<24xf32> to vector<24x1xf32>
    %179 = tpu.reciprocal %178 {approx = true} : vector<24x1xf32> -> vector<24x1xf32>
    %180 = vector.broadcast %179 : vector<24x1xf32> to vector<24x24xf32>
    %181 = arith.mulf %176, %180 : vector<24x24xf32>
    %182 = arith.truncf %181 : vector<24x24xf32> to vector<24x24xbf16>
    %183 = vector.extract_strided_slice %155 {offsets = [0, 0], sizes = [24, 16], strides = [1, 1]} : vector<24x64xbf16> to vector<24x16xbf16>
    %cst_68 = arith.constant dense<0.000000e+00> : vector<24x16xf32>
    %184 = tpu.matmul %182, %183, %cst_68 {dimension_numbers = #tpu.dot_dimension_numbers<[1], [0], [0], [1], [0, 0, 1, 1], [], []>} : vector<24x24xbf16>, vector<24x16xbf16>, vector<24x16xf32> -> vector<24x16xf32>
    %185 = vector.extract_strided_slice %150 {offsets = [0, 16], sizes = [24, 16], strides = [1, 1]} : vector<24x64xbf16> to vector<24x16xbf16>
    %186 = vector.extract_strided_slice %153 {offsets = [16, 0], sizes = [16, 24], strides = [1, 1]} : vector<64x24xbf16> to vector<16x24xbf16>
    %cst_69 = arith.constant dense<0.000000e+00> : vector<24x24xf32>
    %187 = tpu.matmul %185, %186, %cst_69 {dimension_numbers = #tpu.dot_dimension_numbers<[1], [0], [0], [1], [0, 0, 1, 1], [], []>} : vector<24x16xbf16>, vector<16x24xbf16>, vector<24x24xf32> -> vector<24x24xf32>
    %188 = arith.addf %187, %167 : vector<24x24xf32>
    %cst_70 = arith.constant dense<0xFF800000> : vector<24xf32>
    %189 = vector.multi_reduction <maximumf>, %188, %cst_70 [1] : vector<24x24xf32> to vector<24xf32>
    %190 = vector.shape_cast %189 : vector<24xf32> to vector<24x1xf32>
    %191 = vector.broadcast %190 : vector<24x1xf32> to vector<24x24xf32>
    %192 = arith.subf %188, %191 : vector<24x24xf32>
    %193 = math.exp %192 : vector<24x24xf32>
    %cst_71 = arith.constant dense<0.000000e+00> : vector<24xf32>
    %194 = vector.multi_reduction <add>, %193, %cst_71 [1] : vector<24x24xf32> to vector<24xf32>
    %195 = vector.shape_cast %194 : vector<24xf32> to vector<24x1xf32>
    %196 = tpu.reciprocal %195 {approx = true} : vector<24x1xf32> -> vector<24x1xf32>
    %197 = vector.broadcast %196 : vector<24x1xf32> to vector<24x24xf32>
    %198 = arith.mulf %193, %197 : vector<24x24xf32>
    %199 = arith.truncf %198 : vector<24x24xf32> to vector<24x24xbf16>
    %200 = vector.extract_strided_slice %155 {offsets = [0, 16], sizes = [24, 16], strides = [1, 1]} : vector<24x64xbf16> to vector<24x16xbf16>
    %cst_72 = arith.constant dense<0.000000e+00> : vector<24x16xf32>
    %201 = tpu.matmul %199, %200, %cst_72 {dimension_numbers = #tpu.dot_dimension_numbers<[1], [0], [0], [1], [0, 0, 1, 1], [], []>} : vector<24x24xbf16>, vector<24x16xbf16>, vector<24x16xf32> -> vector<24x16xf32>
    %202 = vector.extract_strided_slice %150 {offsets = [0, 32], sizes = [24, 16], strides = [1, 1]} : vector<24x64xbf16> to vector<24x16xbf16>
    %203 = vector.extract_strided_slice %153 {offsets = [32, 0], sizes = [16, 24], strides = [1, 1]} : vector<64x24xbf16> to vector<16x24xbf16>
    %cst_73 = arith.constant dense<0.000000e+00> : vector<24x24xf32>
    %204 = tpu.matmul %202, %203, %cst_73 {dimension_numbers = #tpu.dot_dimension_numbers<[1], [0], [0], [1], [0, 0, 1, 1], [], []>} : vector<24x16xbf16>, vector<16x24xbf16>, vector<24x24xf32> -> vector<24x24xf32>
    %205 = arith.addf %204, %167 : vector<24x24xf32>
    %cst_74 = arith.constant dense<0xFF800000> : vector<24xf32>
    %206 = vector.multi_reduction <maximumf>, %205, %cst_74 [1] : vector<24x24xf32> to vector<24xf32>
    %207 = vector.shape_cast %206 : vector<24xf32> to vector<24x1xf32>
    %208 = vector.broadcast %207 : vector<24x1xf32> to vector<24x24xf32>
    %209 = arith.subf %205, %208 : vector<24x24xf32>
    %210 = math.exp %209 : vector<24x24xf32>
    %cst_75 = arith.constant dense<0.000000e+00> : vector<24xf32>
    %211 = vector.multi_reduction <add>, %210, %cst_75 [1] : vector<24x24xf32> to vector<24xf32>
    %212 = vector.shape_cast %211 : vector<24xf32> to vector<24x1xf32>
    %213 = tpu.reciprocal %212 {approx = true} : vector<24x1xf32> -> vector<24x1xf32>
    %214 = vector.broadcast %213 : vector<24x1xf32> to vector<24x24xf32>
    %215 = arith.mulf %210, %214 : vector<24x24xf32>
    %216 = arith.truncf %215 : vector<24x24xf32> to vector<24x24xbf16>
    %217 = vector.extract_strided_slice %155 {offsets = [0, 32], sizes = [24, 16], strides = [1, 1]} : vector<24x64xbf16> to vector<24x16xbf16>
    %cst_76 = arith.constant dense<0.000000e+00> : vector<24x16xf32>
    %218 = tpu.matmul %216, %217, %cst_76 {dimension_numbers = #tpu.dot_dimension_numbers<[1], [0], [0], [1], [0, 0, 1, 1], [], []>} : vector<24x24xbf16>, vector<24x16xbf16>, vector<24x16xf32> -> vector<24x16xf32>
    %219 = vector.extract_strided_slice %150 {offsets = [0, 48], sizes = [24, 16], strides = [1, 1]} : vector<24x64xbf16> to vector<24x16xbf16>
    %220 = vector.extract_strided_slice %153 {offsets = [48, 0], sizes = [16, 24], strides = [1, 1]} : vector<64x24xbf16> to vector<16x24xbf16>
    %cst_77 = arith.constant dense<0.000000e+00> : vector<24x24xf32>
    %221 = tpu.matmul %219, %220, %cst_77 {dimension_numbers = #tpu.dot_dimension_numbers<[1], [0], [0], [1], [0, 0, 1, 1], [], []>} : vector<24x16xbf16>, vector<16x24xbf16>, vector<24x24xf32> -> vector<24x24xf32>
    %222 = arith.addf %221, %167 : vector<24x24xf32>
    %cst_78 = arith.constant dense<0xFF800000> : vector<24xf32>
    %223 = vector.multi_reduction <maximumf>, %222, %cst_78 [1] : vector<24x24xf32> to vector<24xf32>
    %224 = vector.shape_cast %223 : vector<24xf32> to vector<24x1xf32>
    %225 = vector.broadcast %224 : vector<24x1xf32> to vector<24x24xf32>
    %226 = arith.subf %222, %225 : vector<24x24xf32>
    %227 = math.exp %226 : vector<24x24xf32>
    %cst_79 = arith.constant dense<0.000000e+00> : vector<24xf32>
    %228 = vector.multi_reduction <add>, %227, %cst_79 [1] : vector<24x24xf32> to vector<24xf32>
    %229 = vector.shape_cast %228 : vector<24xf32> to vector<24x1xf32>
    %230 = tpu.reciprocal %229 {approx = true} : vector<24x1xf32> -> vector<24x1xf32>
    %231 = vector.broadcast %230 : vector<24x1xf32> to vector<24x24xf32>
    %232 = arith.mulf %227, %231 : vector<24x24xf32>
    %233 = arith.truncf %232 : vector<24x24xf32> to vector<24x24xbf16>
    %234 = vector.extract_strided_slice %155 {offsets = [0, 48], sizes = [24, 16], strides = [1, 1]} : vector<24x64xbf16> to vector<24x16xbf16>
    %cst_80 = arith.constant dense<0.000000e+00> : vector<24x16xf32>
    %235 = tpu.matmul %233, %234, %cst_80 {dimension_numbers = #tpu.dot_dimension_numbers<[1], [0], [0], [1], [0, 0, 1, 1], [], []>} : vector<24x24xbf16>, vector<24x16xbf16>, vector<24x16xf32> -> vector<24x16xf32>
    %236 = tpu.concatenate %184, %201, %218, %235 in 1 : vector<24x16xf32>, vector<24x16xf32>, vector<24x16xf32>, vector<24x16xf32> -> vector<24x64xf32>
    %237 = tpu.concatenate %148, %236 in 0 : vector<24x64xf32>, vector<24x64xf32> -> vector<48x64xf32>
    %238 = arith.truncf %237 : vector<48x64xf32> to vector<48x64xbf16>
    %c0_81 = arith.constant 0 : index
    %c0_82 = arith.constant 0 : index
    %c0_83 = arith.constant 0 : index
    %239 = vector.load %arg14[%c0_81, %c0_82, %c0_83] : memref<1x64x64xbf16, #tpu.memory_space<vmem>>, vector<1x64x64xbf16>
    %240 = vector.shape_cast %239 : vector<1x64x64xbf16> to vector<64x64xbf16>
    %cst_84 = arith.constant dense<0.000000e+00> : vector<48x64xf32>
    %241 = tpu.matmul %238, %240, %cst_84 {dimension_numbers = #tpu.dot_dimension_numbers<[1], [0], [0], [1], [0, 0, 1, 1], [], []>} : vector<48x64xbf16>, vector<64x64xbf16>, vector<48x64xf32> -> vector<48x64xf32>
    %242 = arith.addf %10, %241 : vector<48x64xf32>
    %c0_85 = arith.constant 0 : index
    %c0_86 = arith.constant 0 : index
    %c0_87 = arith.constant 0 : index
    %243 = vector.load %arg15[%c0_85, %c0_86, %c0_87] : memref<1x1x64xf32, #tpu.memory_space<vmem>>, vector<1x1x64xf32>
    %244 = vector.shape_cast %243 : vector<1x1x64xf32> to vector<1x64xf32>
    %245 = vector.broadcast %244 : vector<1x64xf32> to vector<48x64xf32>
    %246 = arith.addf %242, %245 : vector<48x64xf32>
    %c0_88 = arith.constant 0 : index
    %c0_89 = arith.constant 0 : index
    %c0_90 = arith.constant 0 : index
    %247 = vector.load %arg16[%c0_88, %c0_89, %c0_90] : memref<1x1x64xf32, #tpu.memory_space<vmem>>, vector<1x1x64xf32>
    %248 = vector.shape_cast %247 : vector<1x1x64xf32> to vector<1x64xf32>
    %c0_91 = arith.constant 0 : index
    %c0_92 = arith.constant 0 : index
    %c0_93 = arith.constant 0 : index
    %249 = vector.load %arg17[%c0_91, %c0_92, %c0_93] : memref<1x1x64xf32, #tpu.memory_space<vmem>>, vector<1x1x64xf32>
    %250 = vector.shape_cast %249 : vector<1x1x64xf32> to vector<1x64xf32>
    %cst_94 = arith.constant dense<0.000000e+00> : vector<48xf32>
    %251 = vector.multi_reduction <add>, %246, %cst_94 [1] : vector<48x64xf32> to vector<48xf32>
    %252 = vector.shape_cast %251 : vector<48xf32> to vector<48x1xf32>
    %cst_95 = arith.constant 6.400000e+01 : f32
    %253 = vector.broadcast %cst_95 : f32 to vector<48x1xf32>
    %254 = arith.divf %252, %253 : vector<48x1xf32>
    %255 = vector.broadcast %254 : vector<48x1xf32> to vector<48x64xf32>
    %256 = arith.subf %246, %255 : vector<48x64xf32>
    %257 = arith.mulf %256, %256 : vector<48x64xf32>
    %cst_96 = arith.constant dense<0.000000e+00> : vector<48xf32>
    %258 = vector.multi_reduction <add>, %257, %cst_96 [1] : vector<48x64xf32> to vector<48xf32>
    %259 = vector.shape_cast %258 : vector<48xf32> to vector<48x1xf32>
    %cst_97 = arith.constant 6.400000e+01 : f32
    %260 = vector.broadcast %cst_97 : f32 to vector<48x1xf32>
    %261 = arith.divf %259, %260 : vector<48x1xf32>
    %262 = vector.broadcast %254 : vector<48x1xf32> to vector<48x64xf32>
    %263 = arith.subf %246, %262 : vector<48x64xf32>
    %cst_98 = arith.constant 9.99999974E-6 : f32
    %264 = vector.broadcast %cst_98 : f32 to vector<48x1xf32>
    %265 = arith.addf %261, %264 : vector<48x1xf32>
    %266 = math.rsqrt %265 : vector<48x1xf32>
    %267 = vector.broadcast %266 : vector<48x1xf32> to vector<48x64xf32>
    %268 = arith.mulf %263, %267 : vector<48x64xf32>
    %269 = vector.broadcast %248 : vector<1x64xf32> to vector<48x64xf32>
    %270 = arith.mulf %268, %269 : vector<48x64xf32>
    %271 = vector.broadcast %250 : vector<1x64xf32> to vector<48x64xf32>
    %272 = arith.addf %270, %271 : vector<48x64xf32>
    %273 = arith.truncf %272 : vector<48x64xf32> to vector<48x64xbf16>
    %c0_99 = arith.constant 0 : index
    %c0_100 = arith.constant 0 : index
    %c0_101 = arith.constant 0 : index
    %274 = vector.load %arg18[%c0_99, %c0_100, %c0_101] : memref<1x64x256xbf16, #tpu.memory_space<vmem>>, vector<1x64x256xbf16>
    %275 = vector.shape_cast %274 : vector<1x64x256xbf16> to vector<64x256xbf16>
    %cst_102 = arith.constant dense<0.000000e+00> : vector<48x256xf32>
    %276 = tpu.matmul %273, %275, %cst_102 {dimension_numbers = #tpu.dot_dimension_numbers<[1], [0], [0], [1], [0, 0, 1, 1], [], []>} : vector<48x64xbf16>, vector<64x256xbf16>, vector<48x256xf32> -> vector<48x256xf32>
    %c0_103 = arith.constant 0 : index
    %c0_104 = arith.constant 0 : index
    %c0_105 = arith.constant 0 : index
    %277 = vector.load %arg19[%c0_103, %c0_104, %c0_105] : memref<1x1x256xf32, #tpu.memory_space<vmem>>, vector<1x1x256xf32>
    %278 = vector.shape_cast %277 : vector<1x1x256xf32> to vector<1x256xf32>
    %279 = vector.broadcast %278 : vector<1x256xf32> to vector<48x256xf32>
    %280 = arith.addf %276, %279 : vector<48x256xf32>
    %cst_106 = arith.constant 1.702000e+00 : f32
    %281 = vector.broadcast %cst_106 : f32 to vector<48x256xf32>
    %282 = arith.mulf %281, %280 : vector<48x256xf32>
    %283 = arith.negf %282 : vector<48x256xf32>
    %284 = math.exp %283 : vector<48x256xf32>
    %cst_107 = arith.constant 1.000000e+00 : f32
    %285 = vector.broadcast %cst_107 : f32 to vector<48x256xf32>
    %286 = arith.addf %285, %284 : vector<48x256xf32>
    %287 = arith.divf %285, %286 : vector<48x256xf32>
    %288 = arith.mulf %280, %287 : vector<48x256xf32>
    %289 = arith.truncf %288 : vector<48x256xf32> to vector<48x256xbf16>
    %c0_108 = arith.constant 0 : index
    %c0_109 = arith.constant 0 : index
    %c0_110 = arith.constant 0 : index
    %290 = vector.load %arg20[%c0_108, %c0_109, %c0_110] : memref<1x256x64xbf16, #tpu.memory_space<vmem>>, vector<1x256x64xbf16>
    %291 = vector.shape_cast %290 : vector<1x256x64xbf16> to vector<256x64xbf16>
    %cst_111 = arith.constant dense<0.000000e+00> : vector<48x64xf32>
    %292 = tpu.matmul %289, %291, %cst_111 {dimension_numbers = #tpu.dot_dimension_numbers<[1], [0], [0], [1], [0, 0, 1, 1], [], []>} : vector<48x256xbf16>, vector<256x64xbf16>, vector<48x64xf32> -> vector<48x64xf32>
    %c0_112 = arith.constant 0 : index
    %c0_113 = arith.constant 0 : index
    %c0_114 = arith.constant 0 : index
    %293 = vector.load %arg21[%c0_112, %c0_113, %c0_114] : memref<1x1x64xf32, #tpu.memory_space<vmem>>, vector<1x1x64xf32>
    %294 = vector.shape_cast %293 : vector<1x1x64xf32> to vector<1x64xf32>
    %295 = vector.broadcast %294 : vector<1x64xf32> to vector<48x64xf32>
    %296 = arith.addf %292, %295 : vector<48x64xf32>
    %297 = arith.addf %246, %296 : vector<48x64xf32>
    %c0_115 = arith.constant 0 : index
    %c0_116 = arith.constant 0 : index
    %298 = vector.load %arg26[%c0_115, %c0_116] : memref<48x64xf32, #tpu.memory_space<vmem>>, vector<48x64xf32>
    tpu.vector_store %arg26[%c0_115, %c0_116], %297 {strides = array<i32>} : memref<48x64xf32, #tpu.memory_space<vmem>>, vector<48x64xf32>,
    %c1_i32 = arith.constant 1 : i32
    %299 = arith.cmpi eq, %arg1, %c1_i32 : i32
    %300 = arith.extui %299 : i1 to i32
    %c0_i32_117 = arith.constant 0 : i32
    %301 = arith.cmpi ne, %300, %c0_i32_117 : i32
    scf.if %301 {
      %302 = tpu.iota {dimensions = array<i32: 0>} : vector<24x1xi32>
      %303 = vector.extract_strided_slice %297 {offsets = [0, 0], sizes = [24, 64], strides = [1, 1]} : vector<48x64xf32> to vector<24x64xf32>
      %c0_118 = arith.constant 0 : index
      %304 = memref.load %arg2[%c0_118] : memref<2xi32, #tpu.memory_space<smem>>
      %305 = vector.broadcast %304 : i32 to vector<24x1xi32>
      %306 = arith.cmpi eq, %302, %305 : vector<24x1xi32>
      %307 = arith.extui %306 : vector<24x1xi1> to vector<24x1xi32>
      %308 = arith.sitofp %307 : vector<24x1xi32> to vector<24x1xf32>
      %309 = vector.broadcast %308 : vector<24x1xf32> to vector<24x64xf32>
      %310 = arith.mulf %303, %309 : vector<24x64xf32>
      %cst_119 = arith.constant dense<0.000000e+00> : vector<64xf32>
      %311 = vector.multi_reduction <add>, %310, %cst_119 [0] : vector<24x64xf32> to vector<64xf32>
      %312 = vector.shape_cast %311 : vector<64xf32> to vector<1x64xf32>
      %313 = vector.extract_strided_slice %303 {offsets = [0, 0], sizes = [1, 64], strides = [1, 1]} : vector<24x64xf32> to vector<1x64xf32>
      %314 = vector.extract_strided_slice %297 {offsets = [24, 0], sizes = [24, 64], strides = [1, 1]} : vector<48x64xf32> to vector<24x64xf32>
      %c1_120 = arith.constant 1 : index
      %315 = memref.load %arg2[%c1_120] : memref<2xi32, #tpu.memory_space<smem>>
      %316 = vector.broadcast %315 : i32 to vector<24x1xi32>
      %317 = arith.cmpi eq, %302, %316 : vector<24x1xi32>
      %318 = arith.extui %317 : vector<24x1xi1> to vector<24x1xi32>
      %319 = arith.sitofp %318 : vector<24x1xi32> to vector<24x1xf32>
      %320 = vector.broadcast %319 : vector<24x1xf32> to vector<24x64xf32>
      %321 = arith.mulf %314, %320 : vector<24x64xf32>
      %cst_121 = arith.constant dense<0.000000e+00> : vector<64xf32>
      %322 = vector.multi_reduction <add>, %321, %cst_121 [0] : vector<24x64xf32> to vector<64xf32>
      %323 = vector.shape_cast %322 : vector<64xf32> to vector<1x64xf32>
      %324 = vector.extract_strided_slice %314 {offsets = [0, 0], sizes = [1, 64], strides = [1, 1]} : vector<24x64xf32> to vector<1x64xf32>
      %325 = tpu.concatenate %312, %323 in 0 : vector<1x64xf32>, vector<1x64xf32> -> vector<2x64xf32>
      %326 = tpu.concatenate %313, %324 in 0 : vector<1x64xf32>, vector<1x64xf32> -> vector<2x64xf32>
      %327 = arith.select %0, %325, %326 : vector<2x64xf32>
      %c0_122 = arith.constant 0 : index
      %c0_123 = arith.constant 0 : index
      %c0_124 = arith.constant 0 : index
      %328 = vector.load %arg22[%c0_122, %c0_123, %c0_124] : memref<1x1x64xf32, #tpu.memory_space<vmem>>, vector<1x1x64xf32>
      %329 = vector.shape_cast %328 : vector<1x1x64xf32> to vector<1x64xf32>
      %c0_125 = arith.constant 0 : index
      %c0_126 = arith.constant 0 : index
      %c0_127 = arith.constant 0 : index
      %330 = vector.load %arg23[%c0_125, %c0_126, %c0_127] : memref<1x1x64xf32, #tpu.memory_space<vmem>>, vector<1x1x64xf32>
      %331 = vector.shape_cast %330 : vector<1x1x64xf32> to vector<1x64xf32>
      %cst_128 = arith.constant dense<0.000000e+00> : vector<2xf32>
      %332 = vector.multi_reduction <add>, %327, %cst_128 [1] : vector<2x64xf32> to vector<2xf32>
      %333 = vector.shape_cast %332 : vector<2xf32> to vector<2x1xf32>
      %cst_129 = arith.constant 6.400000e+01 : f32
      %334 = vector.broadcast %cst_129 : f32 to vector<2x1xf32>
      %335 = arith.divf %333, %334 : vector<2x1xf32>
      %336 = vector.broadcast %335 : vector<2x1xf32> to vector<2x64xf32>
      %337 = arith.subf %327, %336 : vector<2x64xf32>
      %338 = arith.mulf %337, %337 : vector<2x64xf32>
      %cst_130 = arith.constant dense<0.000000e+00> : vector<2xf32>
      %339 = vector.multi_reduction <add>, %338, %cst_130 [1] : vector<2x64xf32> to vector<2xf32>
      %340 = vector.shape_cast %339 : vector<2xf32> to vector<2x1xf32>
      %cst_131 = arith.constant 6.400000e+01 : f32
      %341 = vector.broadcast %cst_131 : f32 to vector<2x1xf32>
      %342 = arith.divf %340, %341 : vector<2x1xf32>
      %343 = vector.broadcast %335 : vector<2x1xf32> to vector<2x64xf32>
      %344 = arith.subf %327, %343 : vector<2x64xf32>
      %cst_132 = arith.constant 9.99999974E-6 : f32
      %345 = vector.broadcast %cst_132 : f32 to vector<2x1xf32>
      %346 = arith.addf %342, %345 : vector<2x1xf32>
      %347 = math.rsqrt %346 : vector<2x1xf32>
      %348 = vector.broadcast %347 : vector<2x1xf32> to vector<2x64xf32>
      %349 = arith.mulf %344, %348 : vector<2x64xf32>
      %350 = vector.broadcast %329 : vector<1x64xf32> to vector<2x64xf32>
      %351 = arith.mulf %349, %350 : vector<2x64xf32>
      %352 = vector.broadcast %331 : vector<1x64xf32> to vector<2x64xf32>
      %353 = arith.addf %351, %352 : vector<2x64xf32>
      %354 = arith.truncf %353 : vector<2x64xf32> to vector<2x64xbf16>
      %c0_133 = arith.constant 0 : index
      %c0_134 = arith.constant 0 : index
      %c0_135 = arith.constant 0 : index
      %355 = vector.load %arg24[%c0_133, %c0_134, %c0_135] : memref<1x64x512xbf16, #tpu.memory_space<vmem>>, vector<1x64x512xbf16>
      %356 = vector.shape_cast %355 : vector<1x64x512xbf16> to vector<64x512xbf16>
      %cst_136 = arith.constant dense<0.000000e+00> : vector<2x512xf32>
      %357 = tpu.matmul %354, %356, %cst_136 {dimension_numbers = #tpu.dot_dimension_numbers<[1], [0], [0], [1], [0, 0, 1, 1], [], []>} : vector<2x64xbf16>, vector<64x512xbf16>, vector<2x512xf32> -> vector<2x512xf32>
      %358 = arith.mulf %357, %357 : vector<2x512xf32>
      %cst_137 = arith.constant dense<0.000000e+00> : vector<2xf32>
      %359 = vector.multi_reduction <add>, %358, %cst_137 [1] : vector<2x512xf32> to vector<2xf32>
      %360 = vector.shape_cast %359 : vector<2xf32> to vector<2x1xf32>
      %cst_138 = arith.constant 9.99999996E-13 : f32
      %361 = vector.broadcast %cst_138 : f32 to vector<2x1xf32>
      %362 = arith.addf %360, %361 : vector<2x1xf32>
      %363 = math.rsqrt %362 : vector<2x1xf32>
      %364 = vector.broadcast %363 : vector<2x1xf32> to vector<2x512xf32>
      %365 = arith.mulf %357, %364 : vector<2x512xf32>
      %c0_139 = arith.constant 0 : index
      %c0_140 = arith.constant 0 : index
      %c0_141 = arith.constant 0 : index
      %366 = vector.load %arg25[%c0_139, %c0_140, %c0_141] : memref<1x2x512xf32, #tpu.memory_space<vmem>>, vector<1x2x512xf32>
      %367 = vector.shape_cast %366 : vector<1x2x512xf32> to vector<2x512xf32>
      %368 = vector.shape_cast %365 : vector<2x512xf32> to vector<1x2x512xf32>
      tpu.vector_store %arg25[%c0_139, %c0_140, %c0_141], %368 {strides = array<i32>} : memref<1x2x512xf32, #tpu.memory_space<vmem>>, vector<1x2x512xf32>,
    } else {
    }
    return
  }
  func.func @transform_0(%arg0: i32, %arg1: i32, %arg2: memref<2xi32, #tpu.memory_space<smem>>, %arg3: memref<2xi32, #tpu.memory_space<smem>>) -> (i32, i32) {
    %c0_i32 = arith.constant 0 : i32
    %c0_i32_0 = arith.constant 0 : i32
    %c0_i32_1 = arith.constant 0 : i32
    return %c0_i32, %c0_i32_0 : i32, i32
  }
  func.func @transform_1(%arg0: i32, %arg1: i32, %arg2: memref<2xi32, #tpu.memory_space<smem>>, %arg3: memref<2xi32, #tpu.memory_space<smem>>) -> (i32, i32) {
    %c0_i32 = arith.constant 0 : i32
    %c0_i32_0 = arith.constant 0 : i32
    %c0_i32_1 = arith.constant 0 : i32
    return %c0_i32, %c0_i32_0 : i32, i32
  }
  func.func @transform_2(%arg0: i32, %arg1: i32, %arg2: memref<2xi32, #tpu.memory_space<smem>>, %arg3: memref<2xi32, #tpu.memory_space<smem>>) -> (i32, i32) {
    %c0_i32 = arith.constant 0 : i32
    %c0_i32_0 = arith.constant 0 : i32
    %c0_i32_1 = arith.constant 0 : i32
    return %c0_i32, %c0_i32_0 : i32, i32
  }
  func.func @transform_3(%arg0: i32, %arg1: i32, %arg2: memref<2xi32, #tpu.memory_space<smem>>, %arg3: memref<2xi32, #tpu.memory_space<smem>>) -> (i32, i32) {
    %c0_i32 = arith.constant 0 : i32
    %c0_i32_0 = arith.constant 0 : i32
    %c0_i32_1 = arith.constant 0 : i32
    return %c0_i32, %c0_i32_0 : i32, i32
  }
  func.func @transform_4(%arg0: i32, %arg1: i32, %arg2: memref<2xi32, #tpu.memory_space<smem>>, %arg3: memref<2xi32, #tpu.memory_space<smem>>) -> (i32, i32) {
    %c0_i32 = arith.constant 0 : i32
    %c0_i32_0 = arith.constant 0 : i32
    %c0_i32_1 = arith.constant 0 : i32
    return %c0_i32, %c0_i32_0 : i32, i32
  }
  func.func @transform_5(%arg0: i32, %arg1: i32, %arg2: memref<2xi32, #tpu.memory_space<smem>>, %arg3: memref<2xi32, #tpu.memory_space<smem>>) -> (i32, i32) {
    %c0_i32 = arith.constant 0 : i32
    %c0_i32_0 = arith.constant 0 : i32
    %c0_i32_1 = arith.constant 0 : i32
    return %c0_i32, %c0_i32_0 : i32, i32
  }
  func.func @transform_6(%arg0: i32, %arg1: i32, %arg2: memref<2xi32, #tpu.memory_space<smem>>, %arg3: memref<2xi32, #tpu.memory_space<smem>>) -> (i32, i32, i32) {
    %c2_i32 = arith.constant 2 : i32
    %0 = arith.muli %arg0, %c2_i32 : i32
    %1 = arith.addi %0, %arg1 : i32
    %c0_i32 = arith.constant 0 : i32
    %c0_i32_0 = arith.constant 0 : i32
    %c0_i32_1 = arith.constant 0 : i32
    return %1, %c0_i32, %c0_i32_0 : i32, i32, i32
  }
  func.func @transform_7(%arg0: i32, %arg1: i32, %arg2: memref<2xi32, #tpu.memory_space<smem>>, %arg3: memref<2xi32, #tpu.memory_space<smem>>) -> (i32, i32, i32) {
    %c2_i32 = arith.constant 2 : i32
    %0 = arith.muli %arg0, %c2_i32 : i32
    %1 = arith.addi %0, %arg1 : i32
    %c0_i32 = arith.constant 0 : i32
    %c0_i32_0 = arith.constant 0 : i32
    %c0_i32_1 = arith.constant 0 : i32
    return %1, %c0_i32, %c0_i32_0 : i32, i32, i32
  }
  func.func @transform_8(%arg0: i32, %arg1: i32, %arg2: memref<2xi32, #tpu.memory_space<smem>>, %arg3: memref<2xi32, #tpu.memory_space<smem>>) -> (i32, i32, i32, i32) {
    %c2_i32 = arith.constant 2 : i32
    %0 = arith.muli %arg0, %c2_i32 : i32
    %1 = arith.addi %0, %arg1 : i32
    %c0_i32 = arith.constant 0 : i32
    %c0_i32_0 = arith.constant 0 : i32
    %c0_i32_1 = arith.constant 0 : i32
    %c0_i32_2 = arith.constant 0 : i32
    return %1, %c0_i32, %c0_i32_0, %c0_i32_1 : i32, i32, i32, i32
  }
  func.func @transform_9(%arg0: i32, %arg1: i32, %arg2: memref<2xi32, #tpu.memory_space<smem>>, %arg3: memref<2xi32, #tpu.memory_space<smem>>) -> (i32, i32, i32, i32) {
    %c2_i32 = arith.constant 2 : i32
    %0 = arith.muli %arg0, %c2_i32 : i32
    %1 = arith.addi %0, %arg1 : i32
    %c0_i32 = arith.constant 0 : i32
    %c0_i32_0 = arith.constant 0 : i32
    %c0_i32_1 = arith.constant 0 : i32
    %c0_i32_2 = arith.constant 0 : i32
    return %1, %c0_i32, %c0_i32_0, %c0_i32_1 : i32, i32, i32, i32
  }
  func.func @transform_10(%arg0: i32, %arg1: i32, %arg2: memref<2xi32, #tpu.memory_space<smem>>, %arg3: memref<2xi32, #tpu.memory_space<smem>>) -> (i32, i32, i32) {
    %c2_i32 = arith.constant 2 : i32
    %0 = arith.muli %arg0, %c2_i32 : i32
    %1 = arith.addi %0, %arg1 : i32
    %c0_i32 = arith.constant 0 : i32
    %c0_i32_0 = arith.constant 0 : i32
    %c0_i32_1 = arith.constant 0 : i32
    return %1, %c0_i32, %c0_i32_0 : i32, i32, i32
  }
  func.func @transform_11(%arg0: i32, %arg1: i32, %arg2: memref<2xi32, #tpu.memory_space<smem>>, %arg3: memref<2xi32, #tpu.memory_space<smem>>) -> (i32, i32, i32) {
    %c2_i32 = arith.constant 2 : i32
    %0 = arith.muli %arg0, %c2_i32 : i32
    %1 = arith.addi %0, %arg1 : i32
    %c0_i32 = arith.constant 0 : i32
    %c0_i32_0 = arith.constant 0 : i32
    %c0_i32_1 = arith.constant 0 : i32
    return %1, %c0_i32, %c0_i32_0 : i32, i32, i32
  }
  func.func @transform_12(%arg0: i32, %arg1: i32, %arg2: memref<2xi32, #tpu.memory_space<smem>>, %arg3: memref<2xi32, #tpu.memory_space<smem>>) -> (i32, i32, i32) {
    %c2_i32 = arith.constant 2 : i32
    %0 = arith.muli %arg0, %c2_i32 : i32
    %1 = arith.addi %0, %arg1 : i32
    %c0_i32 = arith.constant 0 : i32
    %c0_i32_0 = arith.constant 0 : i32
    %c0_i32_1 = arith.constant 0 : i32
    return %1, %c0_i32, %c0_i32_0 : i32, i32, i32
  }
  func.func @transform_13(%arg0: i32, %arg1: i32, %arg2: memref<2xi32, #tpu.memory_space<smem>>, %arg3: memref<2xi32, #tpu.memory_space<smem>>) -> (i32, i32, i32) {
    %c2_i32 = arith.constant 2 : i32
    %0 = arith.muli %arg0, %c2_i32 : i32
    %1 = arith.addi %0, %arg1 : i32
    %c0_i32 = arith.constant 0 : i32
    %c0_i32_0 = arith.constant 0 : i32
    %c0_i32_1 = arith.constant 0 : i32
    return %1, %c0_i32, %c0_i32_0 : i32, i32, i32
  }
  func.func @transform_14(%arg0: i32, %arg1: i32, %arg2: memref<2xi32, #tpu.memory_space<smem>>, %arg3: memref<2xi32, #tpu.memory_space<smem>>) -> (i32, i32, i32) {
    %c2_i32 = arith.constant 2 : i32
    %0 = arith.muli %arg0, %c2_i32 : i32
    %1 = arith.addi %0, %arg1 : i32
    %c0_i32 = arith.constant 0 : i32
    %c0_i32_0 = arith.constant 0 : i32
    %c0_i32_1 = arith.constant 0 : i32
    return %1, %c0_i32, %c0_i32_0 : i32, i32, i32
  }
  func.func @transform_15(%arg0: i32, %arg1: i32, %arg2: memref<2xi32, #tpu.memory_space<smem>>, %arg3: memref<2xi32, #tpu.memory_space<smem>>) -> (i32, i32, i32) {
    %c2_i32 = arith.constant 2 : i32
    %0 = arith.muli %arg0, %c2_i32 : i32
    %1 = arith.addi %0, %arg1 : i32
    %c0_i32 = arith.constant 0 : i32
    %c0_i32_0 = arith.constant 0 : i32
    %c0_i32_1 = arith.constant 0 : i32
    return %1, %c0_i32, %c0_i32_0 : i32, i32, i32
  }
  func.func @transform_16(%arg0: i32, %arg1: i32, %arg2: memref<2xi32, #tpu.memory_space<smem>>, %arg3: memref<2xi32, #tpu.memory_space<smem>>) -> (i32, i32, i32) {
    %c2_i32 = arith.constant 2 : i32
    %0 = arith.muli %arg0, %c2_i32 : i32
    %1 = arith.addi %0, %arg1 : i32
    %c0_i32 = arith.constant 0 : i32
    %c0_i32_0 = arith.constant 0 : i32
    %c0_i32_1 = arith.constant 0 : i32
    return %1, %c0_i32, %c0_i32_0 : i32, i32, i32
  }
  func.func @transform_17(%arg0: i32, %arg1: i32, %arg2: memref<2xi32, #tpu.memory_space<smem>>, %arg3: memref<2xi32, #tpu.memory_space<smem>>) -> (i32, i32, i32) {
    %c2_i32 = arith.constant 2 : i32
    %0 = arith.muli %arg0, %c2_i32 : i32
    %1 = arith.addi %0, %arg1 : i32
    %c0_i32 = arith.constant 0 : i32
    %c0_i32_0 = arith.constant 0 : i32
    %c0_i32_1 = arith.constant 0 : i32
    return %1, %c0_i32, %c0_i32_0 : i32, i32, i32
  }
  func.func @transform_18(%arg0: i32, %arg1: i32, %arg2: memref<2xi32, #tpu.memory_space<smem>>, %arg3: memref<2xi32, #tpu.memory_space<smem>>) -> (i32, i32, i32) {
    %c0_i32 = arith.constant 0 : i32
    %c0_i32_0 = arith.constant 0 : i32
    %c0_i32_1 = arith.constant 0 : i32
    return %arg0, %c0_i32, %c0_i32_0 : i32, i32, i32
  }
  func.func @transform_19(%arg0: i32, %arg1: i32, %arg2: memref<2xi32, #tpu.memory_space<smem>>, %arg3: memref<2xi32, #tpu.memory_space<smem>>) -> (i32, i32, i32) {
    %c0_i32 = arith.constant 0 : i32
    %c0_i32_0 = arith.constant 0 : i32
    %c0_i32_1 = arith.constant 0 : i32
    return %arg0, %c0_i32, %c0_i32_0 : i32, i32, i32
  }
  func.func @transform_20(%arg0: i32, %arg1: i32, %arg2: memref<2xi32, #tpu.memory_space<smem>>, %arg3: memref<2xi32, #tpu.memory_space<smem>>) -> (i32, i32, i32) {
    %c0_i32 = arith.constant 0 : i32
    %c0_i32_0 = arith.constant 0 : i32
    %c0_i32_1 = arith.constant 0 : i32
    return %arg0, %c0_i32, %c0_i32_0 : i32, i32, i32
  }
  func.func @transform_21(%arg0: i32, %arg1: i32, %arg2: memref<2xi32, #tpu.memory_space<smem>>, %arg3: memref<2xi32, #tpu.memory_space<smem>>) -> (i32, i32, i32) {
    %c0_i32 = arith.constant 0 : i32
    %c0_i32_0 = arith.constant 0 : i32
    %c0_i32_1 = arith.constant 0 : i32
    return %arg0, %c0_i32, %c0_i32_0 : i32, i32, i32
  }
}

module attributes {stable_mosaic.version = 11 : i64} {
  func.func @_head_kernel(%arg0: i32, %arg1: memref<1x2x512xf32, #tpu.memory_space<vmem>>, %arg2: memref<1x512x256xbf16, #tpu.memory_space<vmem>>, %arg3: memref<1x256xf32, #tpu.memory_space<vmem>>, %arg4: memref<256x5xbf16, #tpu.memory_space<vmem>>, %arg5: memref<1x5xf32, #tpu.memory_space<vmem>>, %arg6: memref<2x5xf32, #tpu.memory_space<vmem>>, %arg7: memref<2x256xf32, #tpu.memory_space<vmem>>) attributes {dimension_semantics = [#tpu.dimension_semantics<arbitrary>], iteration_bounds = array<i64: 2>, scalar_prefetch = 0 : i64, scratch_operands = 1 : i64, tpu.core_type = #tpu.core_type<tc>, window_params = [{transform_indices = @transform_0, window_bounds = array<i64: 1, 2, 512>}, {transform_indices = @transform_1, window_bounds = array<i64: 1, 512, 256>}, {pipeline_mode = #tpu.pipeline_mode<synchronous>, transform_indices = @transform_2, window_bounds = array<i64: 1, 256>}, {pipeline_mode = #tpu.pipeline_mode<synchronous>, transform_indices = @transform_3, window_bounds = array<i64: 256, 5>}, {pipeline_mode = #tpu.pipeline_mode<synchronous>, transform_indices = @transform_4, window_bounds = array<i64: 1, 5>}, {pipeline_mode = #tpu.pipeline_mode<synchronous>, transform_indices = @transform_5, window_bounds = array<i64: 2, 5>}]} {
    %c0_i32 = arith.constant 0 : i32
    %0 = arith.cmpi eq, %arg0, %c0_i32 : i32
    %1 = arith.extui %0 : i1 to i32
    %c0_i32_0 = arith.constant 0 : i32
    %2 = arith.cmpi ne, %1, %c0_i32_0 : i32
    scf.if %2 {
      %cst_11 = arith.constant 0.000000e+00 : f32
      %15 = vector.broadcast %cst_11 : f32 to vector<2x256xf32>
      %c0_12 = arith.constant 0 : index
      %c0_13 = arith.constant 0 : index
      %16 = vector.load %arg7[%c0_12, %c0_13] : memref<2x256xf32, #tpu.memory_space<vmem>>, vector<2x256xf32>
      tpu.vector_store %arg7[%c0_12, %c0_13], %15 {strides = array<i32>} : memref<2x256xf32, #tpu.memory_space<vmem>>, vector<2x256xf32>,
    } else {
    }
    %c0 = arith.constant 0 : index
    %c0_1 = arith.constant 0 : index
    %3 = vector.load %arg7[%c0, %c0_1] : memref<2x256xf32, #tpu.memory_space<vmem>>, vector<2x256xf32>
    %c0_2 = arith.constant 0 : index
    %c0_3 = arith.constant 0 : index
    %c0_4 = arith.constant 0 : index
    %4 = vector.load %arg1[%c0_2, %c0_3, %c0_4] : memref<1x2x512xf32, #tpu.memory_space<vmem>>, vector<1x2x512xf32>
    %5 = vector.shape_cast %4 : vector<1x2x512xf32> to vector<2x512xf32>
    %6 = arith.truncf %5 : vector<2x512xf32> to vector<2x512xbf16>
    %c0_5 = arith.constant 0 : index
    %c0_6 = arith.constant 0 : index
    %c0_7 = arith.constant 0 : index
    %7 = vector.load %arg2[%c0_5, %c0_6, %c0_7] : memref<1x512x256xbf16, #tpu.memory_space<vmem>>, vector<1x512x256xbf16>
    %8 = vector.shape_cast %7 : vector<1x512x256xbf16> to vector<512x256xbf16>
    %cst = arith.constant dense<0.000000e+00> : vector<2x256xf32>
    %9 = tpu.matmul %6, %8, %cst {dimension_numbers = #tpu.dot_dimension_numbers<[1], [0], [0], [1], [0, 0, 1, 1], [], []>} : vector<2x512xbf16>, vector<512x256xbf16>, vector<2x256xf32> -> vector<2x256xf32>
    %10 = arith.addf %3, %9 : vector<2x256xf32>
    %c0_8 = arith.constant 0 : index
    %c0_9 = arith.constant 0 : index
    %11 = vector.load %arg7[%c0_8, %c0_9] : memref<2x256xf32, #tpu.memory_space<vmem>>, vector<2x256xf32>
    tpu.vector_store %arg7[%c0_8, %c0_9], %10 {strides = array<i32>} : memref<2x256xf32, #tpu.memory_space<vmem>>, vector<2x256xf32>,
    %c1_i32 = arith.constant 1 : i32
    %12 = arith.cmpi eq, %arg0, %c1_i32 : i32
    %13 = arith.extui %12 : i1 to i32
    %c0_i32_10 = arith.constant 0 : i32
    %14 = arith.cmpi ne, %13, %c0_i32_10 : i32
    scf.if %14 {
      %c0_11 = arith.constant 0 : index
      %c0_12 = arith.constant 0 : index
      %15 = vector.load %arg7[%c0_11, %c0_12] : memref<2x256xf32, #tpu.memory_space<vmem>>, vector<2x256xf32>
      %c0_13 = arith.constant 0 : index
      %c0_14 = arith.constant 0 : index
      %16 = vector.load %arg3[%c0_13, %c0_14] : memref<1x256xf32, #tpu.memory_space<vmem>>, vector<1x256xf32>
      %17 = vector.broadcast %16 : vector<1x256xf32> to vector<2x256xf32>
      %18 = arith.addf %15, %17 : vector<2x256xf32>
      %cst_15 = arith.constant 0.000000e+00 : f32
      %19 = vector.broadcast %cst_15 : f32 to vector<2x256xf32>
      %20 = arith.maximumf %18, %19 : vector<2x256xf32>
      %21 = arith.truncf %20 : vector<2x256xf32> to vector<2x256xbf16>
      %c0_16 = arith.constant 0 : index
      %c0_17 = arith.constant 0 : index
      %22 = vector.load %arg4[%c0_16, %c0_17] : memref<256x5xbf16, #tpu.memory_space<vmem>>, vector<256x5xbf16>
      %cst_18 = arith.constant dense<0.000000e+00> : vector<2x5xf32>
      %23 = tpu.matmul %21, %22, %cst_18 {dimension_numbers = #tpu.dot_dimension_numbers<[1], [0], [0], [1], [0, 0, 1, 1], [], []>} : vector<2x256xbf16>, vector<256x5xbf16>, vector<2x5xf32> -> vector<2x5xf32>
      %c0_19 = arith.constant 0 : index
      %c0_20 = arith.constant 0 : index
      %24 = vector.load %arg5[%c0_19, %c0_20] : memref<1x5xf32, #tpu.memory_space<vmem>>, vector<1x5xf32>
      %25 = vector.broadcast %24 : vector<1x5xf32> to vector<2x5xf32>
      %26 = arith.addf %23, %25 : vector<2x5xf32>
      %27 = arith.negf %26 : vector<2x5xf32>
      %28 = math.exp %27 : vector<2x5xf32>
      %cst_21 = arith.constant 1.000000e+00 : f32
      %29 = vector.broadcast %cst_21 : f32 to vector<2x5xf32>
      %30 = arith.addf %29, %28 : vector<2x5xf32>
      %31 = arith.divf %29, %30 : vector<2x5xf32>
      %c0_22 = arith.constant 0 : index
      %c0_23 = arith.constant 0 : index
      %32 = vector.load %arg6[%c0_22, %c0_23] : memref<2x5xf32, #tpu.memory_space<vmem>>, vector<2x5xf32>
      tpu.vector_store %arg6[%c0_22, %c0_23], %31 {strides = array<i32>} : memref<2x5xf32, #tpu.memory_space<vmem>>, vector<2x5xf32>,
    } else {
    }
    return
  }
  func.func @transform_0(%arg0: i32) -> (i32, i32, i32) {
    %c0_i32 = arith.constant 0 : i32
    %c0_i32_0 = arith.constant 0 : i32
    %c0_i32_1 = arith.constant 0 : i32
    return %arg0, %c0_i32, %c0_i32_0 : i32, i32, i32
  }
  func.func @transform_1(%arg0: i32) -> (i32, i32, i32) {
    %c0_i32 = arith.constant 0 : i32
    %c0_i32_0 = arith.constant 0 : i32
    %c0_i32_1 = arith.constant 0 : i32
    return %arg0, %c0_i32, %c0_i32_0 : i32, i32, i32
  }
  func.func @transform_2(%arg0: i32) -> (i32, i32) {
    %c0_i32 = arith.constant 0 : i32
    %c0_i32_0 = arith.constant 0 : i32
    %c0_i32_1 = arith.constant 0 : i32
    return %c0_i32, %c0_i32_0 : i32, i32
  }
  func.func @transform_3(%arg0: i32) -> (i32, i32) {
    %c0_i32 = arith.constant 0 : i32
    %c0_i32_0 = arith.constant 0 : i32
    %c0_i32_1 = arith.constant 0 : i32
    return %c0_i32, %c0_i32_0 : i32, i32
  }
  func.func @transform_4(%arg0: i32) -> (i32, i32) {
    %c0_i32 = arith.constant 0 : i32
    %c0_i32_0 = arith.constant 0 : i32
    %c0_i32_1 = arith.constant 0 : i32
    return %c0_i32, %c0_i32_0 : i32, i32
  }
  func.func @transform_5(%arg0: i32) -> (i32, i32) {
    %c0_i32 = arith.constant 0 : i32
    %c0_i32_0 = arith.constant 0 : i32
    %c0_i32_1 = arith.constant 0 : i32
    return %c0_i32, %c0_i32_0 : i32, i32
  }
}

</mosaic_0001>

<bundles_post_ra>
// kernel: clip_class_forward.3
= control target key start
LH: loop header
LB: loop body
LE: loop exit
PB: predicated region body
PF: predicated region fallthrough
CT: control target
= control target key end

     0   :  { %10 = vsyncpa [#allocation4], 0  ;;  %s1351_s18 = smov 0   ;;  %s1532_s0 = inlined_call_operand.vmem [shape: f32[2,2,512], index: 0, kind: input, shape index: {}]   ;;  %s1533_s1 = inlined_call_operand.vmem [shape: bf16[2,512,256], index: 1, kind: input, shape index: {}]   ;;  %s1534_s2 = inlined_call_operand.vmem [shape: f32[1,256], index: 2, kind: input, shape index: {}]   ;;  %s1535_s3 = inlined_call_operand.vmem [shape: bf16[256,5], index: 3, kind: input, shape index: {}]   ;;  %s1536_s4 = inlined_call_operand.vmem [shape: f32[1,5], index: 4, kind: input, shape index: {}]   ;;  %s1537_s5 = inlined_call_operand.hbm [shape: f32[2,5], index: 5, kind: output, shape index: {}]  }
   0x1 LB: > { %s1357_s19 = sadd.s32 4294967295, %s1316_s18   ;;  %p1027_p0 = scmp.ge.s32.totalorder %s1316_s18, 1  ;;  %s1316_s18 = sphi %s1351_s18, %s16_s18  }
   0x2   : > { %p193_p1 = scmp.lt.s32.totalorder %s1316_s18, 3 }
   0x4   : > { %p194_p2 = pnand %p1027_p0, %p193_p1 }
   0x5   : > { %p221_p3 = scmp.lt.s32.totalorder (!%p194_p2), %s1357_s19, 1  ;;  %p1032_p4 = scmp.ne.s32.totalorder (!%p194_p2), %s1357_s19, 0 }
   0x6   : > { %197 = sbr.rel (%p194_p2) target bundleno = 596 (0x254), region = 40 }
   0xd   : > { %s222_s20 = scalar_select %p221_p3, %s1357_s19, 1 }
   0xe   : > { %235 = sbr.rel (%p1032_p4) target bundleno = 21 (0x15), region = 44  ;;  %v1318_v0 = vmov (!%p1032_p4), 0.0  }
   0xf   : > { %s1120_s21 = sshll.u32 %s222_s20, 3  ;;  %s1121_s22 = sshll.u32 %s222_s20, 9  ;;  %236 = vst [vmem:[#allocation2] sm:$0xf] (!%p1032_p4), %v1318_v0 }
  0x10   : > { %s1366_s25 = scalar_lea.vmem %s1532_s0, %s1120_s21  ;;  %s1371_s28 = scalar_lea.vmem %s1533_s1, %s1121_s22 }
  0x15 PF: > { %v1163_v1 = vld [vmem:[%s1371_s28 + $0x4] ss:$8 sps:$4 sm:$0xff]   ;;  %v1167_v3 = vld [vmem:[%s1371_s28] ss:$8 sps:$4 sm:$0xff]   ;;  %v1169_v5 = vld [vmem:[%s1371_s28 + $0x14] ss:$8 sps:$4 sm:$0xff]   ;;  %v244_v39 = vlaneseq }
  0x16   : > { %v1165_v2 = vld [vmem:[%s1371_s28 + $0x104] ss:$8 sps:$4 sm:$0xff]   ;;  %649 = vmatprep.subr.bf16.mxu1 %v1163_v1  ;;  %v1168_v4 = vld [vmem:[%s1371_s28 + $0x100] ss:$8 sps:$4 sm:$0xff]   ;;  %v1171_v6 = vld [vmem:[%s1371_s28 + $0x114] ss:$8 sps:$4 sm:$0xff]  }
  0x17   : > { %690 = vmatprep.subr.bf16.mxu0 %v1165_v2  ;;  %650 = vmatpush1.bf16.msra.mxu1 %v1167_v3  ;;  %v1173_v7 = vld [vmem:[%s1371_s28 + $0x10] ss:$8 sps:$4 sm:$0xff]   ;;  %v1175_v9 = vld [vmem:[%s1371_s28 + $0x24] ss:$8 sps:$4 sm:$0xff]   ;;  %v1179_v11 = vld [vmem:[%s1371_s28 + $0x20] ss:$8 sps:$4 sm:$0xff]  }
  0x18   : > { %691 = vmatpush1.bf16.msra.mxu0 %v1168_v4  ;;  %651 = vmatprep.subr.bf16.mxu1 %v1169_v5  ;;  %v1174_v8 = vld [vmem:[%s1371_s28 + $0x110] ss:$8 sps:$4 sm:$0xff]   ;;  %v1177_v10 = vld [vmem:[%s1371_s28 + $0x124] ss:$8 sps:$4 sm:$0xff]   ;;  %v1180_v12 = vld [vmem:[%s1371_s28 + $0x120] ss:$8 sps:$4 sm:$0xff]  }
  0x19   : > { %692 = vmatprep.subr.bf16.mxu0 %v1171_v6  ;;  %v1181_v13 = vld [vmem:[%s1371_s28 + $0x34] ss:$8 sps:$4 sm:$0xff]   ;;  %v1185_v15 = vld [vmem:[%s1371_s28 + $0x30] ss:$8 sps:$4 sm:$0xff]   ;;  %v1187_v17 = vld [vmem:[%s1371_s28 + $0x44] ss:$8 sps:$4 sm:$0xff]  }
  0x1a   : > { %v1183_v14 = vld [vmem:[%s1371_s28 + $0x134] ss:$8 sps:$4 sm:$0xff]   ;;  %v1186_v16 = vld [vmem:[%s1371_s28 + $0x130] ss:$8 sps:$4 sm:$0xff]   ;;  %v1189_v18 = vld [vmem:[%s1371_s28 + $0x144] ss:$8 sps:$4 sm:$0xff]  }
  0x1b   : > { %652 = vmatpush1.bf16.msra.mxu1 %v1173_v7  ;;  %v1191_v19 = vld [vmem:[%s1371_s28 + $0x40] ss:$8 sps:$4 sm:$0xff]   ;;  %v1193_v21 = vld [vmem:[%s1371_s28 + $0x54] ss:$8 sps:$4 sm:$0xff]   ;;  %v1197_v23 = vld [vmem:[%s1371_s28 + $0x50] ss:$8 sps:$4 sm:$0xff]  }
  0x1c   : > { %693 = vmatpush1.bf16.msra.mxu0 %v1174_v8  ;;  %653 = vmatprep.subr.bf16.mxu1 %v1175_v9  ;;  %v1192_v20 = vld [vmem:[%s1371_s28 + $0x140] ss:$8 sps:$4 sm:$0xff]   ;;  %v1195_v22 = vld [vmem:[%s1371_s28 + $0x154] ss:$8 sps:$4 sm:$0xff]   ;;  %v1198_v24 = vld [vmem:[%s1371_s28 + $0x150] ss:$8 sps:$4 sm:$0xff]  }
  0x1d   : > { %694 = vmatprep.subr.bf16.mxu0 %v1177_v10  ;;  %v1199_v25 = vld [vmem:[%s1371_s28 + $0x64] ss:$8 sps:$4 sm:$0xff]   ;;  %v1203_v27 = vld [vmem:[%s1371_s28 + $0x60] ss:$8 sps:$4 sm:$0xff]   ;;  %v1205_v29 = vld [vmem:[%s1371_s28 + $0x74] ss:$8 sps:$4 sm:$0xff]  }
  0x1e   : > { %v1201_v26 = vld [vmem:[%s1371_s28 + $0x164] ss:$8 sps:$4 sm:$0xff]   ;;  %v1204_v28 = vld [vmem:[%s1371_s28 + $0x160] ss:$8 sps:$4 sm:$0xff]   ;;  %v1207_v30 = vld [vmem:[%s1371_s28 + $0x174] ss:$8 sps:$4 sm:$0xff]  }
  0x1f   : > { %654 = vmatpush1.bf16.msra.mxu1 %v1179_v11  ;;  %v1209_v31 = vld [vmem:[%s1371_s28 + $0x70] ss:$8 sps:$4 sm:$0xff]   ;;  %v1211_v33 = vld [vmem:[%s1371_s28 + $0x84] ss:$8 sps:$4 sm:$0xff]   ;;  %v1215_v35 = vld [vmem:[%s1371_s28 + $0x80] ss:$8 sps:$4 sm:$0xff]  }
  0x20   : > { %695 = vmatpush1.bf16.msra.mxu0 %v1180_v12  ;;  %655 = vmatprep.subr.bf16.mxu1 %v1181_v13  ;;  %v1210_v32 = vld [vmem:[%s1371_s28 + $0x170] ss:$8 sps:$4 sm:$0xff]   ;;  %v1213_v34 = vld [vmem:[%s1371_s28 + $0x184] ss:$8 sps:$4 sm:$0xff]   ;;  %v1216_v36 = vld [vmem:[%s1371_s28 + $0x180] ss:$8 sps:$4 sm:$0xff]  }
  0x21   : > { %696 = vmatprep.subr.bf16.mxu0 %v1183_v14  ;;  %v1319_v37 = vmov 1983009808   ;;  %v1217_v40 = vld [vmem:[%s1371_s28 + $0x94] ss:$8 sps:$4 sm:$0xff]   ;;  %v1221_v42 = vld [vmem:[%s1371_s28 + $0x90] ss:$8 sps:$4 sm:$0xff]  }
  0x22   : > { %v242_v38 = vunpack.c.l.s4 %v1319_v37  ;;  %v1219_v41 = vld [vmem:[%s1371_s28 + $0x194] ss:$8 sps:$4 sm:$0xff]   ;;  %v1413_v44 = vshrl.u32 %v244_v39, 7  ;;  %v1222_v45 = vld [vmem:[%s1371_s28 + $0x190] ss:$8 sps:$4 sm:$0xff]   ;;  %v238_v53 = vld [vmem:[%s1366_s25] sm:$0xff] }
  0x23   : > { %656 = vmatpush1.bf16.msra.mxu1 %v1185_v15  ;;  %v1223_v46 = vld [vmem:[%s1371_s28 + $0xa4] ss:$8 sps:$4 sm:$0xff]   ;;  %v1227_v48 = vld [vmem:[%s1371_s28 + $0xa0] ss:$8 sps:$4 sm:$0xff]   ;;  %v1229_v51 = vld [vmem:[%s1371_s28 + $0xb4] ss:$8 sps:$4 sm:$0xff]   ;;  %v240_v55 = vcombine.high %v238_v53, %v238_v53 }
  0x24   : > { %697 = vmatpush1.bf16.msra.mxu0 %v1186_v16  ;;  %657 = vmatprep.subr.bf16.mxu1 %v1187_v17  ;;  %v243_v43 = vunpack.c.0.s8 %v242_v38  ;;  %v1225_v47 = vld [vmem:[%s1371_s28 + $0x1a4] ss:$8 sps:$4 sm:$0xff]   ;;  %v1228_v49 = vld [vmem:[%s1371_s28 + $0x1a0] ss:$8 sps:$4 sm:$0xff]   ;;  %v1231_v52 = vld [vmem:[%s1371_s28 + $0x1b4] ss:$8 sps:$4 sm:$0xff]  }
  0x25   : > { %698 = vmatprep.subr.bf16.mxu0 %v1189_v18  ;;  %v1233_v56 = vld [vmem:[%s1371_s28 + $0xb0] ss:$8 sps:$4 sm:$0xff]   ;;  %v1235_v58 = vld [vmem:[%s1371_s28 + $0xc4] ss:$8 sps:$4 sm:$0xff]   ;;  %v1239_v0 = vld [vmem:[%s1371_s28 + $0xc0] ss:$8 sps:$4 sm:$0xff]  }
  0x26   : > { %v1421_v50 = vsub.s32 %v243_v43, %v1413_v44  ;;  %v1234_v57 = vld [vmem:[%s1371_s28 + $0x1b0] ss:$8 sps:$4 sm:$0xff]   ;;  %v1237_v59 = vld [vmem:[%s1371_s28 + $0x1c4] ss:$8 sps:$4 sm:$0xff]   ;;  %v1240_v1 = vld [vmem:[%s1371_s28 + $0x1c0] ss:$8 sps:$4 sm:$0xff]  }
  0x27   : > { %658 = vmatpush1.bf16.msra.mxu1 %v1191_v19  ;;  %v1241_v2 = vld [vmem:[%s1371_s28 + $0xd4] ss:$8 sps:$4 sm:$0xff]   ;;  %v1245_v5 = vld [vmem:[%s1371_s28 + $0xd0] ss:$8 sps:$4 sm:$0xff]   ;;  %v1247_v7 = vld [vmem:[%s1371_s28 + $0xe4] ss:$8 sps:$4 sm:$0xff]  }
  0x28   : > { %699 = vmatpush1.bf16.msra.mxu0 %v1192_v20  ;;  %659 = vmatprep.subr.bf16.mxu1 %v1193_v21  ;;  %v247_v54 = vrot.slane %v238_v53, %v1421_v50  ;;  %v254_v61 = vrot.slane %v240_v55, %v1421_v50  ;;  %v1243_v3 = vld [vmem:[%s1371_s28 + $0x1d4] ss:$8 sps:$4 sm:$0xff]   ;;  %v1246_v6 = vld [vmem:[%s1371_s28 + $0x1d0] ss:$8 sps:$4 sm:$0xff]   ;;  %v1249_v8 = vld [vmem:[%s1371_s28 + $0x1e4] ss:$8 sps:$4 sm:$0xff]  }
  0x29   : > { %700 = vmatprep.subr.bf16.mxu0 %v1195_v22  ;;  %v1251_v9 = vld [vmem:[%s1371_s28 + $0xe0] ss:$8 sps:$4 sm:$0xff]   ;;  %v1253_v11 = vld [vmem:[%s1371_s28 + $0xf4] ss:$8 sps:$4 sm:$0xff]   ;;  %v1257_v13 = vld [vmem:[%s1371_s28 + $0xf0] ss:$8 sps:$4 sm:$0xff]  }
  0x2a   : > { %v255_v60 = vcombine.high %v247_v54, %v247_v54  ;;  %v256_v63 = vcombine.high %v254_v61, %v254_v61  ;;  %v1252_v10 = vld [vmem:[%s1371_s28 + $0x1e0] ss:$8 sps:$4 sm:$0xff]   ;;  %v1255_v12 = vld [vmem:[%s1371_s28 + $0x1f4] ss:$8 sps:$4 sm:$0xff]   ;;  %v1258_v14 = vld [vmem:[%s1371_s28 + $0x1f0] ss:$8 sps:$4 sm:$0xff]   ;;  %v261_v15 = vpack.c.bf16 %v247_v54, %v247_v54  ;;  %v263_v16 = vpack.c.bf16 %v254_v61, %v254_v61 }
  0x2b   : > { %660 = vmatpush1.bf16.msra.mxu1 %v1197_v23  ;;  %p1097_p5 = scmp.ne.s32.totalorder %s1357_s19, 1 }
  0x2c   : > { %701 = vmatpush1.bf16.msra.mxu0 %v1198_v24  ;;  %661 = vmatprep.subr.bf16.mxu1 %v1199_v25  ;;  %v262_v62 = vpack.c.bf16 %v255_v60, %v255_v60  ;;  %v264_v4 = vpack.c.bf16 %v256_v63, %v256_v63  ;;  %v1266_v37 = vld [vmem:[%s1535_s3 + $0x58] sm:$0xff] (!%p1097_p5)   ;;  %v1268_v39 = vld [vmem:[%s1535_s3 + $0x60] sm:$0xff] (!%p1097_p5)   ;;  %v1270_v43 = vld [vmem:[%s1535_s3 + $0x68] sm:$0xff] (!%p1097_p5)   ;;  %vm964_vm0 = vcmask (!%p1097_p5), 33792  }
  0x2d   : > { %702 = vmatprep.subr.bf16.mxu0 %v1201_v26  ;;  %v1267_v38 = vld [vmem:[%s1535_s3 + $0x18] sm:$0xff] (!%p1097_p5)   ;;  %v1273_v53 = vld [vmem:[%s1535_s3 + $0x30] sm:$0xff] (!%p1097_p5)   ;;  %v1098_v63 = vld [vmem:[%s1536_s4] ss:$0 sm:$0xff] (!%p1097_p5) }
  0x2e   : > { %681 = vmatprep.mubr.bf16.mxu1 %v262_v62  ;;  %722 = vmatprep.mubr.bf16.mxu0 %v264_v4  ;;  %v1274_v55 = vld [vmem:[%s1535_s3 + $0x78] sm:$0xff] (!%p1097_p5)  }
  0x2f   : > { %662 = vmatpush1.bf16.msra.mxu1 %v1203_v27 }
  0x30   : > { %703 = vmatpush1.bf16.msra.mxu0 %v1204_v28  ;;  %663 = vmatprep.subr.bf16.mxu1 %v1205_v29  ;;  %v237_v28 = vld [vmem:[#allocation2] sm:$0xf] }
  0x31   : > { %704 = vmatprep.subr.bf16.mxu0 %v1207_v30 }
  0x33   : > { %664 = vmatpush1.bf16.msra.mxu1 %v1209_v31  ;;  %v1260_v31 = vld [vmem:[%s1535_s3 + $0x40] sm:$0xff] (!%p1097_p5)  }
  0x34   : > { %705 = vmatpush1.bf16.msra.mxu0 %v1210_v32  ;;  %665 = vmatprep.subr.bf16.mxu1 %v1211_v33  ;;  %v1261_v32 = vld [vmem:[%s1535_s3] sm:$0xff] (!%p1097_p5)   ;;  %v1262_v33 = vld [vmem:[%s1535_s3 + $0x48] sm:$0xff] (!%p1097_p5)  }
  0x35   : > { %706 = vmatprep.subr.bf16.mxu0 %v1213_v34  ;;  %v1263_v34 = vld [vmem:[%s1535_s3 + $0x8] sm:$0xff] (!%p1097_p5)  }
  0x37   : > { %666 = vmatpush1.bf16.msra.mxu1 %v1215_v35  ;;  %v1264_v35 = vld [vmem:[%s1535_s3 + $0x50] sm:$0xff] (!%p1097_p5)  }
  0x38   : > { %707 = vmatpush1.bf16.msra.mxu0 %v1216_v36  ;;  %667 = vmatprep.subr.bf16.mxu1 %v1217_v40  ;;  %v1265_v36 = vld [vmem:[%s1535_s3 + $0x10] sm:$0xff] (!%p1097_p5)   ;;  %v753_v40 = vsub.s32 (!%p1097_p5), 0, %v1413_v44 }
  0x39   : > { %708 = vmatprep.subr.bf16.mxu0 %v1219_v41  ;;  %v757_v41 = vsub.s32 (!%p1097_p5), 1, %v1413_v44  ;;  %v1271_v44 = vld [vmem:[%s1535_s3 + $0x28] sm:$0xff] (!%p1097_p5)  }
  0x3b   : > { %668 = vmatpush1.bf16.msra.mxu1 %v1221_v42  ;;  %v1269_v42 = vld [vmem:[%s1535_s3 + $0x20] sm:$0xff] (!%p1097_p5)  }
  0x3c   : > { %709 = vmatpush1.bf16.msra.mxu0 %v1222_v45  ;;  %669 = vmatprep.subr.bf16.mxu1 %v1223_v46  ;;  %v749_v45 = vld [vmem:[%s1534_s2] sm:$0x3] (!%p1097_p5) }
  0x3d   : > { %710 = vmatprep.subr.bf16.mxu0 %v1225_v47  ;;  %v754_v46 = vrot.slane (!%p1097_p5), %v749_v45, %v753_v40  ;;  %v758_v47 = vrot.slane (!%p1097_p5), %v749_v45, %v757_v41 }
  0x3f   : > { %670 = vmatpush1.bf16.msra.mxu1 %v1227_v48  ;;  %v759_v48 = vcombine.low (!%p1097_p5), %v754_v46, %v758_v47 }
  0x40   : > { %711 = vmatpush1.bf16.msra.mxu0 %v1228_v49  ;;  %671 = vmatprep.subr.bf16.mxu1 %v1229_v51  ;;  %v1272_v49 = vld [vmem:[%s1535_s3 + $0x70] sm:$0xff] (!%p1097_p5)  }
  0x41   : > { %712 = vmatprep.subr.bf16.mxu0 %v1231_v52  ;;  %v766_v52 = vrot.slane (!%p1097_p5), %v759_v48, %v1421_v50 }
  0x43   : > { %672 = vmatpush1.bf16.msra.mxu1 %v1233_v56 }
  0x44   : > { %713 = vmatpush1.bf16.msra.mxu0 %v1234_v57  ;;  %673 = vmatprep.subr.bf16.mxu1 %v1235_v58  ;;  %v1275_v57 = vld [vmem:[%s1535_s3 + $0x38] sm:$0xff] (!%p1097_p5)  }
  0x45   : > { %714 = vmatprep.subr.bf16.mxu0 %v1237_v59 }
  0x47   : > { %674 = vmatpush1.bf16.msra.mxu1 %v1239_v0 }
  0x48   : > { %715 = vmatpush1.bf16.msra.mxu0 %v1240_v1  ;;  %675 = vmatprep.subr.bf16.mxu1 %v1241_v2 }
  0x49   : > { %716 = vmatprep.subr.bf16.mxu0 %v1243_v3 }
  0x4b   : > { %676 = vmatpush1.bf16.msra.mxu1 %v1245_v5 }
  0x4c   : > { %717 = vmatpush1.bf16.msra.mxu0 %v1246_v6  ;;  %677 = vmatprep.subr.bf16.mxu1 %v1247_v7 }
  0x4d   : > { %718 = vmatprep.subr.bf16.mxu0 %v1249_v8 }
  0x4f   : > { %678 = vmatpush1.bf16.msra.mxu1 %v1251_v9 }
  0x50   : > { %719 = vmatpush1.bf16.msra.mxu0 %v1252_v10  ;;  %679 = vmatprep.subr.bf16.mxu1 %v1253_v11 }
  0x51   : > { %720 = vmatprep.subr.bf16.mxu0 %v1255_v12 }
  0x53   : > { %680 = vmatpush1.bf16.msra.mxu1 %v1257_v13 }
  0x54   : > { %721 = vmatpush1.bf16.msra.mxu0 %v1258_v14 }
  0x55   : > { %1122 = vmatprep.subr.bf16.mxu0 (!%p1097_p5), %v1260_v31 }
  0x56   : > { %682 = vmatmul.mubr.bf16.vlgmr.msra.gmra.mrb[0].mxu1 %v261_v15 }
  0x57   : > { %723 = vmatmul.mubr.bf16.vlgmr.msra.gmra.mrb[0].mxu0 %v263_v16 }
  0x58   : > { %1123 = vmatpush3.bf16.msra.mxu0 (!%p1097_p5), %v1261_v32 }
  0x59   : > { %1124 = vmatprep.subr.bf16.mxu0 (!%p1097_p5), %v1262_v33 }
  0x5c   : > { %1125 = vmatpush3.bf16.msra.mxu0 (!%p1097_p5), %v1263_v34 }
  0x5d   : > { %1126 = vmatprep.subr.bf16.mxu0 (!%p1097_p5), %v1264_v35 }
  0x60   : > { %1127 = vmatpush3.bf16.msra.mxu0 (!%p1097_p5), %v1265_v36 }
  0x61   : > { %1128 = vmatprep.subr.bf16.mxu0 (!%p1097_p5), %v1266_v37 }
  0x64   : > { %1129 = vmatpush3.bf16.msra.mxu0 (!%p1097_p5), %v1267_v38 }
  0x65   : > { %1130 = vmatprep.subr.bf16.mxu0 (!%p1097_p5), %v1268_v39 }
  0x68   : > { %1131 = vmatpush3.bf16.msra.mxu0 (!%p1097_p5), %v1269_v42 }
  0x69   : > { %1132 = vmatprep.subr.bf16.mxu0 (!%p1097_p5), %v1270_v43 }
  0x6c   : > { %1133 = vmatpush3.bf16.msra.mxu0 (!%p1097_p5), %v1271_v44 }
  0x6d   : > { %1134 = vmatprep.subr.bf16.mxu0 (!%p1097_p5), %v1272_v49 }
  0x70   : > { %1135 = vmatpush3.bf16.msra.mxu0 (!%p1097_p5), %v1273_v53 }
  0x71   : > { %1136 = vmatprep.subr.bf16.mxu0 (!%p1097_p5), %v1274_v55 }
  0x74   : > { %1137 = vmatpush3.bf16.msra.mxu0 (!%p1097_p5), %v1275_v57 }
 0x129   : > { %v683_v17 = vpop.f32.mrb[0].mxu1 }
 0x12a   : > { %v724_v18 = vpop.f32.mrb[0].mxu0  ;;  %v685_v20 = vpop.f32.mrb[1].mxu1 }
 0x12b   : > { %v725_v19 = vadd.f32 %v724_v18, %v683_v17  ;;  %v726_v21 = vpop.f32.mrb[1].mxu0  ;;  %v687_v23 = vpop.f32.mrb[2].mxu1 }
 0x12c   : > { %v727_v22 = vadd.f32 %v726_v21, %v685_v20  ;;  %v728_v24 = vpop.f32.mrb[2].mxu0  ;;  %v688_v25 = vpop.f32.mrb[3].mxu1 }
 0x12d   : > { %v729_v26 = vpop.f32.mrb[3].mxu0 }
 0x12e   : > { %v733_v27 = vcombine.low %v725_v19, %v727_v22  ;;  %747 = sbr.rel (%p1097_p5) target bundleno = 571 (0x23b), region = 48 }
 0x130   : > { %v740_v29 = vrot.slane %v733_v27, %v1421_v50 }
 0x132   : > { %v742_v30 = vadd.f32 %v740_v29, %v237_v28 }
 0x134   : > { %743 = vst [vmem:[#allocation2] sm:$0xf] %v742_v30 }
 0x13b   : > { %v748_v51 = vld [vmem:[#allocation2] sm:$0xf] }
 0x13c   : > { %v768_v54 = vadd.f32 %v766_v52, %v748_v51 }
 0x13e   : > { %v769_v56 = vmax.f32 %v768_v54, 0.0 }
 0x140   : > { %v777_v58 = vrot.slane %v769_v56, %v1421_v50 }
 0x142   : > { %v778_v59 = vcombine.high %v777_v58, %v777_v58  ;;  %v781_v60 = vpack.c.bf16 %v777_v58, %v777_v58 }
 0x144   : > { %v782_v61 = vpack.c.bf16 %v778_v59, %v778_v59 }
 0x146   : > { %950 = vmatprep.mubr.bf16.mxu0 %v782_v61 }
 0x147   : > { %951 = vmatmul.mubr.bf16.vlgmr.msra.gmra.mrb[0].mxu0 %v781_v60 }
 0x21a   : > { %v1138_v62 = vpop.f32.mrb[0].mxu0 }
 0x21b   : > { %v1139_v0 = vpop.f32.mrb[1].mxu0 }
 0x21c   : > { %v1140_v1 = vadd.f32 %v1139_v0, %v1138_v62  ;;  %v1141_v2 = vpop.f32.mrb[2].mxu0 }
 0x21d   : > { %v1142_v3 = vpop.f32.mrb[3].mxu0 }
 0x21e   : > { %v953_v4 = vadd.f32 %v1140_v1, %v1098_v63 }
 0x220   : > { %v1115_v5 = vmul.f32 -1.442695, %v953_v4 }
 0x222   : > { %1276 = vpow2.f32 %v1115_v5 }
 0x22c   : > { %v1277_v50 = vpop.eup %1276 }
 0x22d   : > { %v961_v6 = vadd.f32 1.0, %v1277_v50 }
 0x22f   : > { %1278 = vrcp.f32 %v961_v6 }
 0x239   : > { %v1279_v7 = vpop.eup %1278 }
 0x23a   : > { %965 = vst.msk [vmem:[#allocation3] sm:$0x3] %vm964_vm0, %v1279_v7 }
 0x23b PF: > { %p1150_p6 = scmp.eq.s32.totalorder %s1357_s19, 1  ;;  %s1320_s17 = smov [#allocation3]  }
 0x23c   : > { %s973_s20 = sshll.u32 %s1320_s17, 4  ;;  %s974_s20 = int_to_ptr.vmem [resolvable:$true] %s973_s20 }
 0x23d   : > { %s1280_s21 = scalar_lea.vmem %s974_s20, 32  ;;  %p1287_p10 = scmp.lt.s32.totalorder %s974_s20, %s974_s20 }
 0x23e   : > { %p1281_p7 = scmp.ne.s32.totalorder %s974_s20, %s1280_s21  ;;  %p1288_p11 = scmp.lt.s32.totalorder %s1280_s21, %s1280_s21 }
 0x240   : > { %p1282_p8 = pnand %p1281_p7, %p1150_p6  ;;  %p1289_p12 = por %p1288_p11, %p1287_p10 }
 0x242   : > { %p1283_p9 = pneg %p1282_p8 }
 0x244   : > { %p1290_p13 = pnand %p1289_p12, %p1283_p9 }
 0x246   : > { %1293 = shalt.err (!%p1290_p13)
}
 0x247   : > { %s1294_s24 = scalar_lea.hbm %s1537_s5, 32 }
 0x248   : > { %p1295_p0 = scmp.ne.s32.totalorder %s1537_s5, %s1294_s24  ;;  %p1300_p3 = scmp.lt.u32.totalorder %s1294_s24, %s1537_s5 }
 0x24a   : > { %p1296_p1 = pnand %p1295_p0, %p1150_p6 }
 0x24c   : > { %p1297_p2 = pneg %p1296_p1 }
 0x24e   : > { %p1302_p4 = pnand %p1300_p3, %p1297_p2 }
 0x250   : > { %1305 = shalt.err (!%p1302_p4)
}
 0x251   : > { %1147 = dma.vmem_to_hbm [thread:$0]  (%p1150_p6), %s974_s20, 32, %s1537_s5, [#allocation4]  }
 0x252   : > { %1311 = dma.done.wait (%p1150_p6), [#allocation4], 32  }
 0x253   : > { %1313 = vsyncadd (%p1150_p6), [#allocation4], 4294967264 }
 0x254 PF: > { %s16_s18 = sadd.s32 1, %s1316_s18  }
 0x255   : > { %p13_p5 = scmp.ge.s32.totalorder %s16_s18, 4  }
 0x257   :  { %15 = sbr.rel (!%p13_p5) target bundleno = 1 (0x1), region = 78 }
 0x25e   :  { %986 = vsyncpa [#allocation4], 1 }
 0x25f   :  { %988 = vsyncpa [#allocation4 + $0x1], 1 }

// kernel: clip_class_forward.2
= control target key start
LH: loop header
LB: loop body
LE: loop exit
PB: predicated region body
PF: predicated region fallthrough
CT: control target
= control target key end

     0   :  { %s6772_s0 = inlined_call_operand.vmem [shape: s32[2], index: 0, kind: input, shape index: {}]   ;;  %s6773_s2 = inlined_call_operand.vmem [shape: f32[48,64], index: 2, kind: input, shape index: {}]   ;;  %s6774_s3 = inlined_call_operand.vmem [shape: bf16[48,192], index: 3, kind: input, shape index: {}]   ;;  %s6775_s4 = inlined_call_operand.vmem [shape: bf16[192,64], index: 4, kind: input, shape index: {}]   ;;  %s6776_s5 = inlined_call_operand.vmem [shape: f32[24,64], index: 5, kind: input, shape index: {}]   ;;  %s6777_s6 = inlined_call_operand.vmem [shape: f32[1,64], index: 6, kind: input, shape index: {}]   ;;  %s6778_s7 = inlined_call_operand.vmem [shape: f32[1,64], index: 7, kind: input, shape index: {}]   ;;  %s6779_s8 = inlined_call_operand.vmem [shape: f32[4,1,64], index: 8, kind: input, shape index: {}]   ;;  %s6780_s9 = inlined_call_operand.vmem [shape: f32[4,1,64], index: 9, kind: input, shape index: {}]   ;;  %s6781_s10 = inlined_call_operand.vmem [shape: bf16[4,3,64,64], index: 10, kind: input, shape index: {}]   ;;  %s6782_s11 = inlined_call_operand.vmem [shape: f32[4,3,1,64], index: 11, kind: input, shape index: {}]   ;;  %s6783_s12 = inlined_call_operand.vmem [shape: bf16[4,64,64], index: 12, kind: input, shape index: {}]   ;;  %s6784_s13 = inlined_call_operand.vmem [shape: f32[4,1,64], index: 13, kind: input, shape index: {}]   ;;  %s6785_s14 = inlined_call_operand.vmem [shape: f32[4,1,64], index: 14, kind: input, shape index: {}]   ;;  %s6786_s15 = inlined_call_operand.vmem [shape: f32[4,1,64], index: 15, kind: input, shape index: {}]   ;;  %s6787_s16 = inlined_call_operand.vmem [shape: bf16[4,64,256], index: 16, kind: input, shape index: {}]   ;;  %s6788_s17 = inlined_call_operand.vmem [shape: f32[4,1,256], index: 17, kind: input, shape index: {}]   ;;  %s6789_s18 = inlined_call_operand.vmem [shape: bf16[4,256,64], index: 18, kind: input, shape index: {}]   ;;  %s6790_s19 = inlined_call_operand.vmem [shape: f32[4,1,64], index: 19, kind: input, shape index: {}]   ;;  %s6791_s20 = inlined_call_operand.vmem [shape: f32[2,1,64], index: 20, kind: input, shape index: {}]   ;;  %s6792_s21 = inlined_call_operand.vmem [shape: f32[2,1,64], index: 21, kind: input, shape index: {}]   ;;  %s6793_s22 = inlined_call_operand.vmem [shape: bf16[2,64,512], index: 22, kind: input, shape index: {}]   ;;  %s6794_s23 = inlined_call_operand.vmem [shape: f32[2,2,512], index: 23, kind: output, shape index: {}]   ;;  %s6795_s1 = inlined_call_operand.vmem [shape: s32[2], index: 1, kind: input, shape index: {}]  }
   0x1   :  { %6803 = sst [smem:[#allocation12_spill]] %s6772_s0 }
   0x2   :  { %6804 = sst [smem:[#allocation13_spill]] %s6773_s2  ;;  %s6821_s24 = sld [smem:[#allocation12_spill]] }
   0x3   :  { %6805 = sst [smem:[#allocation14_spill]] %s6774_s3  ;;  %s32_s2 = sshll.u32 %s6795_s1, 4  ;;  %s33_s2 = int_to_ptr.vmem [resolvable:$true] %s32_s2 }
   0x4   :  { %6806 = sst [smem:[#allocation15_spill]] %s6775_s4 }
   0x5   :  { %6807 = sst [smem:[#allocation16_spill]] %s6776_s5 }
   0x6   :  { %6808 = sst [smem:[#allocation17_spill]] %s6777_s6 }
   0x7   :  { %6809 = sst [smem:[#allocation18_spill]] %s6778_s7 }
   0x8   :  { %6810 = sst [smem:[#allocation19_spill]] %s6779_s8 }
   0x9   :  { %6811 = sst [smem:[#allocation20_spill]] %s6781_s10 }
   0xa   :  { %6812 = sst [smem:[#allocation21_spill]] %s6782_s11 }
   0xb   :  { %6813 = sst [smem:[#allocation22_spill]] %s6783_s12 }
   0xc   :  { %6814 = sst [smem:[#allocation23_spill]] %s6784_s13 }
   0xd   :  { %6815 = sst [smem:[#allocation24_spill]] %s6787_s16 }
   0xe   :  { %6816 = sst [smem:[#allocation25_spill]] %s6788_s17 }
   0xf   :  { %6817 = sst [smem:[#allocation26_spill]] %s6789_s18  ;;  %s28_s18 = sshll.u32 %s6821_s24, 4  ;;  %s29_s18 = int_to_ptr.vmem [resolvable:$true] %s28_s18 }
  0x10   :  { %6818 = sst [smem:[#allocation27_spill]] %s6791_s20  ;;  %s5430_s26 = scalar_lea.vmem %s29_s18, 16 }
  0x11   :  { %6819 = sst [smem:[#allocation28_spill]] %s6792_s21  ;;  %p5431_p0 = scmp.ne.s32.totalorder %s29_s18, %s5430_s26 }
  0x12   :  { %6820 = sst [smem:[#allocation29_spill]] %s6794_s23  ;;  %p5435_p1 = scmp.lt.s32.totalorder %s29_s18, %s29_s18 }
  0x13   :  { %p5436_p2 = scmp.lt.s32.totalorder %s5430_s26, %s5430_s26 }
  0x15   :  { %p5437_p3 = por %p5436_p2, %p5435_p1 }
  0x17   :  { %p5438_p4 = pnand %p5437_p3, %p5431_p0 }
  0x19   :  { %5441 = shalt.err (!%p5438_p4)  }
  0x1a   :  { %s5496_s3 = smov [#allocation4]   ;;  %s5442_s7 = scalar_lea.vmem %s33_s2, 16 }
  0x1b   :  { %31 = dma.vmem_to_smem %s29_s18, 16, %s5496_s3, [#allocation3] }
  0x1c   :  { %p5443_p5 = scmp.ne.s32.totalorder %s33_s2, %s5442_s7  ;;  %p5447_p6 = scmp.lt.s32.totalorder %s33_s2, %s33_s2 }
  0x1d   :  { %p5448_p7 = scmp.lt.s32.totalorder %s5442_s7, %s5442_s7 }
  0x1f   :  { %p5449_p8 = por %p5448_p7, %p5447_p6 }
  0x21   :  { %p5450_p9 = pnand %p5449_p8, %p5443_p5 }
  0x23   :  { %5453 = shalt.err (!%p5450_p9)  }
  0x24   :  { %s5497_s27 = smov [#allocation5]  }
  0x25   :  { %35 = dma.vmem_to_smem %s33_s2, 16, %s5497_s27, [#allocation3] }
  0x26   :  { %5474 = dma.done.wait [#allocation3], 32 }
  0x27   :  { %5475 = vsyncadd [#allocation3], 4294967264 }
  0x28   :  { %37 = sfence }
  0x29   :  { %s5638_s1 = smov 0   ;;  %s5640_s8 = smov 0  }
  0x2a   :  { %s5642_s28 = smov 0   ;;  %s5644_s29 = smov 0  }
  0x2b   :  { %s5646_s18 = smov 0  }
  0x2c LB: > { %6822 = sst [smem:[#allocation7_spill]] %s5486_s28  ;;  %s52_s4 = sadd.s32 1, %s5486_s28  ;;  %s5494_s18 = sphi %s5646_s18, %s43_s18   ;;  %s5490_s29 = sphi %s5644_s29, %s6869_s29   ;;  %s5486_s28 = sphi %s5642_s28, %s6868_s28   ;;  %s5482_s8 = sphi %s5640_s8, %s6867_s8   ;;  %s5478_s1 = sphi %s5638_s1, %s6866_s1  }
  0x2d   : > { %6823 = sst [smem:[#allocation8_spill]] %s5490_s29  ;;  %s55_s0 = sadd.s32 1, %s5490_s29 }
  0x2e   : > { %6824 = sst [smem:[#allocation9_spill]] %s5494_s18  ;;  %p53_p10 = scmp.ge.s32.totalorder %s52_s4, 2 }
  0x2f   : > { %p4488_p11 = scmp.ge.s32.totalorder %s5494_s18, 1  ;;  %p829_p12 = scmp.lt.s32.totalorder %s5494_s18, 5 }
  0x30   : > { %s6871_s4 = smov (%p53_p10, %s52_s4), 0  ;;  %s6873_s0 = smov (!%p53_p10, %s55_s0), %s5490_s29 }
  0x31   : > { %6825 = sst [smem:[#allocation10_spill]] %s6871_s4  ;;  %p830_p13 = pnand %p4488_p11, %p829_p12 }
  0x32   : > { %p57_p0 = scmp.ge.s32.totalorder %s6873_s0, 2  ;;  %s4489_s5 = sshll.u32 (!%p830_p13), %s5482_s8, 1 }
  0x33   : > { %833 = sbr.rel (%p830_p13) target bundleno = 4622 (0x120e), region = 104  ;;  %p1059_p1 = scmp.lt.s32.totalorder (!%p830_p13), %s5482_s8, 1 }
  0x34   : > { %s6875_s0 = smov (%p57_p0, %s6873_s0), 0  ;;  %s966_s30 = sadd.s32 (!%p830_p13), %s5478_s1, %s4489_s5 }
  0x35   : > { %6826 = sst [smem:[#allocation11_spill]] %s6875_s0  ;;  %p1076_p2 = scmp.eq.s32.totalorder (!%p830_p13), %s5482_s8, 0 }
  0x36   : > { %p967_p3 = scmp.lt.s32.totalorder (!%p830_p13), %s966_s30, 3  ;;  %p1077_p4 = scmp.eq.s32.totalorder (!%p830_p13), %s5478_s1, 0 }
  0x37   : > { %s6830_s12 = sld [smem:[#allocation22_spill]] (!%p830_p13)  ;;  %s6831_s10 = sld [smem:[#allocation20_spill]] (!%p830_p13) }
  0x38   : > { %s6833_s11 = sld [smem:[#allocation21_spill]] (!%p830_p13)  ;;  %s6834_s16 = sld [smem:[#allocation24_spill]] (!%p830_p13) }
  0x39   : > { %s6835_s17 = sld [smem:[#allocation25_spill]] (!%p830_p13)  ;;  %s6836_s20 = sld [smem:[#allocation26_spill]] (!%p830_p13) }
  0x3a   : > { %s5678_s24 = scalar_select %p1059_p1, %s5482_s8, 1 }
  0x3b   : > { %s6877_s30 = smov (!%p967_p3, %s966_s30), 3  ;;  %p1078_p5 = pnand %p1077_p4, %p1076_p2 }
  0x3c   : > { %s5048_s28 = smul.u32 96, %s6877_s30  ;;  %s4693_s18 = sshll.u32 %s6877_s30, 5  ;;  %vm1088_vm0 = vcmask (!%p1078_p5), 523264  }
  0x3d   : > { %s5049_s23 = smul.u32 3, %s6877_s30  ;;  %s5704_s26 = scalar_lea.vmem %s6830_s12, %s4693_s18 }
  0x3e   : > { %s5709_s27 = scalar_lea.vmem %s6831_s10, %s5048_s28  ;;  %s4694_s7 = sshll.u32 %s6877_s30, 6 }
  0x3f   : > { %s5718_s25 = scalar_lea.vmem %s6833_s11, %s5049_s23  ;;  %s5732_s0 = scalar_lea.vmem %s6834_s16, %s4694_s7 }
  0x40   : > { %s4504_s5 = sshll.u32 %s6877_s30, 1  ;;  %s4695_s29 = sshll.u32 %s6877_s30, 7 }
  0x41   : > { %s5738_s23 = scalar_lea.vmem %s6835_s17, %s4504_s5  ;;  %s5744_s18 = scalar_lea.vmem %s6836_s20, %s4695_s29 }
  0x42   : > { %s1056_s28 = scalar_lea.vmem %s6790_s19, %s6877_s30  ;;  %s4696_s11 = sshll.u32 %s5678_s24, 7 }
  0x43   : > { %s4697_s10 = sshll.u32 %s5678_s24, 3  ;;  %s5755_s16 = scalar_lea.vmem %s6793_s22, %s4696_s11 }
  0x44   : > { %s6837_s5 = sld [smem:[#allocation29_spill]]  ;;  %1081 = sbr.rel (%p1078_p5) target bundleno = 79 (0x4f), region = 108 }
  0x45   : > { %s6838_s21 = sld [smem:[#allocation13_spill]] (!%p1078_p5) }
  0x4a   : > { %s5760_s17 = scalar_lea.vmem %s6837_s5, %s4697_s10 }
  0x4b   : > { %v1082_v0 = vld [vmem:[%s6838_s21] sm:$0xff]  ;;  %v1083_v1 = vld [vmem:[%s6838_s21 + $0x8] sm:$0xff]  ;;  %v1084_v2 = vld [vmem:[%s6838_s21 + $0x10] sm:$0xff] }
  0x4c   : > { %1089 = vst.msk [vmem:[#allocation2] sm:$0xff] %vm1088_vm0, %v1082_v0  ;;  %1090 = vst.msk [vmem:[#allocation2 + $0x8] sm:$0xff] %vm1088_vm0, %v1083_v1  ;;  %v1085_v3 = vld [vmem:[%s6838_s21 + $0x18] sm:$0xff]  ;;  %v1086_v4 = vld [vmem:[%s6838_s21 + $0x20] sm:$0xff] }
  0x4d   : > { %1091 = vst.msk [vmem:[#allocation2 + $0x10] sm:$0xff] %vm1088_vm0, %v1084_v2  ;;  %v1087_v5 = vld [vmem:[%s6838_s21 + $0x28] sm:$0xff]  ;;  %1092 = vst.msk [vmem:[#allocation2 + $0x18] sm:$0xff] %vm1088_vm0, %v1085_v3 }
  0x4e   : > { %1093 = vst.msk [vmem:[#allocation2 + $0x20] sm:$0xff] %vm1088_vm0, %v1086_v4  ;;  %1094 = vst.msk [vmem:[#allocation2 + $0x28] sm:$0xff] %vm1088_vm0, %v1087_v5 }
  0x4f PF: > { %p1095_p6 = scmp.ne.s32.totalorder %s5482_s8, 0 }
  0x51   : > { %p1096_p7 = pnand %p1095_p6, %p1077_p4 }
  0x52   : > { %s6839_s20 = sld [smem:[#allocation15_spill]] (!%p1096_p7)  ;;  %v5498_v7 = vmov (!%p1096_p7), 0   ;;  %s6840_s5 = sld [smem:[#allocation14_spill]] (!%p1096_p7)  ;;  %vm1232_vm1 = vcmask (!%p1096_p7), 523264  }
  0x53   : > { %1099 = sbr.rel (%p1096_p7) target bundleno = 676 (0x2a4), region = 112  ;;  %1242 = vmatprep.subr.bf16.mxu0 (!%p1096_p7), %v5498_v7  ;;  %5008 = vmatprep.subr.bf16.mxu1 (!%p1096_p7), %v5498_v7  ;;  %s6841_s13 = sld [smem:[#allocation16_spill]] (!%p1096_p7) }
  0x54   : > { %s6842_s10 = sld [smem:[#allocation17_spill]] (!%p1096_p7)  ;;  %s6843_s4 = sld [smem:[#allocation18_spill]] (!%p1096_p7) }
  0x58   : > { %v5106_v6 = vld [vmem:[%s6839_s20] sm:$0xff] (!%p1096_p7)   ;;  %v5107_v8 = vld [vmem:[%s6839_s20 + $0x8] sm:$0xff] (!%p1096_p7)   ;;  %v5108_v9 = vld [vmem:[%s6839_s20 + $0x10] sm:$0xff] (!%p1096_p7)  }
  0x59   : > { %1243 = vmatpush1.bf16.msra.mxu0 (!%p1096_p7), %v5106_v6  ;;  %5020 = vmatpush1.bf16.msra.mxu1 (!%p1096_p7), %v5106_v6  ;;  %v5109_v10 = vld [vmem:[%s6839_s20 + $0x18] sm:$0xff] (!%p1096_p7)   ;;  %v5120_v11 = vld [vmem:[%s6840_s5 + $0x4] ss:$8 sps:$4 sm:$0xff] (!%p1096_p7)   ;;  %v5112_v15 = vld [vmem:[%s6839_s20 + $0x30] sm:$0xff] (!%p1096_p7)  }
  0x5a   : > { %1244 = vmatprep.subr.bf16.mxu0 %v5498_v7  ;;  %5009 = vmatprep.subr.bf16.mxu1 %v5498_v7  ;;  %v5110_v12 = vld [vmem:[%s6839_s20 + $0x20] sm:$0xff]   ;;  %v5123_v13 = vld [vmem:[%s6840_s5 + $0x14] ss:$8 sps:$4 sm:$0xff]   ;;  %v5111_v14 = vld [vmem:[%s6839_s20 + $0x28] sm:$0xff]  }
  0x5b   : > { %4531 = vmatprep.mubr.msk.bf16.mxu0 %vm1232_vm1, %v5120_v11  ;;  %4532 = vmatprep.mubr.msk.bf16.mxu1 %vm1232_vm1, %v5123_v13  ;;  %v5113_v16 = vld [vmem:[%s6839_s20 + $0x38] sm:$0xff]   ;;  %v5114_v17 = vld [vmem:[%s6839_s20 + $0x40] sm:$0xff]   ;;  %v5115_v18 = vld [vmem:[%s6839_s20 + $0x48] sm:$0xff]  }
  0x5c   : > { %v5116_v19 = vld [vmem:[%s6839_s20 + $0x50] sm:$0xff]   ;;  %v5117_v20 = vld [vmem:[%s6839_s20 + $0x58] sm:$0xff]   ;;  %v5118_v21 = vld [vmem:[%s6840_s5] ss:$8 sps:$4 sm:$0xff]  }
  0x5d   : > { %1245 = vmatpush1.bf16.msra.mxu0 %v5107_v8  ;;  %5021 = vmatpush1.bf16.msra.mxu1 %v5107_v8  ;;  %v5121_v22 = vld [vmem:[%s6840_s5 + $0x10] ss:$8 sps:$4 sm:$0xff]   ;;  %v5124_v23 = vld [vmem:[%s6840_s5 + $0x24] ss:$8 sps:$4 sm:$0xff]   ;;  %v5126_v24 = vld [vmem:[%s6840_s5 + $0x20] ss:$8 sps:$4 sm:$0xff]  }
  0x5e   : > { %1246 = vmatprep.subr.bf16.mxu0 %v5498_v7  ;;  %5010 = vmatprep.subr.bf16.mxu1 %v5498_v7  ;;  %v1130_v25 = vld [vmem:[%s6841_s13] sm:$0xff]  ;;  %v1132_v26 = vld [vmem:[%s6841_s13 + $0x10] sm:$0xff]  ;;  %v1131_v29 = vld [vmem:[%s6841_s13 + $0x8] sm:$0xff] }
  0x61   : > { %1247 = vmatpush1.bf16.msra.mxu0 %v5108_v9  ;;  %5022 = vmatpush1.bf16.msra.mxu1 %v5108_v9 }
  0x62   : > { %1248 = vmatprep.subr.bf16.mxu0 %v5498_v7  ;;  %5011 = vmatprep.subr.bf16.mxu1 %v5498_v7 }
  0x65   : > { %1249 = vmatpush1.bf16.msra.mxu0 %v5109_v10  ;;  %5023 = vmatpush1.bf16.msra.mxu1 %v5109_v10 }
  0x66   : > { %1250 = vmatprep.subr.bf16.mxu0 %v5498_v7  ;;  %5012 = vmatprep.subr.bf16.mxu1 %v5498_v7 }
  0x69   : > { %1251 = vmatpush1.bf16.msra.mxu0 %v5110_v12  ;;  %5024 = vmatpush1.bf16.msra.mxu1 %v5110_v12 }
  0x6a   : > { %1252 = vmatprep.subr.bf16.mxu0 %v5498_v7  ;;  %5013 = vmatprep.subr.bf16.mxu1 %v5498_v7 }
  0x6d   : > { %1253 = vmatpush1.bf16.msra.mxu0 %v5111_v14  ;;  %5025 = vmatpush1.bf16.msra.mxu1 %v5111_v14 }
  0x6e   : > { %1254 = vmatprep.subr.bf16.mxu0 %v5498_v7  ;;  %5014 = vmatprep.subr.bf16.mxu1 %v5498_v7 }
  0x71   : > { %1255 = vmatpush1.bf16.msra.mxu0 %v5112_v15  ;;  %5026 = vmatpush1.bf16.msra.mxu1 %v5112_v15 }
  0x72   : > { %1256 = vmatprep.subr.bf16.mxu0 %v5498_v7  ;;  %5015 = vmatprep.subr.bf16.mxu1 %v5498_v7 }
  0x75   : > { %1257 = vmatpush1.bf16.msra.mxu0 %v5113_v16  ;;  %5027 = vmatpush1.bf16.msra.mxu1 %v5113_v16 }
  0x76   : > { %1258 = vmatprep.subr.bf16.mxu0 %v5498_v7  ;;  %5016 = vmatprep.subr.bf16.mxu1 %v5498_v7 }
  0x79   : > { %1259 = vmatpush1.bf16.msra.mxu0 %v5114_v17  ;;  %5028 = vmatpush1.bf16.msra.mxu1 %v5114_v17 }
  0x7a   : > { %1260 = vmatprep.subr.bf16.mxu0 %v5498_v7  ;;  %5017 = vmatprep.subr.bf16.mxu1 %v5498_v7 }
  0x7d   : > { %1261 = vmatpush1.bf16.msra.mxu0 %v5115_v18  ;;  %5029 = vmatpush1.bf16.msra.mxu1 %v5115_v18 }
  0x7e   : > { %1262 = vmatprep.subr.bf16.mxu0 %v5498_v7  ;;  %5018 = vmatprep.subr.bf16.mxu1 %v5498_v7 }
  0x81   : > { %1263 = vmatpush1.bf16.msra.mxu0 %v5116_v19  ;;  %5030 = vmatpush1.bf16.msra.mxu1 %v5116_v19 }
  0x82   : > { %1264 = vmatprep.subr.bf16.mxu0 %v5498_v7  ;;  %5019 = vmatprep.subr.bf16.mxu1 %v5498_v7 }
  0x85   : > { %1265 = vmatpush1.bf16.msra.mxu0 %v5117_v20  ;;  %5031 = vmatpush1.bf16.msra.mxu1 %v5117_v20 }
  0x88   : > { %1275 = vmatmul.mubr.bf16.vlgmr.msra.gmra.mrb[0].mxu0 %v5118_v21  ;;  %1283 = vmatmul.mubr.bf16.vlgmr.msra.gmra.mrb[0].mxu1 %v5121_v22 }
  0x89   : > { %4533 = vmatprep.mubr.msk.bf16.mxu1 %vm1232_vm1, %v5124_v23 }
  0x90   : > { %1291 = vmatmul.mubr.bf16.gmra.mrb[4].mxu1 %v5126_v24 }
 0x15b   : > { %v1276_v27 = vpop.f32.mrb[0].mxu0  ;;  %v1284_v28 = vpop.f32.mrb[0].mxu1 }
 0x15c   : > { %v1277_v30 = vadd.f32 %v1276_v27, %v1130_v25  ;;  %v1285_v31 = vadd.f32 %v1284_v28, %v1132_v26  ;;  %v1278_v32 = vpop.f32.mrb[1].mxu0  ;;  %v1286_v33 = vpop.f32.mrb[1].mxu1 }
 0x15d   : > { %v1279_v34 = vpop.f32.mrb[2].mxu0  ;;  %v1287_v35 = vpop.f32.mrb[2].mxu1 }
 0x15e   : > { %v1280_v36 = vadd.f32 %v1279_v34, %v1131_v29  ;;  %v1288_v37 = vadd.f32 %v1287_v35, %v1130_v25  ;;  %v1281_v38 = vpop.f32.mrb[3].mxu0  ;;  %v1289_v39 = vpop.f32.mrb[3].mxu1  ;;  %v1307_v40 = vsel %vm1232_vm1, %v1285_v31, 0.0  ;;  %v1301_v41 = vsel %vm1232_vm1, %v1277_v30, 0.0 }
 0x15f   : > { %1308 = vadd.xlane.f32.xlu1 %v1307_v40  ;;  %1302 = vadd.xlane.f32.xlu0 %v1301_v41  ;;  %v4535_v39 = vld [vmem:[%s6843_s4] ss:$0 sm:$0xff] }
 0x160   : > { %v1310_v42 = vsel %vm1232_vm1, %v1288_v37, 0.0  ;;  %v1304_v43 = vsel %vm1232_vm1, %v1280_v36, 0.0 }
 0x163   : > { %v1292_v44 = vpop.f32.mrb[4].mxu1  ;;  %1311 = vadd.xlane.f32.xlu1 %v1310_v42  ;;  %1305 = vadd.xlane.f32.xlu0 %v1304_v43 }
 0x164   : > { %v1293_v45 = vadd.f32 %v1292_v44, %v1131_v29  ;;  %v1294_v46 = vpop.f32.mrb[5].mxu1 }
 0x165   : > { %v1295_v47 = vpop.f32.mrb[6].mxu1 }
 0x166   : > { %v1296_v48 = vadd.f32 %v1295_v47, %v1132_v26  ;;  %v1297_v49 = vpop.f32.mrb[7].mxu1  ;;  %v1313_v50 = vsel %vm1232_vm1, %v1293_v45, 0.0 }
 0x167   : > { %1314 = vadd.xlane.f32.xlu0 %v1313_v50 }
 0x168   : > { %v1316_v51 = vsel %vm1232_vm1, %v1296_v48, 0.0 }
 0x169   : > { %1317 = vadd.xlane.f32.xlu1 %v1316_v51 }
 0x1ec   : > { %v1309_v52 = vpop.xlane.xlu1 %1308  ;;  %v1303_v53 = vpop.xlane.xlu0 %1302 }
 0x1ed   : > { %v1322_v54 = vmul.f32 0.015625, %v1309_v52  ;;  %v1320_v55 = vmul.f32 0.015625, %v1303_v53 }
 0x1ef   : > { %v5861_v56 = vsub.f32 %v1285_v31, %v1322_v54  ;;  %v1326_v57 = vsub.f32 %v1277_v30, %v1320_v55 }
 0x1f0   : > { %v1312_v58 = vpop.xlane.xlu1 %1311  ;;  %v1306_v59 = vpop.xlane.xlu0 %1305 }
 0x1f1   : > { %v1323_v60 = vmul.f32 0.015625, %v1312_v58  ;;  %v1321_v61 = vmul.f32 0.015625, %v1306_v59  ;;  %v1332_v62 = vmul.f32 %v1326_v57, %v1326_v57  ;;  %v1334_v63 = vmul.f32 %v5861_v56, %v5861_v56 }
 0x1f3   : > { %v5865_v0 = vsub.f32 %v1288_v37, %v1323_v60  ;;  %v1327_v1 = vsub.f32 %v1280_v36, %v1321_v61  ;;  %v1338_v2 = vsel %vm1232_vm1, %v1332_v62, 0.0  ;;  %v1344_v7 = vsel %vm1232_vm1, %v1334_v63, 0.0  ;;  %v4534_v36 = vld [vmem:[%s6842_s10] ss:$0 sm:$0xff] }
 0x1f4   : > { %1339 = vadd.xlane.f32.xlu0 %v1338_v2  ;;  %v1315_v3 = vpop.xlane.xlu0 %1314 }
 0x1f5   : > { %v1324_v4 = vmul.f32 0.015625, %v1315_v3  ;;  %v1333_v5 = vmul.f32 %v1327_v1, %v1327_v1  ;;  %v1335_v11 = vmul.f32 %v5865_v0, %v5865_v0 }
 0x1f6   : > { %v1318_v6 = vpop.xlane.xlu1 %1317 }
 0x1f7   : > { %v1330_v8 = vsub.f32 %v1293_v45, %v1324_v4  ;;  %v1325_v9 = vmul.f32 0.015625, %v1318_v6  ;;  %v1341_v10 = vsel %vm1232_vm1, %v1333_v5, 0.0  ;;  %v1347_v14 = vsel %vm1232_vm1, %v1335_v11, 0.0 }
 0x1f8   : > { %1345 = vadd.xlane.f32.xlu0 %v1344_v7  ;;  %1342 = vadd.xlane.f32.xlu1 %v1341_v10 }
 0x1f9   : > { %v1331_v12 = vsub.f32 %v1296_v48, %v1325_v9  ;;  %v1336_v13 = vmul.f32 %v1330_v8, %v1330_v8 }
 0x1fb   : > { %v1350_v15 = vsel %vm1232_vm1, %v1336_v13, 0.0  ;;  %v1337_v16 = vmul.f32 %v1331_v12, %v1331_v12 }
 0x1fc   : > { %1348 = vadd.xlane.f32.xlu1 %v1347_v14  ;;  %1351 = vadd.xlane.f32.xlu0 %v1350_v15 }
 0x1fd   : > { %v1353_v17 = vsel %vm1232_vm1, %v1337_v16, 0.0 }
 0x200   : > { %1354 = vadd.xlane.f32.xlu1 %v1353_v17 }
 0x281   : > { %v1340_v18 = vpop.xlane.xlu0 %1339 }
 0x282   : > { %v1356_v19 = vmul.f32 0.015625, %v1340_v18 }
 0x284   : > { %v1362_v20 = vadd.f32 1e-05, %v1356_v19 }
 0x285   : > { %v1343_v21 = vpop.xlane.xlu1 %1342  ;;  %v1346_v22 = vpop.xlane.xlu0 %1345 }
 0x286   : > { %5127 = vrsqrt.f32 %v1362_v20  ;;  %v1357_v23 = vmul.f32 0.015625, %v1343_v21  ;;  %v1358_v24 = vmul.f32 0.015625, %v1346_v22 }
 0x288   : > { %v1363_v25 = vadd.f32 1e-05, %v1357_v23  ;;  %v1364_v26 = vadd.f32 1e-05, %v1358_v24 }
 0x289   : > { %v1349_v27 = vpop.xlane.xlu1 %1348  ;;  %v1352_v28 = vpop.xlane.xlu0 %1351 }
 0x28a   : > { %5129 = vrsqrt.f32 %v1363_v25  ;;  %v1359_v29 = vmul.f32 0.015625, %v1349_v27  ;;  %v1360_v30 = vmul.f32 0.015625, %v1352_v28 }
 0x28b   : > { %5131 = vrsqrt.f32 %v1364_v26 }
 0x28c   : > { %v1365_v31 = vadd.f32 1e-05, %v1359_v29  ;;  %v1366_v32 = vadd.f32 1e-05, %v1360_v30 }
 0x28d   : > { %v1355_v33 = vpop.xlane.xlu1 %1354 }
 0x28e   : > { %5133 = vrsqrt.f32 %v1365_v31  ;;  %v1361_v34 = vmul.f32 0.015625, %v1355_v33 }
 0x28f   : > { %5135 = vrsqrt.f32 %v1366_v32 }
 0x290   : > { %v5128_v35 = vpop.eup %5127  ;;  %v1367_v37 = vadd.f32 1e-05, %v1361_v34 }
 0x291   : > { %v1374_v38 = vmul.f32 %v5128_v35, %v1326_v57 }
 0x292   : > { %5137 = vrsqrt.f32 %v1367_v37 }
 0x293   : > { %v1386_v40 = vmul.f32 %v4534_v36, %v1374_v38 }
 0x294   : > { %v5130_v41 = vpop.eup %5129 }
 0x295   : > { %v5132_v42 = vpop.eup %5131  ;;  %v1398_v43 = vadd.f32 %v4535_v39, %v1386_v40  ;;  %v1375_v44 = vmul.f32 %v5130_v41, %v1327_v1 }
 0x296   : > { %v1376_v45 = vmul.f32 %v5132_v42, %v5861_v56 }
 0x297   : > { %1404 = vst.msk [vmem:[#allocation2] sm:$0xff] %vm1232_vm1, %v1398_v43  ;;  %v1387_v46 = vmul.f32 %v4534_v36, %v1375_v44 }
 0x298   : > { %v5134_v47 = vpop.eup %5133  ;;  %v1388_v48 = vmul.f32 %v4534_v36, %v1376_v45 }
 0x299   : > { %v5136_v49 = vpop.eup %5135  ;;  %v1399_v50 = vadd.f32 %v4535_v39, %v1387_v46  ;;  %v1377_v51 = vmul.f32 %v5134_v47, %v5865_v0 }
 0x29a   : > { %v1400_v52 = vadd.f32 %v4535_v39, %v1388_v48  ;;  %v1378_v53 = vmul.f32 %v5136_v49, %v1330_v8 }
 0x29b   : > { %1405 = vst.msk [vmem:[#allocation2 + $0x8] sm:$0xff] %vm1232_vm1, %v1399_v50  ;;  %v1389_v54 = vmul.f32 %v4534_v36, %v1377_v51 }
 0x29c   : > { %v5138_v55 = vpop.eup %5137  ;;  %1406 = vst.msk [vmem:[#allocation2 + $0x10] sm:$0xff] %vm1232_vm1, %v1400_v52  ;;  %v1390_v57 = vmul.f32 %v4534_v36, %v1378_v53 }
 0x29d   : > { %v1401_v58 = vadd.f32 %v4535_v39, %v1389_v54  ;;  %v1379_v56 = vmul.f32 %v5138_v55, %v1331_v12 }
 0x29e   : > { %v1402_v59 = vadd.f32 %v4535_v39, %v1390_v57 }
 0x29f   : > { %1407 = vst.msk [vmem:[#allocation2 + $0x18] sm:$0xff] %vm1232_vm1, %v1401_v58  ;;  %v1391_v60 = vmul.f32 %v4534_v36, %v1379_v56 }
 0x2a0   : > { %1408 = vst.msk [vmem:[#allocation2 + $0x20] sm:$0xff] %vm1232_vm1, %v1402_v59 }
 0x2a1   : > { %v1403_v61 = vadd.f32 %v4535_v39, %v1391_v60 }
 0x2a3   : > { %1409 = vst.msk [vmem:[#allocation2 + $0x28] sm:$0xff] %vm1232_vm1, %v1403_v61 }
 0x2a4 PF: > { %v1410_v62 = vld [vmem:[#allocation2] sm:$0xff]  ;;  %vm1418_vm2 = vcmask 523264   ;;  %v1412_v63 = vld [vmem:[#allocation2 + $0x10] sm:$0xff]  ;;  %v1411_v0 = vld [vmem:[#allocation2 + $0x8] sm:$0xff]  ;;  %v5499_v41 = vmov 0.0   ;;  %vm5500_vm3 = vmmov 0   ;;  %s6846_s7 = scalar_lea.vmem %s6780_s9, %s6877_s30 }
 0x2a5   : > { %v1419_v1 = vsel %vm1418_vm2, %v1410_v62, 0.0  ;;  %v1425_v2 = vsel %vm1418_vm2, %v1412_v63, 0.0  ;;  %v1422_v3 = vsel %vm1418_vm2, %v1411_v0, 0.0  ;;  %v5184_v40 = vld [vmem:[%s5709_s27] sm:$0xff]   ;;  %4816 = vmatprep.subr.bf16.mxu0 %v5499_v41  ;;  %5032 = vmatprep.subr.bf16.mxu1 %v5499_v41  ;;  %v5185_v42 = vld [vmem:[%s5709_s27 + $0x8] sm:$0xff]   ;;  %v5186_v44 = vld [vmem:[%s5709_s27 + $0x10] sm:$0xff]  }
 0x2a6   : > { %v1413_v4 = vld [vmem:[#allocation2 + $0x18] sm:$0xff]  ;;  %1420 = vadd.xlane.f32.xlu0 %v1419_v1  ;;  %1426 = vadd.xlane.f32.xlu1 %v1425_v2  ;;  %v5931_v43 = vld [vmem:[%s5709_s27 + $0x20] sm:$0xff]   ;;  %v5939_v45 = vld [vmem:[%s5709_s27 + $0x28] sm:$0xff]   ;;  %s6844_s12 = sld [smem:[#allocation19_spill]]  ;;  %vm1891_vm4 = vcmask 130048   ;;  %s5502_s3 = smov 96  }
 0x2a7   : > { %v1414_v5 = vld [vmem:[#allocation2 + $0x20] sm:$0xff]  ;;  %v1428_v7 = vsel %vm1418_vm2, %v1413_v4, 0.0  ;;  %4817 = vmatpush3.bf16.msra.mxu0 %v5184_v40  ;;  %4824 = vmatprep.mubr.msk.bf16.mxu0 %vm5500_vm3, %v5499_v41  ;;  %v5188_v46 = vld [vmem:[%s5709_s27 + $0x18] sm:$0xff]   ;;  %v5950_v47 = vld [vmem:[%s5709_s27 + $0x30] sm:$0xff]   ;;  %s5503_s4 = smov 80   ;;  %vm1988_vm5 = vcmask 1043456  }
 0x2a8   : > { %v1431_v8 = vsel %vm1418_vm2, %v1414_v5, 0.0  ;;  %4818 = vmatprep.subr.bf16.mxu0 %v5499_v41  ;;  %5036 = vmatpush3.bf16.msra.mxu1 %v5931_v43  ;;  %v5954_v48 = vld [vmem:[%s5709_s27 + $0x38] sm:$0xff]   ;;  %s1879_s29 = scalar_select %p1095_p6, 1, 0  ;;  %vm1946_vm0 = vcmask 195584  }
 0x2a9   : > { %5033 = vmatprep.subr.bf16.mxu1 %v5499_v41  ;;  %4852 = vmatprep.mubr.msk.bf16.mxu1 %vm5500_vm3, %v5499_v41  ;;  %s4596_s6 = sld [smem:[#allocation5 + $0x1]]  ;;  %s5507_s2 = smov 48  }
 0x2aa   : > { %v1415_v6 = vld [vmem:[#allocation2 + $0x28] sm:$0xff]  ;;  %1423 = vadd.xlane.f32.xlu0 %v1422_v3  ;;  %1429 = vadd.xlane.f32.xlu1 %v1428_v7  ;;  %p4663_p8 = scmp.ne.s32.totalorder %s5478_s1, 1 }
 0x2ab   : > { %v1434_v9 = vsel %vm1418_vm2, %v1415_v6, 0.0  ;;  %4819 = vmatpush3.bf16.msra.mxu0 %v5185_v42 }
 0x2ac   : > { %4820 = vmatprep.subr.bf16.mxu0 %v5499_v41  ;;  %5037 = vmatpush3.bf16.msra.mxu1 %v5939_v45  ;;  %s6845_s11 = scalar_lea.vmem %s6844_s12, %s6877_s30  ;;  %s5505_s12 = smov 16  }
 0x2ad   : > { %5034 = vmatprep.subr.bf16.mxu1 %v5499_v41 }
 0x2ae   : > { %1432 = vadd.xlane.f32.xlu0 %v1431_v8  ;;  %1435 = vadd.xlane.f32.xlu1 %v1434_v9 }
 0x2af   : > { %4821 = vmatpush3.bf16.msra.mxu0 %v5186_v44  ;;  %s6881_s6 = smov (!%p1076_p2, %s4596_s6), 17 }
 0x2b0   : > { %4822 = vmatprep.subr.bf16.mxu0 %v5499_v41  ;;  %5038 = vmatpush3.bf16.msra.mxu1 %v5950_v47 }
 0x2b1   : > { %5035 = vmatprep.subr.bf16.mxu1 %v5499_v41 }
 0x2b3   : > { %4823 = vmatpush3.bf16.msra.mxu0 %v5188_v46 }
 0x2b4   : > { %4836 = vmatprep.subr.bf16.mxu0 %v5499_v41  ;;  %5039 = vmatpush3.bf16.msra.mxu1 %v5954_v48 }
 0x333   : > { %v1421_v10 = vpop.xlane.xlu0 %1420  ;;  %v1427_v11 = vpop.xlane.xlu1 %1426 }
 0x334   : > { %v1438_v12 = vmul.f32 0.015625, %v1421_v10  ;;  %v1440_v13 = vmul.f32 0.015625, %v1427_v11  ;;  %v4537_v10 = vld [vmem:[%s6846_s7] ss:$0 sm:$0xff]  ;;  %s6857_s7 = sld [smem:[#allocation23_spill]] }
 0x336   : > { %v5895_v14 = vsub.f32 %v1410_v62, %v1438_v12  ;;  %v5897_v15 = vsub.f32 %v1412_v63, %v1440_v13 }
 0x337   : > { %v1424_v16 = vpop.xlane.xlu0 %1423  ;;  %v1430_v17 = vpop.xlane.xlu1 %1429 }
 0x338   : > { %v1439_v18 = vmul.f32 0.015625, %v1424_v16  ;;  %v1441_v19 = vmul.f32 0.015625, %v1430_v17  ;;  %v1450_v20 = vmul.f32 %v5895_v14, %v5895_v14  ;;  %v1452_v21 = vmul.f32 %v5897_v15, %v5897_v15 }
 0x33a   : > { %v5903_v22 = vsub.f32 %v1411_v0, %v1439_v18  ;;  %v5905_v23 = vsub.f32 %v1413_v4, %v1441_v19  ;;  %v1456_v24 = vsel %vm1418_vm2, %v1450_v20, 0.0  ;;  %v1462_v27 = vsel %vm1418_vm2, %v1452_v21, 0.0 }
 0x33b   : > { %1457 = vadd.xlane.f32.xlu0 %v1456_v24  ;;  %v1433_v25 = vpop.xlane.xlu0 %1432  ;;  %v1436_v26 = vpop.xlane.xlu1 %1435 }
 0x33c   : > { %v1442_v28 = vmul.f32 0.015625, %v1433_v25  ;;  %v1443_v29 = vmul.f32 0.015625, %v1436_v26  ;;  %v1451_v30 = vmul.f32 %v5903_v22, %v5903_v22  ;;  %v1453_v31 = vmul.f32 %v5905_v23, %v5905_v23 }
 0x33e   : > { %v5913_v32 = vsub.f32 %v1414_v5, %v1442_v28  ;;  %v5915_v33 = vsub.f32 %v1415_v6, %v1443_v29  ;;  %v1459_v34 = vsel %vm1418_vm2, %v1451_v30, 0.0  ;;  %v1465_v35 = vsel %vm1418_vm2, %v1453_v31, 0.0  ;;  %v4536_v5 = vld [vmem:[%s6845_s11] ss:$0 sm:$0xff]  ;;  %s5506_s11 = smov 32  }
 0x33f   : > { %1463 = vadd.xlane.f32.xlu0 %v1462_v27  ;;  %1460 = vadd.xlane.f32.xlu1 %v1459_v34  ;;  %v5194_v34 = vld [vmem:[%s5709_s27 + $0x50] sm:$0xff]  }
 0x340   : > { %v1454_v36 = vmul.f32 %v5913_v32, %v5913_v32  ;;  %v1455_v37 = vmul.f32 %v5915_v33, %v5915_v33 }
 0x342   : > { %v1468_v38 = vsel %vm1418_vm2, %v1454_v36, 0.0  ;;  %v1471_v39 = vsel %vm1418_vm2, %v1455_v37, 0.0  ;;  %v4538_v36 = vld [vmem:[%s5718_s25] ss:$0 sm:$0xff] }
 0x343   : > { %1466 = vadd.xlane.f32.xlu1 %v1465_v35  ;;  %1469 = vadd.xlane.f32.xlu0 %v1468_v38  ;;  %v5195_v35 = vld [vmem:[%s5709_s27 + $0x58] sm:$0xff]  }
 0x347   : > { %1472 = vadd.xlane.f32.xlu1 %v1471_v39 }
 0x3c8   : > { %v1458_v49 = vpop.xlane.xlu0 %1457 }
 0x3c9   : > { %v1474_v50 = vmul.f32 0.015625, %v1458_v49 }
 0x3cb   : > { %v1480_v51 = vadd.f32 1e-05, %v1474_v50 }
 0x3cc   : > { %v1461_v52 = vpop.xlane.xlu1 %1460  ;;  %v1464_v53 = vpop.xlane.xlu0 %1463 }
 0x3cd   : > { %5228 = vrsqrt.f32 %v1480_v51  ;;  %v1475_v54 = vmul.f32 0.015625, %v1461_v52  ;;  %v1476_v55 = vmul.f32 0.015625, %v1464_v53 }
 0x3cf   : > { %v1481_v57 = vadd.f32 1e-05, %v1475_v54  ;;  %v1482_v58 = vadd.f32 1e-05, %v1476_v55 }
 0x3d0   : > { %v1467_v56 = vpop.xlane.xlu1 %1466  ;;  %v1470_v59 = vpop.xlane.xlu0 %1469 }
 0x3d1   : > { %5230 = vrsqrt.f32 %v1481_v57  ;;  %v1477_v60 = vmul.f32 0.015625, %v1467_v56  ;;  %v1478_v61 = vmul.f32 0.015625, %v1470_v59 }
 0x3d2   : > { %5232 = vrsqrt.f32 %v1482_v58 }
 0x3d3   : > { %v1483_v62 = vadd.f32 1e-05, %v1477_v60  ;;  %v1484_v63 = vadd.f32 1e-05, %v1478_v61 }
 0x3d4   : > { %v1473_v0 = vpop.xlane.xlu1 %1472 }
 0x3d5   : > { %5234 = vrsqrt.f32 %v1483_v62  ;;  %v1479_v1 = vmul.f32 0.015625, %v1473_v0 }
 0x3d6   : > { %5236 = vrsqrt.f32 %v1484_v63 }
 0x3d7   : > { %v5229_v2 = vpop.eup %5228  ;;  %v1485_v3 = vadd.f32 1e-05, %v1479_v1 }
 0x3d8   : > { %v1492_v4 = vmul.f32 %v5229_v2, %v5895_v14 }
 0x3d9   : > { %5238 = vrsqrt.f32 %v1485_v3 }
 0x3da   : > { %v1504_v8 = vmul.f32 %v4536_v5, %v1492_v4 }
 0x3db   : > { %v5231_v6 = vpop.eup %5230 }
 0x3dc   : > { %v1493_v7 = vmul.f32 %v5231_v6, %v5903_v22  ;;  %v5233_v9 = vpop.eup %5232  ;;  %v1516_v14 = vadd.f32 %v4537_v10, %v1504_v8 }
 0x3dd   : > { %v1494_v17 = vmul.f32 %v5233_v9, %v5897_v15 }
 0x3de   : > { %v1505_v11 = vmul.f32 %v4536_v5, %v1493_v7 }
 0x3df   : > { %v5235_v12 = vpop.eup %5234  ;;  %v1506_v24 = vmul.f32 %v4536_v5, %v1494_v17 }
 0x3e0   : > { %v5237_v13 = vpop.eup %5236  ;;  %v1517_v16 = vadd.f32 %v4537_v10, %v1505_v11  ;;  %v1495_v18 = vmul.f32 %v5235_v12, %v5905_v23 }
 0x3e1   : > { %v1496_v19 = vmul.f32 %v5237_v13, %v5913_v32  ;;  %v1518_v23 = vadd.f32 %v4537_v10, %v1506_v24  ;;  %v5192_v32 = vld [vmem:[%s5709_s27 + $0x40] sm:$0xff]  }
 0x3e2   : > { %v1522_v20 = vpack.c.bf16 %v1517_v16, %v1516_v14  ;;  %v1507_v21 = vmul.f32 %v4536_v5, %v1495_v18  ;;  %v4572_v14 = vld [vmem:[%s5718_s25 + $0x2] ss:$0 sm:$0xff] }
 0x3e3   : > { %v5239_v22 = vpop.eup %5238  ;;  %v1508_v26 = vmul.f32 %v4536_v5, %v1496_v19 }
 0x3e4   : > { %4825 = vmatmul.mubr.msk.bf16.vlgmr.msra.gmra.mrb[0].mxu0 %vm1418_vm2, %v1522_v20  ;;  %v1497_v25 = vmul.f32 %v5239_v22, %v5915_v33  ;;  %v1519_v27 = vadd.f32 %v4537_v10, %v1507_v21  ;;  %v5193_v33 = vld [vmem:[%s5709_s27 + $0x48] sm:$0xff]   ;;  %s5501_s27 = smov 112  }
 0x3e5   : > { %4837 = vmatpush3.bf16.msra.mxu0 %v5931_v43  ;;  %4828 = vmatprep.mubr.msk.bf16.mxu0 %vm5500_vm3, %v5499_v41  ;;  %v1520_v28 = vadd.f32 %v4537_v10, %v1508_v26 }
 0x3e6   : > { %v1509_v15 = vmul.f32 %v4536_v5, %v1497_v25  ;;  %4838 = vmatprep.subr.bf16.mxu0 %v5499_v41  ;;  %v1523_v30 = vpack.c.bf16 %v1519_v27, %v1518_v23 }
 0x3e8   : > { %v1521_v29 = vadd.f32 %v4537_v10, %v1509_v15 }
 0x3e9   : > { %4839 = vmatpush3.bf16.msra.mxu0 %v5939_v45  ;;  %v4555_v45 = vld [vmem:[%s5718_s25 + $0x1] ss:$0 sm:$0xff]  ;;  %s1872_s25 = sld [smem:[#allocation5]] }
 0x3ea   : > { %v1524_v31 = vpack.c.bf16 %v1521_v29, %v1520_v28  ;;  %4840 = vmatprep.subr.bf16.mxu0 %v5499_v41 }
 0x3ec   : > { %4829 = vmatmul.mubr.msk.bf16.gmra.mrb[4].mxu0 %vm1418_vm2, %v1523_v30  ;;  %4853 = vmatmul.mubr.msk.bf16.vlgmr.msra.gmra.mrb[0].mxu1 %vm1418_vm2, %v1524_v31 }
 0x3ed   : > { %4832 = vmatprep.mubr.msk.bf16.mxu0 %vm5500_vm3, %v5499_v41  ;;  %4841 = vmatpush3.bf16.msra.mxu0 %v5950_v47 }
 0x3ee   : > { %4842 = vmatprep.subr.bf16.mxu0 %v5499_v41 }
 0x3ef   : > { %s6879_s25 = smov (!%p1076_p2, %s1872_s25), 17 }
 0x3f1   : > { %4843 = vmatpush3.bf16.msra.mxu0 %v5954_v48 }
 0x3f2   : > { %4856 = vmatprep.subr.bf16.mxu0 %v5499_v41 }
 0x3f4   : > { %4833 = vmatmul.mubr.msk.bf16.gmra.mrb[8].mxu0 %vm1418_vm2, %v1524_v31 }
 0x3f5   : > { %4844 = vmatprep.mubr.msk.bf16.mxu0 %vm5500_vm3, %v5499_v41 }
 0x3fc   : > { %4845 = vmatmul.mubr.msk.bf16.vlgmr.msra.gmra.mrb[12].mxu0 %vm1418_vm2, %v1522_v20 }
 0x3fd   : > { %4857 = vmatpush3.bf16.msra.mxu0 %v5192_v32  ;;  %4848 = vmatprep.mubr.msk.bf16.mxu0 %vm5500_vm3, %v5499_v41 }
 0x3fe   : > { %4858 = vmatprep.subr.bf16.mxu0 %v5499_v41 }
 0x401   : > { %4859 = vmatpush3.bf16.msra.mxu0 %v5193_v33 }
 0x402   : > { %4860 = vmatprep.subr.bf16.mxu0 %v5499_v41 }
 0x404   : > { %4849 = vmatmul.mubr.msk.bf16.gmra.mrb[16].mxu0 %vm1418_vm2, %v1523_v30 }
 0x405   : > { %4861 = vmatpush3.bf16.msra.mxu0 %v5194_v34  ;;  %4864 = vmatprep.mubr.msk.bf16.mxu0 %vm5500_vm3, %v5499_v41 }
 0x406   : > { %4862 = vmatprep.subr.bf16.mxu0 %v5499_v41 }
 0x409   : > { %4863 = vmatpush3.bf16.msra.mxu0 %v5195_v35 }
 0x40c   : > { %4865 = vmatmul.mubr.msk.bf16.vlgmr.msra.gmra.mrb[20].mxu0 %vm1418_vm2, %v1522_v20 }
 0x40d   : > { %4868 = vmatprep.mubr.msk.bf16.mxu0 %vm5500_vm3, %v5499_v41 }
 0x414   : > { %4869 = vmatmul.mubr.msk.bf16.gmra.mrb[24].mxu0 %vm1418_vm2, %v1523_v30 }
 0x415   : > { %4872 = vmatprep.mubr.msk.bf16.mxu0 %vm5500_vm3, %v5499_v41 }
 0x41c   : > { %4873 = vmatmul.mubr.msk.bf16.gmra.mrb[28].mxu0 %vm1418_vm2, %v1524_v31 }
 0x4b7   : > { %v1607_v37 = vpop.f32.mrb[0].mxu0 }
 0x4b8   : > { %v4826_v38 = vpop.f32.mrb[1].mxu0  ;;  %v1608_v40 = vadd.f32 %v4538_v36, %v1607_v37 }
 0x4b9   : > { %v1610_v39 = vpop.f32.mrb[2].mxu0 }
 0x4ba   : > { %v1611_v42 = vadd.f32 %v4538_v36, %v1610_v39  ;;  %v4827_v43 = vpop.f32.mrb[3].mxu0 }
 0x4bc   : > { %v6013_v44 = vpack.c.bf16 %v1611_v42, %v1608_v40 }
 0x4be   : > { %2042 = vrot.lane.b32.xlu1 %v6013_v44, %s5501_s27  ;;  %4878 = vmatprep.mubr.msk.bf16.mxu1 %vm1891_vm4, %v6013_v44 }
 0x4bf   : > { %v1615_v46 = vpop.f32.mrb[4].mxu0  ;;  %v1721_v47 = vpop.f32.mrb[0].mxu1 }
 0x4c0   : > { %v1616_v48 = vadd.f32 %v4538_v36, %v1615_v46  ;;  %v6020_v49 = vadd.f32 %v4555_v45, %v1721_v47  ;;  %v4830_v50 = vpop.f32.mrb[5].mxu0  ;;  %v4854_v51 = vpop.f32.mrb[1].mxu1 }
 0x4c1   : > { %v1618_v52 = vpop.f32.mrb[6].mxu0  ;;  %v1724_v53 = vpop.f32.mrb[2].mxu1 }
 0x4c2   : > { %v6022_v54 = vpack.c.bf16 %v1616_v48, %v1616_v48  ;;  %v6024_v55 = vadd.f32 %v4555_v45, %v1724_v53  ;;  %v4831_v57 = vpop.f32.mrb[7].mxu0  ;;  %v4855_v58 = vpop.f32.mrb[3].mxu1  ;;  %v1619_v59 = vadd.f32 %v4538_v36, %v1618_v52 }
 0x4c3   : > { %v1826_v58 = vlaneseq }
 0x4c4   : > { %2044 = vrot.lane.b32.xlu1 %v6022_v54, %s5501_s27 }
 0x4c7   : > { %v1623_v56 = vpop.f32.mrb[8].mxu0 }
 0x4c8   : > { %v1624_v60 = vadd.f32 %v4538_v36, %v1623_v56  ;;  %2199 = vrot.lane.b32.xlu1 %v6013_v44, %s5502_s3  ;;  %v4834_v61 = vpop.f32.mrb[9].mxu0  ;;  %v6092_v56 = vshrl.u32 %v1826_v58, 7 }
 0x4c9   : > { %v1626_v62 = vpop.f32.mrb[10].mxu0  ;;  %v1880_v61 = vstv %s1879_s29 }
 0x4ca   : > { %v6030_v63 = vpack.c.bf16 %v1624_v60, %v1619_v59  ;;  %v1627_v0 = vadd.f32 %v4538_v36, %v1626_v62  ;;  %v4835_v1 = vpop.f32.mrb[11].mxu0  ;;  %v6096_v59 = vand.u32 127, %v1826_v58  ;;  %v6099_v60 = vadd.s32 16, %v6092_v56 }
 0x4cb   : > { %v1874_v62 = vstv %s6879_s25  ;;  %vm1881_vm7 = vcmp.eq.s32.totalorder %v1880_v61, 1 }
 0x4cc   : > { %2201 = vrot.lane.b32.xlu1 %v6022_v54, %s5502_s3  ;;  %v6053_v34 = vpack.c.bf16 %v1627_v0, %v1627_v0  ;;  %vm1878_vm6 = vcmp.le.s32.totalorder %v6096_v59, %v6099_v60  ;;  %vm1876_vm8 = vcmp.le.s32.totalorder %v6096_v59, %v6092_v56  ;;  %v6108_v0 = vadd.s32 8, %v6092_v56 }
 0x4cd   : > { %vm6111_vm9 = vcmp.lt.s32.totalorder %v6096_v59, %v1874_v62  ;;  %vm6115_vm10 = vmor %vm1878_vm6, %vm1881_vm7 }
 0x4ce   : > { %vm6119_vm11 = vmor %vm1876_vm8, %vm1881_vm7  ;;  %vm1877_vm13 = vcmp.le.s32.totalorder %v6096_v59, %v6108_v0 }
 0x4cf   : > { %v1705_v2 = vpop.f32.mrb[12].mxu0  ;;  %vm1887_vm12 = vmand %vm6111_vm9, %vm6115_vm10 }
 0x4d0   : > { %v1706_v3 = vadd.f32 %v4555_v45, %v1705_v2  ;;  %2356 = vrot.lane.b32.xlu1 %v6022_v54, %s5503_s4  ;;  %v4846_v4 = vpop.f32.mrb[13].mxu0  ;;  %vm1885_vm14 = vmand %vm6111_vm9, %vm6119_vm11 }
 0x4d1   : > { %v1708_v5 = vpop.f32.mrb[14].mxu0  ;;  %v5504_v4 = vmov -1e+09   ;;  %vm6136_vm15 = vmor %vm1877_vm13, %vm1881_vm7 }
 0x4d2   : > { %1834 = vxpose.xlu0.b32.start [1/3] (short) (narrow) %v1706_v3, 64  ;;  %v4847_v6 = vpop.f32.mrb[15].mxu0  ;;  %v1709_v7 = vadd.f32 %v4555_v45, %v1708_v5  ;;  %v6134_v5 = vsel %vm1887_vm12, 0.0, %v5504_v4  ;;  %vm1886_vm1 = vmand %vm6111_vm9, %vm6136_vm15 }
 0x4d4   : > { %2754 = vrot.lane.b32.xlu1 %v6030_v63, %s5501_s27 }
 0x4d6   : > { %1835 = vxpose.xlu0.b32.cont [2/3] (short) (narrow) %v1709_v7, 64 }
 0x4d7   : > { %v1713_v8 = vpop.f32.mrb[16].mxu0 }
 0x4d8   : > { %v1714_v9 = vadd.f32 %v4555_v45, %v1713_v8  ;;  %v4850_v10 = vpop.f32.mrb[17].mxu0  ;;  %v6141_v8 = vsel %vm1885_vm14, 0.0, %v5504_v4 }
 0x4d9   : > { %v1716_v11 = vpop.f32.mrb[18].mxu0 }
 0x4da   : > { %v6038_v12 = vadd.f32 %v4555_v45, %v1716_v11  ;;  %1836 = vxpose.xlu0.b32.end [3/3] (short) (narrow) %v1714_v9, 64  ;;  %v4851_v13 = vpop.f32.mrb[19].mxu0 }
 0x4df   : > { %v1803_v16 = vpop.f32.mrb[20].mxu0 }
 0x4e0   : > { %v4866_v17 = vpop.f32.mrb[21].mxu0  ;;  %v1804_v19 = vadd.f32 %v4572_v14, %v1803_v16 }
 0x4e1   : > { %v1806_v18 = vpop.f32.mrb[22].mxu0  ;;  %v6151_v17 = vsel %vm1886_vm1, 0.0, %v5504_v4  ;;  %vm3997_vm1 = vcmask (!%p4663_p8), 517120  }
 0x4e2   : > { %v1807_v20 = vadd.f32 %v4572_v14, %v1806_v18  ;;  %v4867_v21 = vpop.f32.mrb[23].mxu0 }
 0x4e4   : > { %v6041_v22 = vpack.c.bf16 %v1807_v20, %v1804_v19 }
 0x4e7   : > { %v1811_v24 = vpop.f32.mrb[24].mxu0 }
 0x4e8   : > { %v4870_v25 = vpop.f32.mrb[25].mxu0  ;;  %v1812_v35 = vadd.f32 %v4572_v14, %v1811_v24 }
 0x4e9   : > { %v1814_v26 = vpop.f32.mrb[26].mxu0 }
 0x4ea   : > { %v1815_v27 = vadd.f32 %v4572_v14, %v1814_v26  ;;  %v4871_v15 = vpop.f32.mrb[27].mxu0  ;;  %v6061_v36 = vpack.c.bf16 %v1812_v35, %v1812_v35 }
 0x4ef   : > { %v1819_v23 = vpop.f32.mrb[28].mxu0 }
 0x4f0   : > { %v1820_v28 = vadd.f32 %v4572_v14, %v1819_v23  ;;  %v4874_v29 = vpop.f32.mrb[29].mxu0 }
 0x4f1   : > { %v1822_v30 = vpop.f32.mrb[30].mxu0 }
 0x4f2   : > { %v6043_v31 = vpack.c.bf16 %v1820_v28, %v1815_v27  ;;  %v6045_v32 = vadd.f32 %v4572_v14, %v1822_v30  ;;  %v4875_v33 = vpop.f32.mrb[31].mxu0 }
 0x517   : > { %2354 = vrot.lane.b32.xlu0 %v6013_v44, %s5503_s4  ;;  %v1990_v44 = vsel %vm1988_vm5, %v6061_v36, 0 }
 0x51b   : > { %2911 = vrot.lane.b32.xlu0 %v6030_v63, %s5502_s3 }
 0x51f   : > { %3066 = vrot.lane.b32.xlu0 %v6030_v63, %s5503_s4 }
 0x523   : > { %3068 = vrot.lane.b32.xlu0 %v6053_v34, %s5503_s4 }
 0x527   : > { %2137 = vrot.lane.b32.xlu0 %v6041_v22, %s5501_s27 }
 0x52b   : > { %2292 = vrot.lane.b32.xlu0 %v6041_v22, %s5502_s3 }
 0x52f   : > { %2294 = vrot.lane.b32.xlu0 %v6061_v36, %s5502_s3 }
 0x530   : > { %v2043_v21 = vpop.permute.xlu1 %2042 }
 0x533   : > { %2449 = vrot.lane.b32.xlu0 %v6061_v36, %s5503_s4 }
 0x536   : > { %v2045_v24 = vpop.permute.xlu1 %2044 }
 0x53a   : > { %v2200_v25 = vpop.permute.xlu1 %2199 }
 0x53e   : > { %v2202_v26 = vpop.permute.xlu1 %2201 }
 0x542   : > { %v2357_v27 = vpop.permute.xlu1 %2356 }
 0x546   : > { %v6158_v15 = vpop.permute.xlu1 %2754 }
 0x552   : > { %v1850_v37 = vpop.trf.xlu0 }
 0x556   : > { %v1851_v38 = vpop.trf.xlu0 }
 0x557   : > { %v1866_v39 = vpack.c.bf16 %v1851_v38, %v1850_v37 }
 0x559   : > { %4876 = vmatprep.subr.bf16.mxu1 %v1866_v39 }
 0x55a   : > { %4877 = vmatpush3.bf16.msra.mxu1 %v1866_v39  ;;  %v1852_v40 = vpop.trf.xlu0 }
 0x55b   : > { %4882 = vmatprep.subr.bf16.mxu1 %v6041_v22 }
 0x55d   : > { %4879 = vmatmul.mubr.msk.bf16.vlgmr.msra.gmra.mrb[4].mxu1 %vm1891_vm4, %v6022_v54 }
 0x55e   : > { %4883 = vmatpush3.bf16.msra.mxu1 %v6041_v22  ;;  %v1853_v42 = vpop.trf.xlu0 }
 0x55f   : > { %5040 = vmatprep.subr.msk.bf16.mxu1 %vm1988_vm5, %v6061_v36  ;;  %v6073_v43 = vpack.c.bf16 %v1853_v42, %v1852_v40 }
 0x562   : > { %4885 = vmatpush3.bf16.msra.mxu1 %v1990_v44  ;;  %v6077_v45 = vpop.trf.xlu0 }
 0x563   : > { %4890 = vmatprep.subr.bf16.mxu1 %v6073_v43 }
 0x566   : > { %v6080_v46 = vpop.trf.xlu0 }
 0x56a   : > { %v1856_v47 = vpop.trf.xlu0 }
 0x56e   : > { %v1857_v48 = vpop.trf.xlu0 }
 0x56f   : > { %v6082_v50 = vpack.c.bf16 %v1857_v48, %v1856_v47 }
 0x589   : > { %v6084_v51 = vpop.permute.xlu0 %2354 }
 0x58d   : > { %v6086_v52 = vpop.permute.xlu0 %2911 }
 0x591   : > { %v6088_v53 = vpop.permute.xlu0 %3066 }
 0x595   : > { %v6090_v54 = vpop.permute.xlu0 %3068 }
 0x599   : > { %v2138_v57 = vpop.permute.xlu0 %2137 }
 0x59a   : > { %4896 = vmatprep.subr.bf16.mxu0 %v2138_v57 }
 0x59b   : > { %4897 = vmatpush3.bf16.msra.mxu0 %v2138_v57 }
 0x630   : > { %v4880_v7 = vpop.f32.mrb[4].mxu1 }
 0x631   : > { %v1941_v9 = vadd.f32 %v4880_v7, %v6134_v5  ;;  %v1932_v10 = vpop.f32.mrb[5].mxu1 }
 0x632   : > { %v4881_v11 = vpop.f32.mrb[6].mxu1  ;;  %v1933_v13 = vadd.f32 %v1932_v10, %v6141_v8 }
 0x633   : > { %v1935_v14 = vpop.f32.mrb[7].mxu1  ;;  %v1953_v16 = vsel %vm1946_vm0, %v1941_v9, -inf }
 0x634   : > { %1954 = vmax.xlane.f32.xlu1 %v1953_v16  ;;  %v1936_v18 = vadd.f32 %v1935_v14, %v6151_v17  ;;  %v1947_v19 = vsel %vm1946_vm0, %v1933_v13, -inf }
 0x636   : > { %v1950_v20 = vsel %vm1946_vm0, %v1936_v18, -inf }
 0x638   : > { %1948 = vmax.xlane.f32.xlu1 %v1947_v19 }
 0x63c   : > { %1951 = vmax.xlane.f32.xlu1 %v1950_v20 }
 0x64d   : > { %2756 = vrot.lane.b32.xlu1 %v6053_v34, %s5501_s27 }
 0x6c1   : > { %v1955_v23 = vpop.xlane.xlu1 %1954 }
 0x6c2   : > { %v1958_v28 = vsub.f32 %v1941_v9, %v1955_v23 }
 0x6c4   : > { %v1963_v29 = vmul.f32 1.442695, %v1958_v28 }
 0x6c5   : > { %v1949_v30 = vpop.xlane.xlu1 %1948 }
 0x6c6   : > { %5240 = vpow2.f32 %v1963_v29  ;;  %v1956_v33 = vsub.f32 %v1933_v13, %v1949_v30 }
 0x6c8   : > { %v1959_v35 = vmul.f32 1.442695, %v1956_v33 }
 0x6c9   : > { %v1952_v37 = vpop.xlane.xlu1 %1951 }
 0x6ca   : > { %5242 = vpow2.f32 %v1959_v35  ;;  %v1957_v38 = vsub.f32 %v1936_v18, %v1952_v37 }
 0x6cc   : > { %v1961_v39 = vmul.f32 1.442695, %v1957_v38 }
 0x6cd   : > { %v2757_v58 = vpop.permute.xlu1 %2756 }
 0x6ce   : > { %5244 = vpow2.f32 %v1961_v39 }
 0x6d0   : > { %v5241_v40 = vpop.eup %5240 }
 0x6d1   : > { %v1971_v42 = vsel %vm1946_vm0, %v5241_v40, 0.0 }
 0x6d2   : > { %1972 = vadd.xlane.f32.xlu1 %v1971_v42 }
 0x6d4   : > { %v5243_v44 = vpop.eup %5242 }
 0x6d5   : > { %v1965_v47 = vsel %vm1946_vm0, %v5243_v44, 0.0 }
 0x6d6   : > { %1966 = vadd.xlane.f32.xlu1 %v1965_v47 }
 0x6d8   : > { %v5245_v48 = vpop.eup %5244 }
 0x6d9   : > { %v1968_v57 = vsel %vm1946_vm0, %v5245_v48, 0.0 }
 0x6da   : > { %1969 = vadd.xlane.f32.xlu1 %v1968_v57 }
 0x70d   : > { %2558 = vxpose.xlu1.b32.start [1/3] (short) (narrow) %v6038_v12, 64 }
 0x711   : > { %2559 = vxpose.xlu1.b32.cont [2/3] (short) (narrow) %v6020_v49, 64 }
 0x715   : > { %2560 = vxpose.xlu1.b32.end [3/3] (short) (narrow) %v6024_v55, 64 }
 0x747   : > { %2913 = vrot.lane.b32.xlu1 %v6053_v34, %s5502_s3 }
 0x74b   : > { %2139 = vrot.lane.b32.xlu1 %v6061_v36, %s5501_s27  ;;  %v1868_v36 = vpack.c.bf16 %v6080_v46, %v6077_v45 }
 0x74f   : > { %2447 = vrot.lane.b32.xlu1 %v6041_v22, %s5503_s4 }
 0x75f   : > { %v1973_v61 = vpop.xlane.xlu1 %1972 }
 0x760   : > { %5246 = vrcp.f32 %v1973_v61 }
 0x763   : > { %v1967_v62 = vpop.xlane.xlu1 %1966 }
 0x764   : > { %5248 = vrcp.f32 %v1967_v62 }
 0x767   : > { %v1970_v1 = vpop.xlane.xlu1 %1969 }
 0x768   : > { %5250 = vrcp.f32 %v1970_v1 }
 0x76a   : > { %v5247_v12 = vpop.eup %5246 }
 0x76b   : > { %v1979_v55 = vmul.f32 %v5247_v12, %v5241_v40 }
 0x76d   : > { %v1981_v13 = vpack.c.bf16 %v1979_v55, %v1979_v55 }
 0x76e   : > { %v5249_v49 = vpop.eup %5248 }
 0x76f   : > { %v1977_v9 = vmul.f32 %v5249_v49, %v5243_v44 }
 0x772   : > { %v5251_v7 = vpop.eup %5250 }
 0x773   : > { %v1978_v10 = vmul.f32 %v5251_v7, %v5245_v48 }
 0x775   : > { %v1980_v11 = vpack.c.bf16 %v1978_v10, %v1977_v9  ;;  %v2598_v9 = vstv %s6881_s6  ;;  %s6860_s6 = scalar_lea.vmem %s6786_s15, %s6877_s30 }
 0x776   : > { %vm6250_vm6 = vcmp.lt.s32.totalorder %v6096_v59, %v2598_v9 }
 0x777   : > { %4886 = vmatprep.mubr.msk.bf16.mxu1 %vm1946_vm0, %v1980_v11  ;;  %vm2602_vm7 = vmand %vm6250_vm6, %vm6115_vm10  ;;  %vm2552_vm10 = vcmask 392192  }
 0x778   : > { %4887 = vmatmul.mubr.msk.bf16.vlgmr.msra.gmra.mrb[8].mxu1 %vm1946_vm0, %v1981_v13  ;;  %vm2600_vm8 = vmand %vm6250_vm6, %vm6119_vm11 }
 0x779   : > { %4891 = vmatpush3.bf16.msra.mxu1 %v6073_v43  ;;  %4892 = vmatprep.mubr.msk.bf16.mxu1 %vm1891_vm4, %v2043_v21  ;;  %vm2601_vm9 = vmand %vm6250_vm6, %vm6136_vm15  ;;  %vm3985_vm15 = vcmask (!%p4663_p8), 1040384   ;;  %vm4211_vm6 = vcmask (!%p4663_p8), 1041408  }
 0x77a   : > { %4904 = vmatprep.subr.bf16.mxu1 %v1868_v36 }
 0x780   : > { %4893 = vmatmul.mubr.msk.bf16.vlgmr.msra.gmra.mrb[12].mxu1 %vm1891_vm4, %v2045_v24  ;;  %v6201_v24 = vpop.permute.xlu0 %2292 }
 0x781   : > { %4906 = vmatprep.mubr.msk.bf16.mxu1 %vm1891_vm4, %v2200_v25  ;;  %4905 = vmatpush3.bf16.msra.mxu1 %v1868_v36 }
 0x782   : > { %4918 = vmatprep.subr.bf16.mxu1 %v6082_v50 }
 0x788   : > { %4907 = vmatmul.mubr.msk.bf16.vlgmr.msra.gmra.mrb[16].mxu1 %vm1891_vm4, %v2202_v26 }
 0x789   : > { %4920 = vmatprep.mubr.msk.bf16.mxu1 %vm1891_vm4, %v6084_v51  ;;  %4919 = vmatpush3.bf16.msra.mxu1 %v6082_v50 }
 0x78d   : > { %v2574_v22 = vpop.trf.xlu1 }
 0x790   : > { %4921 = vmatmul.mubr.msk.bf16.vlgmr.msra.gmra.mrb[20].mxu1 %vm1891_vm4, %v2357_v27 }
 0x791   : > { %v2575_v43 = vpop.trf.xlu1  ;;  %4934 = vmatprep.mubr.msk.bf16.mxu1 %vm1891_vm4, %v6030_v63 }
 0x792   : > { %v2590_v45 = vpack.c.bf16 %v2575_v43, %v2574_v22 }
 0x794   : > { %4932 = vmatprep.subr.bf16.mxu1 %v2590_v45 }
 0x795   : > { %v2576_v46 = vpop.trf.xlu1  ;;  %4933 = vmatpush3.bf16.msra.mxu1 %v2590_v45  ;;  %v2605_v45 = vsel %vm2602_vm7, 0.0, %v5504_v4 }
 0x798   : > { %4935 = vmatmul.mubr.msk.bf16.vlgmr.msra.gmra.mrb[24].mxu1 %vm1891_vm4, %v6053_v34 }
 0x799   : > { %v2577_v14 = vpop.trf.xlu1  ;;  %4948 = vmatprep.mubr.msk.bf16.mxu1 %vm1891_vm4, %v6158_v15 }
 0x79a   : > { %v2591_v51 = vpack.c.bf16 %v2577_v14, %v2576_v46 }
 0x79c   : > { %4946 = vmatprep.subr.bf16.mxu1 %v2591_v51 }
 0x79d   : > { %4947 = vmatpush3.bf16.msra.mxu1 %v2591_v51  ;;  %v2578_v50 = vpop.trf.xlu1 }
 0x7a0   : > { %4949 = vmatmul.mubr.msk.bf16.vlgmr.msra.gmra.mrb[28].mxu1 %vm1891_vm4, %v2757_v58 }
 0x7a1   : > { %4962 = vmatprep.mubr.msk.bf16.mxu1 %vm1891_vm4, %v6086_v52  ;;  %v2579_v63 = vpop.trf.xlu1 }
 0x7a2   : > { %v2592_v16 = vpack.c.bf16 %v2579_v63, %v2578_v50  ;;  %v2604_v63 = vsel %vm2601_vm9, 0.0, %v5504_v4 }
 0x7a4   : > { %4960 = vmatprep.subr.bf16.mxu1 %v2592_v16 }
 0x7a5   : > { %v2580_v18 = vpop.trf.xlu1  ;;  %4961 = vmatpush3.bf16.msra.mxu1 %v2592_v16 }
 0x7a9   : > { %v2581_v19 = vpop.trf.xlu1 }
 0x7aa   : > { %v2593_v34 = vpack.c.bf16 %v2581_v19, %v2580_v18 }
 0x7ac   : > { %4974 = vmatprep.subr.bf16.mxu1 %v2593_v34 }
 0x7b9   : > { %v2914_v20 = vpop.permute.xlu1 %2913 }
 0x7ba   : > { %4963 = vmatmul.mubr.msk.bf16.vlgmr.msra.gmra.mrb[32].mxu1 %vm1891_vm4, %v2914_v20 }
 0x7bb   : > { %4976 = vmatprep.mubr.msk.bf16.mxu1 %vm1891_vm4, %v6088_v53  ;;  %4975 = vmatpush3.bf16.msra.mxu1 %v2593_v34 }
 0x7bc   : > { %4988 = vmatprep.subr.bf16.mxu1 %v5499_v41 }
 0x7bd   : > { %v2140_v21 = vpop.permute.xlu1 %2139 }
 0x7be   : > { %v2149_v52 = vsel %vm1988_vm5, %v2140_v21, 0  ;;  %5041 = vmatprep.subr.msk.bf16.mxu0 %vm1988_vm5, %v2140_v21 }
 0x7bf   : > { %4899 = vmatpush3.bf16.msra.mxu0 %v2149_v52 }
 0x7c0   : > { %4910 = vmatprep.subr.bf16.mxu0 %v6201_v24 }
 0x7c2   : > { %4977 = vmatmul.mubr.msk.bf16.vlgmr.msra.gmra.mrb[36].mxu1 %vm1891_vm4, %v6090_v54 }
 0x7c3   : > { %4996 = vmatprep.mubr.msk.bf16.mxu1 %vm5500_vm3, %v5499_v41 }
 0x84b   : > { %v6208_v53 = vpop.f32.mrb[8].mxu1 }
 0x84c   : > { %v6210_v25 = vpop.f32.mrb[9].mxu1 }
 0x84d   : > { %v4889_v26 = vpop.f32.mrb[10].mxu1 }
 0x84e   : > { %v6212_v27 = vpop.f32.mrb[11].mxu1 }
 0x853   : > { %v4894_v15 = vpop.f32.mrb[12].mxu1 }
 0x854   : > { %v6215_v23 = vadd.f32 %v4894_v15, %v6134_v5  ;;  %v2086_v28 = vpop.f32.mrb[13].mxu1 }
 0x855   : > { %v4895_v29 = vpop.f32.mrb[14].mxu1  ;;  %v6218_v30 = vadd.f32 %v2086_v28, %v6141_v8 }
 0x856   : > { %v2089_v54 = vpop.f32.mrb[15].mxu1  ;;  %v2106_v33 = vsel %vm1946_vm0, %v6215_v23, -inf }
 0x857   : > { %2107 = vmax.xlane.f32.xlu0 %v2106_v33  ;;  %v6223_v35 = vadd.f32 %v2089_v54, %v6151_v17  ;;  %v2100_v37 = vsel %vm1946_vm0, %v6218_v30, -inf }
 0x859   : > { %v2103_v48 = vsel %vm1946_vm0, %v6223_v35, -inf }
 0x85b   : > { %v4908_v38 = vpop.f32.mrb[16].mxu1  ;;  %2101 = vmax.xlane.f32.xlu0 %v2100_v37 }
 0x85c   : > { %v2243_v39 = vpop.f32.mrb[17].mxu1  ;;  %v6231_v44 = vadd.f32 %v4908_v38, %v6134_v5 }
 0x85d   : > { %v6228_v40 = vadd.f32 %v2243_v39, %v6141_v8  ;;  %v4909_v42 = vpop.f32.mrb[18].mxu1 }
 0x85e   : > { %v2246_v47 = vpop.f32.mrb[19].mxu1  ;;  %v2263_v61 = vsel %vm1946_vm0, %v6231_v44, -inf }
 0x85f   : > { %2104 = vmax.xlane.f32.xlu0 %v2103_v48  ;;  %v2257_v57 = vsel %vm1946_vm0, %v6228_v40, -inf  ;;  %v6238_v58 = vadd.f32 %v2246_v47, %v6151_v17 }
 0x860   : > { %2258 = vmax.xlane.f32.xlu1 %v2257_v57 }
 0x861   : > { %v2260_v55 = vsel %vm1946_vm0, %v6238_v58, -inf }
 0x863   : > { %v4922_v62 = vpop.f32.mrb[20].mxu1  ;;  %2264 = vmax.xlane.f32.xlu0 %v2263_v61 }
 0x864   : > { %v2398_v1 = vpop.f32.mrb[21].mxu1  ;;  %v6245_v49 = vadd.f32 %v4922_v62, %v6134_v5 }
 0x865   : > { %v4923_v12 = vpop.f32.mrb[22].mxu1  ;;  %v6255_v11 = vadd.f32 %v2398_v1, %v6141_v8 }
 0x866   : > { %v2401_v7 = vpop.f32.mrb[23].mxu1  ;;  %v2418_v36 = vsel %vm1946_vm0, %v6245_v49, -inf }
 0x867   : > { %2261 = vmax.xlane.f32.xlu0 %v2260_v55  ;;  %v6264_v59 = vadd.f32 %v2401_v7, %v6151_v17  ;;  %v2412_v8 = vsel %vm1946_vm0, %v6255_v11, -inf  ;;  %v2603_v17 = vsel %vm2600_vm8, 0.0, %v5504_v4 }
 0x869   : > { %v2415_v46 = vsel %vm1946_vm0, %v6264_v59, -inf }
 0x86b   : > { %v4936_v13 = vpop.f32.mrb[24].mxu1  ;;  %2419 = vmax.xlane.f32.xlu0 %v2418_v36 }
 0x86c   : > { %v2646_v5 = vpop.f32.mrb[25].mxu1  ;;  %v6273_v2 = vadd.f32 %v4936_v13, %v2605_v45  ;;  %v6333_v13 = vpack.c.bf16 %v6045_v32, %v6045_v32 }
 0x86d   : > { %v4937_v22 = vpop.f32.mrb[26].mxu1  ;;  %v6282_v3 = vadd.f32 %v2646_v5, %v2603_v17  ;;  %v6337_v5 = vpop.permute.xlu0 %2294 }
 0x86e   : > { %v2649_v43 = vpop.f32.mrb[27].mxu1  ;;  %v2666_v18 = vsel %vm1946_vm0, %v6273_v2, -inf }
 0x86f   : > { %2413 = vmax.xlane.f32.xlu0 %v2412_v8  ;;  %v6291_v34 = vadd.f32 %v2649_v43, %v2604_v63  ;;  %v2660_v20 = vsel %vm1946_vm0, %v6282_v3, -inf }
 0x871   : > { %v2663_v4 = vsel %vm1946_vm0, %v6291_v34, -inf  ;;  %v6339_v22 = vpop.permute.xlu0 %2449 }
 0x873   : > { %v4950_v14 = vpop.f32.mrb[28].mxu1  ;;  %2416 = vmax.xlane.f32.xlu0 %v2415_v46 }
 0x874   : > { %v2798_v51 = vpop.f32.mrb[29].mxu1  ;;  %v6295_v21 = vadd.f32 %v4950_v14, %v2605_v45 }
 0x875   : > { %v4951_v50 = vpop.f32.mrb[30].mxu1  ;;  %v6299_v52 = vadd.f32 %v2798_v51, %v2603_v17 }
 0x876   : > { %v2801_v16 = vpop.f32.mrb[31].mxu1  ;;  %v2818_v26 = vsel %vm1946_vm0, %v6295_v21, -inf }
 0x877   : > { %v6287_v19 = vadd.f32 %v2801_v16, %v2604_v63  ;;  %2667 = vmax.xlane.f32.xlu0 %v2666_v18  ;;  %v2812_v15 = vsel %vm1946_vm0, %v6299_v52, -inf }
 0x879   : > { %v2815_v6 = vsel %vm1946_vm0, %v6287_v19, -inf }
 0x87a   : > { %2816 = vmax.xlane.f32.xlu1 %v2815_v6 }
 0x87b   : > { %2661 = vmax.xlane.f32.xlu0 %v2660_v20 }
 0x87f   : > { %2664 = vmax.xlane.f32.xlu0 %v2663_v4 }
 0x883   : > { %2819 = vmax.xlane.f32.xlu0 %v2818_v26 }
 0x887   : > { %2813 = vmax.xlane.f32.xlu0 %v2812_v15 }
 0x88d   : > { %v4964_v28 = vpop.f32.mrb[32].mxu1 }
 0x88e   : > { %v6305_v29 = vadd.f32 %v4964_v28, %v2605_v45  ;;  %v2955_v54 = vpop.f32.mrb[33].mxu1 }
 0x88f   : > { %v4965_v33 = vpop.f32.mrb[34].mxu1  ;;  %v6307_v37 = vadd.f32 %v2955_v54, %v2603_v17 }
 0x890   : > { %v2958_v38 = vpop.f32.mrb[35].mxu1  ;;  %v2975_v39 = vsel %vm1946_vm0, %v6305_v29, -inf }
 0x891   : > { %v6311_v42 = vadd.f32 %v2958_v38, %v2604_v63  ;;  %2976 = vmax.xlane.f32.xlu1 %v2975_v39  ;;  %v2969_v48 = vsel %vm1946_vm0, %v6307_v37, -inf }
 0x893   : > { %v2972_v47 = vsel %vm1946_vm0, %v6311_v42, -inf }
 0x894   : > { %2973 = vmax.xlane.f32.xlu0 %v2972_v47 }
 0x895   : > { %v4978_v57 = vpop.f32.mrb[36].mxu1  ;;  %2970 = vmax.xlane.f32.xlu1 %v2969_v48 }
 0x896   : > { %v6317_v61 = vadd.f32 %v4978_v57, %v2605_v45  ;;  %v3110_v62 = vpop.f32.mrb[37].mxu1 }
 0x897   : > { %v4979_v1 = vpop.f32.mrb[38].mxu1  ;;  %v6319_v12 = vadd.f32 %v3110_v62, %v2603_v17  ;;  %v6342_v17 = vpop.permute.xlu1 %2447 }
 0x898   : > { %v3113_v7 = vpop.f32.mrb[39].mxu1  ;;  %v3130_v55 = vsel %vm1946_vm0, %v6317_v61, -inf }
 0x899   : > { %v6323_v9 = vadd.f32 %v3113_v7, %v2604_v63  ;;  %3131 = vmax.xlane.f32.xlu0 %v3130_v55  ;;  %v3124_v36 = vsel %vm1946_vm0, %v6319_v12, -inf }
 0x89b   : > { %v3127_v10 = vsel %vm1946_vm0, %v6323_v9, -inf }
 0x89c   : > { %3128 = vmax.xlane.f32.xlu1 %v3127_v10 }
 0x89d   : > { %3125 = vmax.xlane.f32.xlu0 %v3124_v36 }
 0x8ad   : > { %2849 = vrot.lane.b32.xlu1 %v6043_v31, %s5501_s27 }
 0x8b3   : > { %2851 = vrot.lane.b32.xlu0 %v6333_v13, %s5501_s27  ;;  %s6858_s27 = scalar_lea.vmem %s6857_s7, %s6877_s30  ;;  %s6863_s7 = sld [smem:[#allocation28_spill]] (!%p4663_p8) }
 0x8e4   : > { %v2108_v43 = vpop.xlane.xlu0 %2107 }
 0x8e5   : > { %v2111_v8 = vsub.f32 %v6215_v23, %v2108_v43 }
 0x8e7   : > { %v2116_v45 = vmul.f32 1.442695, %v2111_v8 }
 0x8e8   : > { %v2102_v46 = vpop.xlane.xlu0 %2101 }
 0x8e9   : > { %5252 = vpow2.f32 %v2116_v45  ;;  %v2109_v14 = vsub.f32 %v6218_v30, %v2102_v46 }
 0x8eb   : > { %v2112_v51 = vmul.f32 1.442695, %v2109_v14 }
 0x8ec   : > { %v2105_v32 = vpop.xlane.xlu0 %2104 }
 0x8ed   : > { %5254 = vpow2.f32 %v2112_v51  ;;  %v2110_v50 = vsub.f32 %v6223_v35, %v2105_v32  ;;  %v2259_v63 = vpop.xlane.xlu1 %2258 }
 0x8ee   : > { %v2266_v18 = vsub.f32 %v6228_v40, %v2259_v63 }
 0x8ef   : > { %v2114_v16 = vmul.f32 1.442695, %v2110_v50 }
 0x8f0   : > { %v2265_v6 = vpop.xlane.xlu0 %2264  ;;  %v2269_v4 = vmul.f32 1.442695, %v2266_v18 }
 0x8f1   : > { %5256 = vpow2.f32 %v2114_v16  ;;  %v2268_v23 = vsub.f32 %v6231_v44, %v2265_v6 }
 0x8f3   : > { %v6348_v20 = vpop.eup %5252  ;;  %v2273_v26 = vmul.f32 1.442695, %v2268_v23 }
 0x8f4   : > { %v2262_v15 = vpop.xlane.xlu0 %2261  ;;  %v2124_v30 = vsel %vm1946_vm0, %v6348_v20, 0.0 }
 0x8f5   : > { %5258 = vpow2.f32 %v2273_v26  ;;  %v2267_v28 = vsub.f32 %v6238_v58, %v2262_v15  ;;  %2125 = vadd.xlane.f32.xlu1 %v2124_v30 }
 0x8f6   : > { %5260 = vpow2.f32 %v2269_v4 }
 0x8f7   : > { %v6353_v35 = vpop.eup %5254  ;;  %v2271_v40 = vmul.f32 1.442695, %v2267_v28 }
 0x8f8   : > { %v2420_v54 = vpop.xlane.xlu0 %2419  ;;  %v2118_v44 = vsel %vm1946_vm0, %v6353_v35, 0.0 }
 0x8f9   : > { %5262 = vpow2.f32 %v2271_v40  ;;  %v2423_v33 = vsub.f32 %v6245_v49, %v2420_v54  ;;  %2119 = vadd.xlane.f32.xlu1 %v2118_v44 }
 0x8fb   : > { %v6358_v38 = vpop.eup %5256  ;;  %v2428_v39 = vmul.f32 1.442695, %v2423_v33 }
 0x8fc   : > { %v2414_v47 = vpop.xlane.xlu0 %2413  ;;  %v2121_v58 = vsel %vm1946_vm0, %v6358_v38, 0.0 }
 0x8fd   : > { %5264 = vpow2.f32 %v2428_v39  ;;  %v2421_v48 = vsub.f32 %v6255_v11, %v2414_v47  ;;  %2122 = vadd.xlane.f32.xlu0 %v2121_v58 }
 0x8ff   : > { %v6363_v57 = vpop.eup %5258  ;;  %v2424_v62 = vmul.f32 1.442695, %v2421_v48 }
 0x900   : > { %v2417_v1 = vpop.xlane.xlu0 %2416  ;;  %v2281_v7 = vsel %vm1946_vm0, %v6363_v57, 0.0  ;;  %v6367_v49 = vpop.eup %5260 }
 0x901   : > { %5266 = vpow2.f32 %v2424_v62  ;;  %v2422_v55 = vsub.f32 %v6264_v59, %v2417_v1  ;;  %2282 = vadd.xlane.f32.xlu0 %v2281_v7  ;;  %v2275_v8 = vsel %vm1946_vm0, %v6367_v49, 0.0 }
 0x903   : > { %v6370_v10 = vpop.eup %5262  ;;  %v2426_v36 = vmul.f32 1.442695, %v2422_v55 }
 0x904   : > { %v2668_v43 = vpop.xlane.xlu0 %2667  ;;  %v2278_v11 = vsel %vm1946_vm0, %v6370_v10, 0.0 }
 0x905   : > { %5268 = vpow2.f32 %v2426_v36  ;;  %v2671_v45 = vsub.f32 %v6273_v2, %v2668_v43  ;;  %2279 = vadd.xlane.f32.xlu1 %v2278_v11  ;;  %2276 = vadd.xlane.f32.xlu0 %v2275_v8 }
 0x907   : > { %v6377_v46 = vpop.eup %5264  ;;  %v2676_v14 = vmul.f32 1.442695, %v2671_v45  ;;  %v2817_v59 = vpop.xlane.xlu1 %2816 }
 0x908   : > { %v2662_v51 = vpop.xlane.xlu0 %2661  ;;  %v2436_v32 = vsel %vm1946_vm0, %v6377_v46, 0.0  ;;  %v2822_v16 = vsub.f32 %v6287_v19, %v2817_v59 }
 0x909   : > { %5270 = vpow2.f32 %v2676_v14  ;;  %v2669_v50 = vsub.f32 %v6282_v3, %v2662_v51  ;;  %2437 = vadd.xlane.f32.xlu1 %v2436_v32 }
 0x90a   : > { %v2826_v26 = vmul.f32 1.442695, %v2822_v16 }
 0x90b   : > { %v6382_v63 = vpop.eup %5266  ;;  %v2672_v18 = vmul.f32 1.442695, %v2669_v50 }
 0x90c   : > { %v2665_v2 = vpop.xlane.xlu0 %2664  ;;  %v2430_v6 = vsel %vm1946_vm0, %v6382_v63, 0.0 }
 0x90d   : > { %5272 = vpow2.f32 %v2672_v18  ;;  %v2670_v23 = vsub.f32 %v6291_v34, %v2665_v2  ;;  %2431 = vadd.xlane.f32.xlu1 %v2430_v6 }
 0x90f   : > { %v6388_v4 = vpop.eup %5268  ;;  %v2674_v15 = vmul.f32 1.442695, %v2670_v23 }
 0x910   : > { %v2433_v3 = vsel %vm1946_vm0, %v6388_v4, 0.0  ;;  %v2820_v34 = vpop.xlane.xlu0 %2819 }
 0x911   : > { %5274 = vpow2.f32 %v2674_v15  ;;  %2434 = vadd.xlane.f32.xlu0 %v2433_v3  ;;  %v2823_v32 = vsub.f32 %v6295_v21, %v2820_v34 }
 0x912   : > { %5276 = vpow2.f32 %v2826_v26 }
 0x913   : > { %v6392_v30 = vpop.eup %5270  ;;  %v2828_v50 = vmul.f32 1.442695, %v2823_v32 }
 0x914   : > { %v2684_v19 = vsel %vm1946_vm0, %v6392_v30, 0.0  ;;  %v2814_v39 = vpop.xlane.xlu0 %2813 }
 0x915   : > { %2685 = vadd.xlane.f32.xlu1 %v2684_v19  ;;  %v2821_v16 = vsub.f32 %v6299_v52, %v2814_v39 }
 0x917   : > { %v6396_v28 = vpop.eup %5272  ;;  %v2824_v18 = vmul.f32 1.442695, %v2821_v16 }
 0x918   : > { %v2678_v40 = vsel %vm1946_vm0, %v6396_v28, 0.0 }
 0x919   : > { %2679 = vadd.xlane.f32.xlu1 %v2678_v40 }
 0x91b   : > { %v6400_v54 = vpop.eup %5274 }
 0x91c   : > { %v2681_v44 = vsel %vm1946_vm0, %v6400_v54, 0.0  ;;  %v6404_v33 = vpop.eup %5276 }
 0x91d   : > { %2682 = vadd.xlane.f32.xlu1 %v2681_v44  ;;  %v2833_v58 = vsel %vm1946_vm0, %v6404_v33, 0.0 }
 0x91e   : > { %v2977_v47 = vpop.xlane.xlu1 %2976 }
 0x91f   : > { %v2980_v2 = vsub.f32 %v6305_v29, %v2977_v47 }
 0x921   : > { %v2974_v48 = vpop.xlane.xlu0 %2973  ;;  %2834 = vadd.xlane.f32.xlu1 %v2833_v58  ;;  %v2985_v52 = vmul.f32 1.442695, %v2980_v2 }
 0x922   : > { %v2979_v62 = vsub.f32 %v6311_v42, %v2974_v48  ;;  %v2971_v7 = vpop.xlane.xlu1 %2970 }
 0x923   : > { %v2978_v26 = vsub.f32 %v6307_v37, %v2971_v7 }
 0x924   : > { %v2983_v1 = vmul.f32 1.442695, %v2979_v62 }
 0x925   : > { %v2981_v3 = vmul.f32 1.442695, %v2978_v26 }
 0x926   : > { %5278 = vpow2.f32 %v2983_v1  ;;  %v3132_v55 = vpop.xlane.xlu0 %3131 }
 0x927   : > { %v3135_v36 = vsub.f32 %v6317_v61, %v3132_v55  ;;  %3004 = vrot.lane.b32.xlu0 %v6043_v31, %s5502_s3 }
 0x929   : > { %v3140_v43 = vmul.f32 1.442695, %v3135_v36  ;;  %v3129_v11 = vpop.xlane.xlu1 %3128 }
 0x92a   : > { %v3134_v8 = vsub.f32 %v6323_v9, %v3129_v11  ;;  %v3126_v45 = vpop.xlane.xlu0 %3125 }
 0x92b   : > { %5280 = vpow2.f32 %v3140_v43  ;;  %v3133_v14 = vsub.f32 %v6319_v12, %v3126_v45 }
 0x92c   : > { %v3138_v59 = vmul.f32 1.442695, %v3134_v8 }
 0x92d   : > { %v3136_v51 = vmul.f32 1.442695, %v3133_v14  ;;  %v6456_v58 = vpop.permute.xlu1 %2849 }
 0x92e   : > { %v6458_v62 = vpop.permute.xlu0 %2851 }
 0x92f   : > { %5282 = vpow2.f32 %v3136_v51 }
 0x930   : > { %v6414_v42 = vpop.eup %5278  ;;  %5284 = vpow2.f32 %v3138_v59 }
 0x931   : > { %v2990_v61 = vsel %vm1946_vm0, %v6414_v42, 0.0  ;;  %5286 = vpow2.f32 %v2828_v50 }
 0x932   : > { %2991 = vadd.xlane.f32.xlu1 %v2990_v61  ;;  %5288 = vpow2.f32 %v2824_v18 }
 0x933   : > { %5290 = vpow2.f32 %v2985_v52 }
 0x934   : > { %5292 = vpow2.f32 %v2981_v3 }
 0x935   : > { %v6420_v9 = vpop.eup %5280 }
 0x936   : > { %v3148_v12 = vsel %vm1946_vm0, %v6420_v9, 0.0 }
 0x937   : > { %3149 = vadd.xlane.f32.xlu1 %v3148_v12 }
 0x939   : > { %v6425_v6 = vpop.eup %5282 }
 0x93a   : > { %v3142_v21 = vsel %vm1946_vm0, %v6425_v6, 0.0  ;;  %v6429_v23 = vpop.eup %5284 }
 0x93b   : > { %3143 = vadd.xlane.f32.xlu1 %v3142_v21  ;;  %v3145_v15 = vsel %vm1946_vm0, %v6429_v23, 0.0  ;;  %v6434_v19 = vpop.eup %5286  ;;  %v2304_v21 = vsel %vm1988_vm5, %v6337_v5, 0 }
 0x93c   : > { %v2836_v29 = vsel %vm1946_vm0, %v6434_v19, 0.0  ;;  %v6438_v34 = vpop.eup %5288 }
 0x93d   : > { %v2830_v40 = vsel %vm1946_vm0, %v6438_v34, 0.0  ;;  %v6442_v44 = vpop.eup %5290 }
 0x93e   : > { %v2993_v37 = vsel %vm1946_vm0, %v6442_v44, 0.0  ;;  %v6446_v39 = vpop.eup %5292 }
 0x93f   : > { %3146 = vadd.xlane.f32.xlu1 %v3145_v15  ;;  %v2987_v47 = vsel %vm1946_vm0, %v6446_v39, 0.0 }
 0x946   : > { %2837 = vadd.xlane.f32.xlu0 %v2836_v29 }
 0x94a   : > { %2831 = vadd.xlane.f32.xlu0 %v2830_v40 }
 0x94e   : > { %2994 = vadd.xlane.f32.xlu0 %v2993_v37 }
 0x950   : > { %3159 = vrot.lane.b32.xlu1 %v6043_v31, %s5503_s4 }
 0x952   : > { %2988 = vadd.xlane.f32.xlu0 %v2987_v47 }
 0x968   : > { %3006 = vrot.lane.b32.xlu0 %v6333_v13, %s5502_s3 }
 0x96c   : > { %3161 = vrot.lane.b32.xlu0 %v6333_v13, %s5503_s4  ;;  %s6859_s4 = scalar_lea.vmem %s6785_s14, %s6877_s30  ;;  %s3935_s30 = sld [smem:[#allocation4]] (!%p4663_p8) }
 0x982   : > { %v2126_v48 = vpop.xlane.xlu1 %2125 }
 0x983   : > { %5294 = vrcp.f32 %v2126_v48 }
 0x986   : > { %v2120_v1 = vpop.xlane.xlu1 %2119 }
 0x987   : > { %5296 = vrcp.f32 %v2120_v1  ;;  %v2702_v1 = vsel %vm1988_vm5, %v6333_v13, 0 }
 0x98a   : > { %v2123_v7 = vpop.xlane.xlu0 %2122 }
 0x98b   : > { %5298 = vrcp.f32 %v2123_v7 }
 0x98d   : > { %v5295_v36 = vpop.eup %5294 }
 0x98e   : > { %v2283_v55 = vpop.xlane.xlu0 %2282  ;;  %v2132_v14 = vmul.f32 %v5295_v36, %v6348_v20 }
 0x98f   : > { %5300 = vrcp.f32 %v2283_v55 }
 0x990   : > { %v2134_v50 = vpack.c.bf16 %v2132_v14, %v2132_v14 }
 0x991   : > { %v5297_v8 = vpop.eup %5296 }
 0x992   : > { %v2280_v43 = vpop.xlane.xlu1 %2279  ;;  %v2277_v11 = vpop.xlane.xlu0 %2276  ;;  %v2130_v51 = vmul.f32 %v5297_v8, %v6353_v35 }
 0x993   : > { %5302 = vrcp.f32 %v2280_v43 }
 0x994   : > { %5304 = vrcp.f32 %v2277_v11 }
 0x995   : > { %v5299_v45 = vpop.eup %5298 }
 0x996   : > { %v2438_v59 = vpop.xlane.xlu1 %2437  ;;  %v2131_v32 = vmul.f32 %v5299_v45, %v6358_v38 }
 0x997   : > { %5306 = vrcp.f32 %v2438_v59 }
 0x998   : > { %v2133_v61 = vpack.c.bf16 %v2131_v32, %v2130_v51 }
 0x999   : > { %v5301_v12 = vpop.eup %5300 }
 0x99a   : > { %v2432_v16 = vpop.xlane.xlu1 %2431  ;;  %4900 = vmatprep.mubr.msk.bf16.mxu0 %vm1946_vm0, %v2133_v61  ;;  %v2289_v35 = vmul.f32 %v5301_v12, %v6363_v57 }
 0x99b   : > { %4901 = vmatmul.mubr.msk.bf16.vlgmr.msra.gmra.mrb[32].mxu0 %vm1946_vm0, %v2134_v50  ;;  %5308 = vrcp.f32 %v2432_v16 }
 0x99c   : > { %4911 = vmatpush3.bf16.msra.mxu0 %v6201_v24  ;;  %v2291_v15 = vpack.c.bf16 %v2289_v35, %v2289_v35 }
 0x99d   : > { %v5303_v18 = vpop.eup %5302  ;;  %5042 = vmatprep.subr.msk.bf16.mxu0 %vm1988_vm5, %v6337_v5 }
 0x99e   : > { %v5305_v20 = vpop.eup %5304  ;;  %v2435_v38 = vpop.xlane.xlu0 %2434  ;;  %v2288_v2 = vmul.f32 %v5303_v18, %v6370_v10 }
 0x99f   : > { %5310 = vrcp.f32 %v2435_v38  ;;  %v2287_v52 = vmul.f32 %v5305_v20, %v6367_v49  ;;  %v2459_v49 = vsel %vm1988_vm5, %v6339_v22, 0 }
 0x9a0   : > { %4913 = vmatpush3.bf16.msra.mxu0 %v2304_v21 }
 0x9a1   : > { %4924 = vmatprep.subr.bf16.mxu0 %v6342_v17  ;;  %v2290_v24 = vpack.c.bf16 %v2288_v2, %v2287_v52  ;;  %v5307_v57 = vpop.eup %5306 }
 0x9a2   : > { %v2686_v26 = vpop.xlane.xlu1 %2685  ;;  %v2444_v29 = vmul.f32 %v5307_v57, %v6377_v46 }
 0x9a3   : > { %4914 = vmatprep.mubr.msk.bf16.mxu0 %vm1946_vm0, %v2290_v24  ;;  %5312 = vrcp.f32 %v2686_v26 }
 0x9a4   : > { %4915 = vmatmul.mubr.msk.bf16.vlgmr.msra.gmra.mrb[36].mxu0 %vm1946_vm0, %v2291_v15  ;;  %v2446_v48 = vpack.c.bf16 %v2444_v29, %v2444_v29 }
 0x9a5   : > { %4925 = vmatpush3.bf16.msra.mxu0 %v6342_v17  ;;  %v5309_v10 = vpop.eup %5308 }
 0x9a6   : > { %5043 = vmatprep.subr.msk.bf16.mxu0 %vm1988_vm5, %v6339_v22  ;;  %v2680_v5 = vpop.xlane.xlu1 %2679  ;;  %v2442_v17 = vmul.f32 %v5309_v10, %v6382_v63 }
 0x9a7   : > { %5314 = vrcp.f32 %v2680_v5 }
 0x9a9   : > { %v5311_v3 = vpop.eup %5310  ;;  %4927 = vmatpush3.bf16.msra.mxu0 %v2459_v49 }
 0x9aa   : > { %4938 = vmatprep.subr.bf16.mxu0 %v6043_v31  ;;  %v2683_v40 = vpop.xlane.xlu1 %2682  ;;  %v2443_v37 = vmul.f32 %v5311_v3, %v6388_v4 }
 0x9ab   : > { %5316 = vrcp.f32 %v2683_v40 }
 0x9ac   : > { %v2445_v47 = vpack.c.bf16 %v2443_v37, %v2442_v17  ;;  %v5196_v37 = vld [vmem:[%s5704_s26] sm:$0xff]  }
 0x9ad   : > { %v5313_v22 = vpop.eup %5312  ;;  %4989 = vmatpush3.bf16.msra.mxu1 %v5196_v37 }
 0x9ae   : > { %4928 = vmatprep.mubr.msk.bf16.mxu0 %vm1946_vm0, %v2445_v47  ;;  %v2692_v4 = vmul.f32 %v5313_v22, %v6392_v30  ;;  %v3005_v30 = vpop.permute.xlu0 %3004  ;;  %4990 = vmatprep.subr.bf16.mxu1 %v5499_v41  ;;  %v5198_v22 = vld [vmem:[%s5704_s26 + $0x10] sm:$0xff]  }
 0x9af   : > { %4929 = vmatmul.mubr.msk.bf16.vlgmr.msra.gmra.mrb[40].mxu0 %vm1946_vm0, %v2446_v48  ;;  %v5197_v48 = vld [vmem:[%s5704_s26 + $0x8] sm:$0xff]  }
 0x9b0   : > { %4939 = vmatpush3.bf16.msra.mxu0 %v6043_v31  ;;  %v2694_v31 = vpack.c.bf16 %v2692_v4, %v2692_v4 }
 0x9b1   : > { %5044 = vmatprep.subr.msk.bf16.mxu0 %vm1988_vm5, %v6333_v13  ;;  %v5315_v46 = vpop.eup %5314  ;;  %v2861_v13 = vsel %vm1988_vm5, %v6458_v62, 0  ;;  %4991 = vmatpush3.bf16.msra.mxu1 %v5197_v48 }
 0x9b2   : > { %v2690_v7 = vmul.f32 %v5315_v46, %v6396_v28  ;;  %v2835_v28 = vpop.xlane.xlu1 %2834  ;;  %4992 = vmatprep.subr.bf16.mxu1 %v5499_v41 }
 0x9b4   : > { %4941 = vmatpush3.bf16.msra.mxu0 %v2702_v1 }
 0x9b5   : > { %v5317_v63 = vpop.eup %5316  ;;  %4952 = vmatprep.subr.bf16.mxu0 %v6456_v58  ;;  %4993 = vmatpush3.bf16.msra.mxu1 %v5198_v22 }
 0x9b6   : > { %v2691_v55 = vmul.f32 %v5317_v63, %v6400_v54  ;;  %4994 = vmatprep.subr.bf16.mxu1 %v5499_v41 }
 0x9b8   : > { %v2693_v36 = vpack.c.bf16 %v2691_v55, %v2690_v7  ;;  %v5199_v7 = vld [vmem:[%s5704_s26 + $0x18] sm:$0xff]  }
 0x9b9   : > { %4995 = vmatpush3.bf16.msra.mxu1 %v5199_v7 }
 0x9ba   : > { %4942 = vmatprep.mubr.msk.bf16.mxu0 %vm1946_vm0, %v2693_v36 }
 0x9bb   : > { %4943 = vmatmul.mubr.msk.bf16.vlgmr.msra.gmra.mrb[44].mxu0 %vm1946_vm0, %v2694_v31 }
 0x9bc   : > { %4953 = vmatpush3.bf16.msra.mxu0 %v6456_v58 }
 0x9bd   : > { %5045 = vmatprep.subr.msk.bf16.mxu0 %vm1988_vm5, %v6458_v62 }
 0x9bf   : > { %v2992_v43 = vpop.xlane.xlu1 %2991 }
 0x9c0   : > { %4955 = vmatpush3.bf16.msra.mxu0 %v2861_v13 }
 0x9c1   : > { %4966 = vmatprep.subr.bf16.mxu0 %v3005_v30 }
 0x9c4   : > { %v3150_v54 = vpop.xlane.xlu1 %3149 }
 0x9c8   : > { %v3144_v8 = vpop.xlane.xlu1 %3143 }
 0x9cc   : > { %v3147_v14 = vpop.xlane.xlu1 %3146 }
 0x9d0   : > { %v3160_v15 = vpop.permute.xlu1 %3159 }
 0x9d3   : > { %v2838_v11 = vpop.xlane.xlu0 %2837 }
 0x9d4   : > { %5318 = vrcp.f32 %v2838_v11 }
 0x9d5   : > { %5320 = vrcp.f32 %v2835_v28 }
 0x9d7   : > { %v2832_v45 = vpop.xlane.xlu0 %2831 }
 0x9d8   : > { %5322 = vrcp.f32 %v2832_v45 }
 0x9d9   : > { %5324 = vrcp.f32 %v2992_v43 }
 0x9db   : > { %v2995_v58 = vpop.xlane.xlu0 %2994 }
 0x9dc   : > { %5326 = vrcp.f32 %v2995_v58 }
 0x9dd   : > { %5328 = vrcp.f32 %v3147_v14 }
 0x9de   : > { %v5319_v59 = vpop.eup %5318  ;;  %5330 = vrcp.f32 %v3144_v8 }
 0x9df   : > { %v2989_v62 = vpop.xlane.xlu0 %2988  ;;  %v5321_v51 = vpop.eup %5320  ;;  %v2844_v61 = vmul.f32 %v5319_v59, %v6434_v19 }
 0x9e0   : > { %5332 = vrcp.f32 %v2989_v62  ;;  %v2843_v16 = vmul.f32 %v5321_v51, %v6404_v33 }
 0x9e1   : > { %5334 = vrcp.f32 %v3150_v54  ;;  %v2846_v20 = vpack.c.bf16 %v2844_v61, %v2844_v61 }
 0x9e2   : > { %v5323_v32 = vpop.eup %5322 }
 0x9e3   : > { %v2842_v50 = vmul.f32 %v5323_v32, %v6438_v34  ;;  %v5325_v18 = vpop.eup %5324  ;;  %v3007_v21 = vpop.permute.xlu0 %3006 }
 0x9e4   : > { %v3000_v34 = vmul.f32 %v5325_v18, %v6414_v42  ;;  %v3016_v26 = vsel %vm1988_vm5, %v3007_v21, 0 }
 0x9e5   : > { %v2845_v12 = vpack.c.bf16 %v2843_v16, %v2842_v50 }
 0x9e6   : > { %v5327_v35 = vpop.eup %5326 }
 0x9e7   : > { %4956 = vmatprep.mubr.msk.bf16.mxu0 %vm1946_vm0, %v2845_v12  ;;  %v5329_v38 = vpop.eup %5328  ;;  %v3001_v19 = vmul.f32 %v5327_v35, %v6442_v44 }
 0x9e8   : > { %4957 = vmatmul.mubr.msk.bf16.vlgmr.msra.gmra.mrb[48].mxu0 %vm1946_vm0, %v2846_v20  ;;  %v5331_v2 = vpop.eup %5330  ;;  %v3155_v24 = vmul.f32 %v5329_v38, %v6429_v23 }
 0x9e9   : > { %4967 = vmatpush3.bf16.msra.mxu0 %v3005_v30  ;;  %v3154_v5 = vmul.f32 %v5331_v2, %v6425_v6  ;;  %v3003_v10 = vpack.c.bf16 %v3001_v19, %v3001_v19 }
 0x9ea   : > { %v5333_v52 = vpop.eup %5332  ;;  %5046 = vmatprep.subr.msk.bf16.mxu0 %vm1988_vm5, %v3007_v21 }
 0x9eb   : > { %v2999_v33 = vmul.f32 %v5333_v52, %v6446_v39  ;;  %v5335_v49 = vpop.eup %5334  ;;  %v3157_v44 = vpack.c.bf16 %v3155_v24, %v3154_v5  ;;  %v3162_v39 = vpop.permute.xlu0 %3161 }
 0x9ec   : > { %v3156_v42 = vmul.f32 %v5335_v49, %v6420_v9  ;;  %v3171_v6 = vsel %vm1988_vm5, %v3162_v39, 0 }
 0x9ed   : > { %4969 = vmatpush3.bf16.msra.mxu0 %v3016_v26  ;;  %v3002_v57 = vpack.c.bf16 %v3000_v34, %v2999_v33 }
 0x9ee   : > { %4980 = vmatprep.subr.bf16.mxu0 %v3160_v15  ;;  %v3158_v23 = vpack.c.bf16 %v3156_v42, %v3156_v42 }
 0x9ef   : > { %4970 = vmatprep.mubr.msk.bf16.mxu0 %vm1946_vm0, %v3002_v57 }
 0x9f0   : > { %4971 = vmatmul.mubr.msk.bf16.vlgmr.msra.gmra.mrb[52].mxu0 %vm1946_vm0, %v3003_v10 }
 0x9f1   : > { %4981 = vmatpush3.bf16.msra.mxu0 %v3160_v15  ;;  %4984 = vmatprep.mubr.msk.bf16.mxu0 %vm1946_vm0, %v3157_v44 }
 0x9f2   : > { %5047 = vmatprep.subr.msk.bf16.mxu0 %vm1988_vm5, %v3162_v39  ;;  %vm2548_vm5 = vcmask 261120  }
 0x9f5   : > { %4983 = vmatpush3.bf16.msra.mxu0 %v3171_v6 }
 0x9f8   : > { %4985 = vmatmul.mubr.msk.bf16.vlgmr.msra.gmra.mrb[56].mxu0 %vm1946_vm0, %v3158_v23 }
 0xa6e   : > { %v4902_v3 = vpop.f32.mrb[32].mxu0 }
 0xa6f   : > { %v2185_v29 = vpop.f32.mrb[33].mxu0 }
 0xa70   : > { %v4903_v40 = vpop.f32.mrb[34].mxu0 }
 0xa71   : > { %v2188_v17 = vpop.f32.mrb[35].mxu0 }
 0xa72   : > { %v5139_v47 = vpack.i.bf16 %v2188_v17, %v2185_v29 }
 0xa74   : > { %5140 = vrot.lane.b32.xlu1 %v5139_v47, %s5505_s12 }
 0xa77   : > { %v4916_v9 = vpop.f32.mrb[36].mxu0 }
 0xa78   : > { %v2340_v46 = vpop.f32.mrb[37].mxu0 }
 0xa79   : > { %v4917_v1 = vpop.f32.mrb[38].mxu0 }
 0xa7a   : > { %v2343_v63 = vpop.f32.mrb[39].mxu0 }
 0xa7b   : > { %v5144_v4 = vpack.i.bf16 %v2343_v63, %v2340_v46 }
 0xa7d   : > { %5145 = vrot.lane.b32.xlu0 %v5144_v4, %s5506_s11 }
 0xa82   : > { %v4930_v55 = vpop.f32.mrb[40].mxu0 }
 0xa83   : > { %v2495_v36 = vpop.f32.mrb[41].mxu0 }
 0xa84   : > { %v4931_v31 = vpop.f32.mrb[42].mxu0 }
 0xa85   : > { %v2498_v13 = vpop.f32.mrb[43].mxu0 }
 0xa86   : > { %v5149_v30 = vpack.i.bf16 %v2498_v13, %v2495_v36 }
 0xa88   : > { %5150 = vrot.lane.b32.xlu1 %v5149_v30, %s5507_s2 }
 0xa8e   : > { %v6531_v28 = vpop.f32.mrb[44].mxu0 }
 0xa8f   : > { %v2738_v43 = vpop.f32.mrb[45].mxu0 }
 0xa90   : > { %v4945_v54 = vpop.f32.mrb[46].mxu0 }
 0xa91   : > { %v6533_v11 = vpop.f32.mrb[47].mxu0 }
 0xabb   : > { %v4958_v8 = vpop.f32.mrb[48].mxu0 }
 0xabc   : > { %v2897_v45 = vpop.f32.mrb[49].mxu0 }
 0xabd   : > { %v5154_v14 = vpack.i.bf16 %v2897_v45, %v4902_v3  ;;  %v4959_v58 = vpop.f32.mrb[50].mxu0 }
 0xabe   : > { %v2900_v59 = vpop.f32.mrb[51].mxu0 }
 0xabf   : > { %v5169_v62 = vpack.i.bf16 %v4958_v8, %v2900_v59  ;;  %5155 = vrot.lane.b32.xlu0 %v5154_v14, %s5505_s12 }
 0xac3   : > { %v4972_v51 = vpop.f32.mrb[52].mxu0 }
 0xac4   : > { %v3052_v32 = vpop.f32.mrb[53].mxu0 }
 0xac5   : > { %v5159_v61 = vpack.i.bf16 %v3052_v32, %v4916_v9  ;;  %v4973_v50 = vpop.f32.mrb[54].mxu0 }
 0xac6   : > { %v3055_v16 = vpop.f32.mrb[55].mxu0 }
 0xac7   : > { %v5174_v12 = vpack.i.bf16 %v4972_v51, %v3055_v16  ;;  %5160 = vrot.lane.b32.xlu1 %v5159_v61, %s5506_s11  ;;  %v5396_v61 = vld [vmem:[#allocation2] sm:$0xff] }
 0xacb   : > { %5170 = vrot.lane.b32.xlu1 %v5169_v62, %s5505_s12  ;;  %v4986_v18 = vpop.f32.mrb[56].mxu0 }
 0xacc   : > { %v3207_v20 = vpop.f32.mrb[57].mxu0 }
 0xacd   : > { %v5164_v35 = vpack.i.bf16 %v3207_v20, %v4930_v55  ;;  %v4987_v38 = vpop.f32.mrb[58].mxu0 }
 0xace   : > { %v3210_v2 = vpop.f32.mrb[59].mxu0 }
 0xacf   : > { %v5179_v21 = vpack.i.bf16 %v4986_v18, %v3210_v2  ;;  %5165 = vrot.lane.b32.xlu0 %v5164_v35, %s5507_s2 }
 0xad1   : > { %5180 = vrot.lane.b32.xlu1 %v5179_v21, %s5507_s2 }
 0xad3   : > { %5175 = vrot.lane.b32.xlu0 %v5174_v12, %s5506_s11  ;;  %s6861_s11 = sld [smem:[#allocation27_spill]] (!%p4663_p8) }
 0xad9   : > { %s6862_s2 = scalar_lea.vmem (!%p4663_p8), %s6861_s11, %s5678_s24 }
 0xae6   : > { %v5141_v52 = vpop.permute.xlu1 %5140 }
 0xae7   : > { %v5143_v33 = vunpack.i.h.bf16 %v5141_v52  ;;  %v5142_v34 = vunpack.i.l.bf16 %v5141_v52 }
 0xae9   : > { %v2546_v57 = vsel %vm1891_vm4, %v6212_v27, %v5143_v33  ;;  %v2545_v5 = vsel %vm1891_vm4, %v6210_v25, %v5142_v34 }
 0xaef   : > { %v5146_v19 = vpop.permute.xlu0 %5145 }
 0xaf0   : > { %v5148_v24 = vunpack.i.h.bf16 %v5146_v19  ;;  %v5147_v26 = vunpack.i.l.bf16 %v5146_v19  ;;  %v5398_v19 = vld [vmem:[#allocation2 + $0x10] sm:$0xff] }
 0xaf2   : > { %v2550_v44 = vsel %vm2548_vm5, %v2546_v57, %v5148_v24  ;;  %v2549_v39 = vsel %vm2548_vm5, %v2545_v5, %v5147_v26 }
 0xafa   : > { %v5151_v15 = vpop.permute.xlu1 %5150 }
 0xafb   : > { %v5153_v10 = vunpack.i.h.bf16 %v5151_v15  ;;  %v5152_v49 = vunpack.i.l.bf16 %v5151_v15  ;;  %v5399_v15 = vld [vmem:[#allocation2 + $0x18] sm:$0xff] }
 0xafd   : > { %v2554_v42 = vsel %vm2552_vm10, %v2550_v44, %v5153_v10  ;;  %v2553_v6 = vsel %vm2552_vm10, %v2549_v39, %v5152_v49  ;;  %v5400_v39 = vld [vmem:[#allocation2 + $0x20] sm:$0xff] }
 0xafe   : > { %v3266_v23 = vpack.c.bf16 %v2554_v42, %v2553_v6 }
 0xb00   : > { %4997 = vmatmul.mubr.msk.bf16.vlgmr.msra.gmra.mrb[40].mxu1 %vm1418_vm2, %v3266_v23 }
 0xb01   : > { %5000 = vmatprep.mubr.msk.bf16.mxu1 %vm5500_vm3, %v5499_v41 }
 0xb31   : > { %v5156_v3 = vpop.permute.xlu0 %5155 }
 0xb32   : > { %v5158_v29 = vunpack.i.h.bf16 %v5156_v3  ;;  %v5157_v25 = vunpack.i.l.bf16 %v5156_v3 }
 0xb34   : > { %v3257_v48 = vsel %vm1891_vm4, %v2738_v43, %v5158_v29  ;;  %v2547_v9 = vsel %vm1891_vm4, %v6208_v53, %v5157_v25  ;;  %v5401_v29 = vld [vmem:[#allocation2 + $0x28] sm:$0xff] }
 0xb39   : > { %v5161_v27 = vpop.permute.xlu1 %5160 }
 0xb3a   : > { %v5163_v40 = vunpack.i.h.bf16 %v5161_v27  ;;  %v5162_v17 = vunpack.i.l.bf16 %v5161_v27 }
 0xb3c   : > { %v3260_v1 = vsel %vm2548_vm5, %v3257_v48, %v5163_v40  ;;  %v2551_v63 = vsel %vm2548_vm5, %v2547_v9, %v5162_v17 }
 0xb3d   : > { %v5171_v37 = vpop.permute.xlu1 %5170 }
 0xb3e   : > { %v5173_v4 = vunpack.i.h.bf16 %v5171_v37  ;;  %v5172_v7 = vunpack.i.l.bf16 %v5171_v37 }
 0xb40   : > { %v3259_v53 = vsel %vm1891_vm4, %v6531_v28, %v5173_v4  ;;  %v3258_v8 = vsel %vm1891_vm4, %v6533_v11, %v5172_v7  ;;  %v4620_v11 = vld [vmem:[%s6858_s27] ss:$0 sm:$0xff]  ;;  %s6864_s27 = scalar_lea.vmem (!%p4663_p8), %s6863_s7, %s5678_s24 }
 0xb41   : > { %v5166_v47 = vpop.permute.xlu0 %5165 }
 0xb42   : > { %v5168_v22 = vunpack.i.h.bf16 %v5166_v47  ;;  %v5167_v46 = vunpack.i.l.bf16 %v5166_v47 }
 0xb43   : > { %v5181_v31 = vpop.permute.xlu1 %5180 }
 0xb44   : > { %v3263_v55 = vsel %vm2552_vm10, %v3260_v1, %v5168_v22  ;;  %v2555_v36 = vsel %vm2552_vm10, %v2551_v63, %v5167_v46  ;;  %v5183_v45 = vunpack.i.h.bf16 %v5181_v31  ;;  %v5182_v14 = vunpack.i.l.bf16 %v5181_v31  ;;  %v5202_v31 = vld [vmem:[%s5732_s0 + $0x4] ss:$8 sps:$4 sm:$0xff]  }
 0xb45   : > { %v3267_v13 = vpack.c.bf16 %v3263_v55, %v2555_v36  ;;  %v5176_v30 = vpop.permute.xlu0 %5175  ;;  %3562 = vmatprep.subr.bf16.mxu0 %v5202_v31 }
 0xb46   : > { %v5178_v43 = vunpack.i.h.bf16 %v5176_v30  ;;  %v5177_v54 = vunpack.i.l.bf16 %v5176_v30  ;;  %v5205_v30 = vld [vmem:[%s5732_s0 + $0x14] ss:$8 sps:$4 sm:$0xff]  }
 0xb47   : > { %5001 = vmatmul.mubr.msk.bf16.gmra.mrb[44].mxu1 %vm1418_vm2, %v3267_v13  ;;  %v5200_v13 = vld [vmem:[%s5732_s0] ss:$8 sps:$4 sm:$0xff]  }
 0xb48   : > { %v3262_v58 = vsel %vm2548_vm5, %v3259_v53, %v5178_v43  ;;  %v3261_v59 = vsel %vm2548_vm5, %v3258_v8, %v5177_v54  ;;  %5004 = vmatprep.mubr.msk.bf16.mxu1 %vm5500_vm3, %v5499_v41  ;;  %v5397_v41 = vld [vmem:[#allocation2 + $0x8] sm:$0xff]  ;;  %3563 = vmatpush1.bf16.msra.mxu0 %v5200_v13  ;;  %v5203_v43 = vld [vmem:[%s5732_s0 + $0x10] ss:$8 sps:$4 sm:$0xff]   ;;  %v5211_v8 = vld [vmem:[%s5732_s0 + $0x34] ss:$8 sps:$4 sm:$0xff]  }
 0xb49   : > { %v3264_v62 = vsel %vm2552_vm10, %v3261_v59, %v5182_v14  ;;  %v3265_v51 = vsel %vm2552_vm10, %v3262_v58, %v5183_v45  ;;  %3564 = vmatprep.subr.bf16.mxu0 %v5205_v30  ;;  %v5208_v54 = vld [vmem:[%s5732_s0 + $0x24] ss:$8 sps:$4 sm:$0xff]   ;;  %v5206_v53 = vld [vmem:[%s5732_s0 + $0x20] ss:$8 sps:$4 sm:$0xff]   ;;  %v5209_v45 = vld [vmem:[%s5732_s0 + $0x30] ss:$8 sps:$4 sm:$0xff]  }
 0xb4a   : > { %v3268_v32 = vpack.c.bf16 %v3265_v51, %v3264_v62  ;;  %v5508_v14 = vmov 0  }
 0xb4b   : > { %3594 = vmatprep.mubr.bf16.mxu0 %v5508_v14 }
 0xb4c   : > { %3565 = vmatpush1.bf16.msra.mxu0 %v5203_v43 }
 0xb4d   : > { %3566 = vmatprep.subr.bf16.mxu0 %v5208_v54 }
 0xb4f   : > { %5005 = vmatmul.mubr.msk.bf16.gmra.mrb[48].mxu1 %vm1418_vm2, %v3268_v32 }
 0xb50   : > { %3567 = vmatpush1.bf16.msra.mxu0 %v5206_v53 }
 0xb51   : > { %3568 = vmatprep.subr.bf16.mxu0 %v5211_v8 }
 0xb54   : > { %3569 = vmatpush1.bf16.msra.mxu0 %v5209_v45 }
 0xbd3   : > { %v3344_v28 = vpop.f32.mrb[40].mxu1 }
 0xbd4   : > { %v3367_v50 = vadd.f32 %v5396_v61, %v3344_v28  ;;  %v4998_v16 = vpop.f32.mrb[41].mxu1 }
 0xbd5   : > { %v3347_v12 = vpop.f32.mrb[42].mxu1 }
 0xbd6   : > { %v6574_v18 = vadd.f32 %v4620_v11, %v3367_v50  ;;  %v3368_v20 = vadd.f32 %v5397_v41, %v3347_v12  ;;  %v4999_v35 = vpop.f32.mrb[43].mxu1 }
 0xbd8   : > { %v6576_v38 = vadd.f32 %v4620_v11, %v3368_v20  ;;  %v3388_v2 = vsel %vm1418_vm2, %v6574_v18, 0.0 }
 0xbd9   : > { %3389 = vadd.xlane.f32.xlu0 %v3388_v2 }
 0xbda   : > { %v3391_v21 = vsel %vm1418_vm2, %v6576_v38, 0.0 }
 0xbdb   : > { %3392 = vadd.xlane.f32.xlu1 %v3391_v21 }
 0xc1a   : > { %v3352_v52 = vpop.f32.mrb[44].mxu1 }
 0xc1b   : > { %v3369_v33 = vadd.f32 %v5398_v19, %v3352_v52  ;;  %v5002_v34 = vpop.f32.mrb[45].mxu1 }
 0xc1c   : > { %v3355_v24 = vpop.f32.mrb[46].mxu1 }
 0xc1d   : > { %v6582_v26 = vadd.f32 %v4620_v11, %v3369_v33  ;;  %v3370_v57 = vadd.f32 %v5399_v15, %v3355_v24  ;;  %v5003_v5 = vpop.f32.mrb[47].mxu1 }
 0xc1f   : > { %v6584_v10 = vadd.f32 %v4620_v11, %v3370_v57  ;;  %v3394_v49 = vsel %vm1418_vm2, %v6582_v26, 0.0 }
 0xc20   : > { %3395 = vadd.xlane.f32.xlu0 %v3394_v49 }
 0xc21   : > { %v3397_v23 = vsel %vm1418_vm2, %v6584_v10, 0.0 }
 0xc22   : > { %v3360_v44 = vpop.f32.mrb[48].mxu1 }
 0xc23   : > { %v3371_v42 = vadd.f32 %v5400_v39, %v3360_v44  ;;  %v5006_v6 = vpop.f32.mrb[49].mxu1 }
 0xc24   : > { %3398 = vadd.xlane.f32.xlu0 %v3397_v23  ;;  %v3363_v27 = vpop.f32.mrb[50].mxu1 }
 0xc25   : > { %v6590_v3 = vadd.f32 %v4620_v11, %v3371_v42  ;;  %v3372_v25 = vadd.f32 %v5401_v29, %v3363_v27  ;;  %v5007_v40 = vpop.f32.mrb[51].mxu1  ;;  %v4621_v42 = vld [vmem:[%s6859_s4] ss:$0 sm:$0xff] }
 0xc27   : > { %v6592_v17 = vadd.f32 %v4620_v11, %v3372_v25  ;;  %v3400_v37 = vsel %vm1418_vm2, %v6590_v3, 0.0  ;;  %v4622_v25 = vld [vmem:[%s6860_s6] ss:$0 sm:$0xff] }
 0xc28   : > { %3401 = vadd.xlane.f32.xlu1 %v3400_v37 }
 0xc29   : > { %v3403_v47 = vsel %vm1418_vm2, %v6592_v17, 0.0 }
 0xc2a   : > { %3404 = vadd.xlane.f32.xlu0 %v3403_v47 }
 0xc66   : > { %v3390_v48 = vpop.xlane.xlu0 %3389 }
 0xc67   : > { %v3406_v9 = vmul.f32 0.015625, %v3390_v48 }
 0xc68   : > { %v3393_v22 = vpop.xlane.xlu1 %3392 }
 0xc69   : > { %v3412_v46 = vsub.f32 %v6574_v18, %v3406_v9  ;;  %v3407_v1 = vmul.f32 0.015625, %v3393_v22 }
 0xc6b   : > { %v3413_v63 = vsub.f32 %v6576_v38, %v3407_v1  ;;  %v3418_v4 = vmul.f32 %v3412_v46, %v3412_v46 }
 0xc6d   : > { %v3424_v7 = vsel %vm1418_vm2, %v3418_v4, 0.0  ;;  %v3419_v55 = vmul.f32 %v3413_v63, %v3413_v63 }
 0xc6e   : > { %3425 = vadd.xlane.f32.xlu1 %v3424_v7 }
 0xc6f   : > { %v3427_v36 = vsel %vm1418_vm2, %v3419_v55, 0.0 }
 0xc70   : > { %3428 = vadd.xlane.f32.xlu0 %v3427_v36 }
 0xcad   : > { %v3396_v58 = vpop.xlane.xlu0 %3395 }
 0xcae   : > { %v3408_v59 = vmul.f32 0.015625, %v3396_v58 }
 0xcb0   : > { %v3414_v62 = vsub.f32 %v6582_v26, %v3408_v59 }
 0xcb1   : > { %v3399_v51 = vpop.xlane.xlu0 %3398 }
 0xcb2   : > { %v3409_v32 = vmul.f32 0.015625, %v3399_v51  ;;  %v3420_v28 = vmul.f32 %v3414_v62, %v3414_v62 }
 0xcb4   : > { %v3415_v11 = vsub.f32 %v6584_v10, %v3409_v32  ;;  %v3430_v61 = vsel %vm1418_vm2, %v3420_v28, 0.0 }
 0xcb5   : > { %3431 = vadd.xlane.f32.xlu1 %v3430_v61  ;;  %v3402_v50 = vpop.xlane.xlu1 %3401 }
 0xcb6   : > { %v3410_v16 = vmul.f32 0.015625, %v3402_v50  ;;  %v3421_v12 = vmul.f32 %v3415_v11, %v3415_v11 }
 0xcb7   : > { %v3405_v41 = vpop.xlane.xlu0 %3404 }
 0xcb8   : > { %v3416_v20 = vsub.f32 %v6590_v3, %v3410_v16  ;;  %v3411_v35 = vmul.f32 0.015625, %v3405_v41  ;;  %v3433_v2 = vsel %vm1418_vm2, %v3421_v12, 0.0 }
 0xcb9   : > { %3434 = vadd.xlane.f32.xlu0 %v3433_v2  ;;  %v5213_v2 = vld [vmem:[%s5744_s18] sm:$0xff]  }
 0xcba   : > { %v3417_v21 = vsub.f32 %v6592_v17, %v3411_v35  ;;  %v3422_v52 = vmul.f32 %v3416_v20, %v3416_v20  ;;  %v5212_v35 = vld [vmem:[%s5744_s18 + $0x40] sm:$0xff]  }
 0xcbb   : > { %4782 = vmatprep.subr.bf16.mxu1 %v5212_v35 }
 0xcbc   : > { %v3436_v19 = vsel %vm1418_vm2, %v3422_v52, 0.0  ;;  %v3423_v33 = vmul.f32 %v3417_v21, %v3417_v21  ;;  %4783 = vmatpush3.bf16.msra.mxu1 %v5213_v2  ;;  %v5215_v52 = vld [vmem:[%s5744_s18 + $0x8] sm:$0xff]  }
 0xcbd   : > { %3437 = vadd.xlane.f32.xlu1 %v3436_v19  ;;  %v5217_v19 = vld [vmem:[%s5744_s18 + $0x10] sm:$0xff]  }
 0xcbe   : > { %v3439_v34 = vsel %vm1418_vm2, %v3423_v33, 0.0  ;;  %v5218_v33 = vld [vmem:[%s5744_s18 + $0x58] sm:$0xff]  }
 0xcbf   : > { %3440 = vadd.xlane.f32.xlu0 %v3439_v34  ;;  %v5219_v34 = vld [vmem:[%s5744_s18 + $0x18] sm:$0xff]  }
 0xcfb   : > { %v3426_v24 = vpop.xlane.xlu1 %3425 }
 0xcfc   : > { %v3442_v15 = vmul.f32 0.015625, %v3426_v24  ;;  %v5220_v24 = vld [vmem:[%s5744_s18 + $0x60] sm:$0xff]  }
 0xcfd   : > { %v3429_v57 = vpop.xlane.xlu0 %3428 }
 0xcfe   : > { %v3448_v5 = vadd.f32 1e-05, %v3442_v15  ;;  %v3443_v49 = vmul.f32 0.015625, %v3429_v57  ;;  %v5221_v15 = vld [vmem:[%s5744_s18 + $0x20] sm:$0xff]   ;;  %v5222_v57 = vld [vmem:[%s5744_s18 + $0x68] sm:$0xff]  }
 0xd00   : > { %5336 = vrsqrt.f32 %v3448_v5  ;;  %v3449_v44 = vadd.f32 1e-05, %v3443_v49  ;;  %v5223_v5 = vld [vmem:[%s5744_s18 + $0x28] sm:$0xff]   ;;  %v5224_v49 = vld [vmem:[%s5744_s18 + $0x70] sm:$0xff]  }
 0xd02   : > { %5338 = vrsqrt.f32 %v3449_v44  ;;  %v5225_v44 = vld [vmem:[%s5744_s18 + $0x30] sm:$0xff]  }
 0xd0a   : > { %v5337_v39 = vpop.eup %5336 }
 0xd0b   : > { %v3460_v6 = vmul.f32 %v5337_v39, %v3412_v46  ;;  %v5226_v39 = vld [vmem:[%s5744_s18 + $0x78] sm:$0xff]  }
 0xd0c   : > { %v5339_v23 = vpop.eup %5338 }
 0xd0d   : > { %v3472_v27 = vmul.f32 %v4621_v42, %v3460_v6  ;;  %v3461_v29 = vmul.f32 %v5339_v23, %v3413_v63  ;;  %v3505_v6 = vsub.s32 0, %v6092_v56  ;;  %v3501_v23 = vld [vmem:[%s5738_s23] sm:$0x3] }
 0xd0f   : > { %v3473_v40 = vmul.f32 %v4621_v42, %v3461_v29  ;;  %v3484_v37 = vadd.f32 %v4622_v25, %v3472_v27  ;;  %v3509_v27 = vsub.s32 1, %v6092_v56  ;;  %v6653_v29 = vrot.slane %v3501_v23, %v3505_v6 }
 0xd11   : > { %v3485_v47 = vadd.f32 %v4622_v25, %v3473_v40 }
 0xd13   : > { %v3490_v48 = vpack.c.bf16 %v3485_v47, %v3484_v37 }
 0xd15   : > { %4631 = vmatmul.mubr.msk.bf16.vlgmr.msra.gmra.mrb[60].mxu0 %vm1418_vm2, %v3490_v48 }
 0xd16   : > { %3604 = vmatprep.mubr.bf16.mxu0 %v5508_v14 }
 0xd42   : > { %v3432_v9 = vpop.xlane.xlu1 %3431 }
 0xd43   : > { %v3444_v22 = vmul.f32 0.015625, %v3432_v9 }
 0xd45   : > { %v3450_v1 = vadd.f32 1e-05, %v3444_v22 }
 0xd46   : > { %v3435_v46 = vpop.xlane.xlu0 %3434 }
 0xd47   : > { %5340 = vrsqrt.f32 %v3450_v1  ;;  %v3445_v4 = vmul.f32 0.015625, %v3435_v46 }
 0xd49   : > { %v3451_v63 = vadd.f32 1e-05, %v3445_v4 }
 0xd4a   : > { %v3438_v7 = vpop.xlane.xlu1 %3437 }
 0xd4b   : > { %5342 = vrsqrt.f32 %v3451_v63  ;;  %v3446_v55 = vmul.f32 0.015625, %v3438_v7 }
 0xd4c   : > { %v3441_v36 = vpop.xlane.xlu0 %3440 }
 0xd4d   : > { %v3452_v31 = vadd.f32 1e-05, %v3446_v55  ;;  %v3447_v13 = vmul.f32 0.015625, %v3441_v36 }
 0xd4f   : > { %5344 = vrsqrt.f32 %v3452_v31  ;;  %v3453_v30 = vadd.f32 1e-05, %v3447_v13 }
 0xd51   : > { %v5341_v43 = vpop.eup %5340  ;;  %5346 = vrsqrt.f32 %v3453_v30 }
 0xd52   : > { %v3462_v54 = vmul.f32 %v5341_v43, %v3414_v62 }
 0xd54   : > { %v3474_v45 = vmul.f32 %v4621_v42, %v3462_v54 }
 0xd55   : > { %v5343_v53 = vpop.eup %5342 }
 0xd56   : > { %v3463_v8 = vmul.f32 %v5343_v53, %v3415_v11  ;;  %v3486_v32 = vadd.f32 %v4622_v25, %v3474_v45 }
 0xd58   : > { %v3475_v58 = vmul.f32 %v4621_v42, %v3463_v8 }
 0xd59   : > { %v5345_v59 = vpop.eup %5344 }
 0xd5a   : > { %v3464_v51 = vmul.f32 %v5345_v59, %v3416_v20  ;;  %v3487_v28 = vadd.f32 %v4622_v25, %v3475_v58 }
 0xd5b   : > { %v5347_v61 = vpop.eup %5346 }
 0xd5c   : > { %v3465_v50 = vmul.f32 %v5347_v61, %v3417_v21  ;;  %v3491_v16 = vpack.c.bf16 %v3487_v28, %v3486_v32  ;;  %v3476_v12 = vmul.f32 %v4621_v42, %v3464_v51  ;;  %v5214_v21 = vld [vmem:[%s5744_s18 + $0x48] sm:$0xff]  }
 0xd5d   : > { %4784 = vmatprep.subr.bf16.mxu1 %v5214_v21 }
 0xd5e   : > { %4632 = vmatmul.mubr.msk.bf16.gmra.mrb[64].mxu0 %vm1418_vm2, %v3491_v16  ;;  %v3477_v62 = vmul.f32 %v4621_v42, %v3465_v50  ;;  %v3488_v41 = vadd.f32 %v4622_v25, %v3476_v12  ;;  %4785 = vmatpush3.bf16.msra.mxu1 %v5215_v52  ;;  %v5227_v42 = vld [vmem:[%s5744_s18 + $0x38] sm:$0xff]  }
 0xd5f   : > { %3614 = vmatprep.mubr.bf16.mxu0 %v5508_v14  ;;  %v5216_v14 = vld [vmem:[%s5744_s18 + $0x50] sm:$0xff]  }
 0xd60   : > { %v3489_v11 = vadd.f32 %v4622_v25, %v3477_v62  ;;  %4786 = vmatprep.subr.bf16.mxu1 %v5216_v14  ;;  %v6655_v25 = vrot.slane %v3501_v23, %v3509_v27 }
 0xd62   : > { %v3492_v20 = vpack.c.bf16 %v3489_v11, %v3488_v41  ;;  %4787 = vmatpush3.bf16.msra.mxu1 %v5217_v19 }
 0xd63   : > { %4788 = vmatprep.subr.bf16.mxu1 %v5218_v33 }
 0xd66   : > { %4633 = vmatmul.mubr.msk.bf16.gmra.mrb[68].mxu0 %vm1418_vm2, %v3492_v20  ;;  %4789 = vmatpush3.bf16.msra.mxu1 %v5219_v34 }
 0xd67   : > { %4790 = vmatprep.subr.bf16.mxu1 %v5220_v24 }
 0xd6a   : > { %4791 = vmatpush3.bf16.msra.mxu1 %v5221_v15 }
 0xd6b   : > { %4792 = vmatprep.subr.bf16.mxu1 %v5222_v57 }
 0xd6e   : > { %4793 = vmatpush3.bf16.msra.mxu1 %v5223_v5 }
 0xd6f   : > { %4794 = vmatprep.subr.bf16.mxu1 %v5224_v49 }
 0xd72   : > { %4795 = vmatpush3.bf16.msra.mxu1 %v5225_v44 }
 0xd73   : > { %4796 = vmatprep.subr.bf16.mxu1 %v5226_v39 }
 0xd76   : > { %4797 = vmatpush3.bf16.msra.mxu1 %v5227_v42 }
 0xde8   : > { %v3596_v40 = vpop.f32.mrb[60].mxu0 }
 0xde9   : > { %v3597_v37 = vadd.f32 %v3596_v40, %v6653_v29  ;;  %v3598_v47 = vpop.f32.mrb[61].mxu0 }
 0xdea   : > { %v3599_v48 = vadd.f32 %v3598_v47, %v6655_v25  ;;  %v3600_v9 = vpop.f32.mrb[62].mxu0 }
 0xdeb   : > { %v4634_v22 = vmul.f32 -1.702, %v3597_v37  ;;  %v3601_v1 = vadd.f32 %v3600_v9, %v6653_v29  ;;  %v3602_v46 = vpop.f32.mrb[63].mxu0 }
 0xdec   : > { %v4635_v4 = vmul.f32 -1.702, %v3599_v48  ;;  %v3603_v63 = vadd.f32 %v3602_v46, %v6655_v25 }
 0xded   : > { %v3649_v7 = vmul.f32 1.442695, %v4634_v22  ;;  %v4636_v55 = vmul.f32 -1.702, %v3601_v1 }
 0xdee   : > { %v3651_v36 = vmul.f32 1.442695, %v4635_v4  ;;  %v4637_v31 = vmul.f32 -1.702, %v3603_v63 }
 0xdef   : > { %5348 = vpow2.f32 %v3649_v7  ;;  %v3653_v13 = vmul.f32 1.442695, %v4636_v55 }
 0xdf0   : > { %5350 = vpow2.f32 %v3651_v36  ;;  %v3655_v30 = vmul.f32 1.442695, %v4637_v31 }
 0xdf1   : > { %5352 = vpow2.f32 %v3653_v13 }
 0xdf2   : > { %5354 = vpow2.f32 %v3655_v30 }
 0xdf9   : > { %v5349_v43 = vpop.eup %5348 }
 0xdfa   : > { %v5351_v54 = vpop.eup %5350  ;;  %v3673_v53 = vadd.f32 1.0, %v5349_v43 }
 0xdfb   : > { %v5353_v8 = vpop.eup %5352  ;;  %v3674_v45 = vadd.f32 1.0, %v5351_v54 }
 0xdfc   : > { %v5355_v58 = vpop.eup %5354  ;;  %5356 = vrcp.f32 %v3673_v53  ;;  %v3675_v59 = vadd.f32 1.0, %v5353_v8 }
 0xdfd   : > { %5358 = vrcp.f32 %v3674_v45  ;;  %v3676_v51 = vadd.f32 1.0, %v5355_v58 }
 0xdfe   : > { %5360 = vrcp.f32 %v3675_v59 }
 0xdff   : > { %5362 = vrcp.f32 %v3676_v51 }
 0xe06   : > { %v5357_v32 = vpop.eup %5356 }
 0xe07   : > { %v5359_v28 = vpop.eup %5358  ;;  %v3709_v16 = vmul.f32 %v5357_v32, %v3597_v37 }
 0xe08   : > { %v5361_v61 = vpop.eup %5360  ;;  %v3710_v62 = vmul.f32 %v5359_v28, %v3599_v48 }
 0xe09   : > { %v5363_v50 = vpop.eup %5362  ;;  %v3711_v12 = vmul.f32 %v5361_v61, %v3601_v1 }
 0xe0a   : > { %v3712_v11 = vmul.f32 %v5363_v50, %v3603_v63 }
 0xe0b   : > { %v3721_v41 = vpack.c.bf16 %v3711_v12, %v3709_v16 }
 0xe0c   : > { %v3722_v20 = vpack.c.bf16 %v3712_v11, %v3710_v62 }
 0xe0e   : > { %3894 = vmatprep.mubr.bf16.mxu1 %v3722_v20 }
 0xe0f   : > { %3895 = vmatmul.mubr.bf16.vlgmr.msra.gmra.mrb[52].mxu1 %v3721_v41 }
 0xe31   : > { %v3606_v35 = vpop.f32.mrb[64].mxu0 }
 0xe32   : > { %v6662_v2 = vadd.f32 %v3606_v35, %v6653_v29  ;;  %v3608_v21 = vpop.f32.mrb[65].mxu0 }
 0xe33   : > { %v6665_v52 = vadd.f32 %v3608_v21, %v6655_v25  ;;  %v3610_v14 = vpop.f32.mrb[66].mxu0 }
 0xe34   : > { %v4638_v19 = vmul.f32 -1.702, %v6662_v2  ;;  %v6669_v33 = vadd.f32 %v3610_v14, %v6653_v29  ;;  %v3612_v34 = vpop.f32.mrb[67].mxu0 }
 0xe35   : > { %v4639_v24 = vmul.f32 -1.702, %v6665_v52  ;;  %v3613_v15 = vadd.f32 %v3612_v34, %v6655_v25 }
 0xe36   : > { %v3657_v57 = vmul.f32 1.442695, %v4638_v19  ;;  %v4640_v5 = vmul.f32 -1.702, %v6669_v33 }
 0xe37   : > { %v3659_v49 = vmul.f32 1.442695, %v4639_v24  ;;  %v4641_v44 = vmul.f32 -1.702, %v3613_v15 }
 0xe38   : > { %5364 = vpow2.f32 %v3657_v57  ;;  %v3661_v39 = vmul.f32 1.442695, %v4640_v5 }
 0xe39   : > { %5366 = vpow2.f32 %v3659_v49  ;;  %v3663_v42 = vmul.f32 1.442695, %v4641_v44  ;;  %v3616_v6 = vpop.f32.mrb[68].mxu0 }
 0xe3a   : > { %5368 = vpow2.f32 %v3661_v39  ;;  %v3617_v23 = vadd.f32 %v3616_v6, %v6653_v29  ;;  %v3618_v27 = vpop.f32.mrb[69].mxu0 }
 0xe3b   : > { %5370 = vpow2.f32 %v3663_v42  ;;  %v3619_v40 = vadd.f32 %v3618_v27, %v6655_v25  ;;  %v3620_v37 = vpop.f32.mrb[70].mxu0 }
 0xe3c   : > { %v4642_v47 = vmul.f32 -1.702, %v3617_v23  ;;  %v3621_v48 = vadd.f32 %v3620_v37, %v6653_v29  ;;  %v3622_v9 = vpop.f32.mrb[71].mxu0 }
 0xe3d   : > { %v4643_v22 = vmul.f32 -1.702, %v3619_v40  ;;  %v3623_v1 = vadd.f32 %v3622_v9, %v6655_v25 }
 0xe3e   : > { %v3665_v46 = vmul.f32 1.442695, %v4642_v47  ;;  %v4644_v4 = vmul.f32 -1.702, %v3621_v48 }
 0xe3f   : > { %v3667_v63 = vmul.f32 1.442695, %v4643_v22  ;;  %v4645_v7 = vmul.f32 -1.702, %v3623_v1 }
 0xe40   : > { %5372 = vpow2.f32 %v3665_v46  ;;  %v3669_v55 = vmul.f32 1.442695, %v4644_v4 }
 0xe41   : > { %5374 = vpow2.f32 %v3667_v63  ;;  %v3671_v36 = vmul.f32 1.442695, %v4645_v7 }
 0xe42   : > { %v5365_v31 = vpop.eup %5364  ;;  %5376 = vpow2.f32 %v3669_v55 }
 0xe43   : > { %v5367_v13 = vpop.eup %5366  ;;  %v3677_v30 = vadd.f32 1.0, %v5365_v31  ;;  %5378 = vpow2.f32 %v3671_v36 }
 0xe44   : > { %v5369_v43 = vpop.eup %5368  ;;  %v3678_v54 = vadd.f32 1.0, %v5367_v13 }
 0xe45   : > { %v5371_v29 = vpop.eup %5370  ;;  %5380 = vrcp.f32 %v3677_v30  ;;  %v3679_v53 = vadd.f32 1.0, %v5369_v43 }
 0xe46   : > { %5382 = vrcp.f32 %v3678_v54  ;;  %v3680_v25 = vadd.f32 1.0, %v5371_v29 }
 0xe47   : > { %5384 = vrcp.f32 %v3679_v53 }
 0xe48   : > { %5386 = vrcp.f32 %v3680_v25 }
 0xe4a   : > { %v5373_v8 = vpop.eup %5372 }
 0xe4b   : > { %v5375_v45 = vpop.eup %5374  ;;  %v3681_v58 = vadd.f32 1.0, %v5373_v8 }
 0xe4c   : > { %v5377_v59 = vpop.eup %5376  ;;  %v3682_v51 = vadd.f32 1.0, %v5375_v45 }
 0xe4d   : > { %v5379_v32 = vpop.eup %5378  ;;  %5388 = vrcp.f32 %v3681_v58  ;;  %v3683_v28 = vadd.f32 1.0, %v5377_v59 }
 0xe4e   : > { %5390 = vrcp.f32 %v3682_v51  ;;  %v3684_v61 = vadd.f32 1.0, %v5379_v32 }
 0xe4f   : > { %v5381_v50 = vpop.eup %5380  ;;  %5392 = vrcp.f32 %v3683_v28 }
 0xe50   : > { %v5383_v16 = vpop.eup %5382  ;;  %5394 = vrcp.f32 %v3684_v61  ;;  %v3713_v11 = vmul.f32 %v5381_v50, %v6662_v2 }
 0xe51   : > { %v5385_v12 = vpop.eup %5384  ;;  %v3714_v20 = vmul.f32 %v5383_v16, %v6665_v52  ;;  %v4646_v52 = vld [vmem:[%s1056_s28] ss:$0 sm:$0xff]  ;;  %s4667_s28 = sld [smem:[#allocation4 + $0x1]] (!%p4663_p8) }
 0xe52   : > { %v5387_v62 = vpop.eup %5386  ;;  %v3715_v41 = vmul.f32 %v5385_v12, %v6669_v33 }
 0xe53   : > { %v3716_v35 = vmul.f32 %v5387_v62, %v3613_v15 }
 0xe54   : > { %v3723_v21 = vpack.c.bf16 %v3715_v41, %v3713_v11 }
 0xe55   : > { %v3724_v14 = vpack.c.bf16 %v3716_v35, %v3714_v20 }
 0xe57   : > { %v5389_v19 = vpop.eup %5388  ;;  %3902 = vmatprep.mubr.bf16.mxu1 %v3724_v14  ;;  %v3961_v45 = vstv (!%p4663_p8), %s4667_s28 }
 0xe58   : > { %v5391_v34 = vpop.eup %5390  ;;  %3903 = vmatmul.mubr.bf16.gmra.mrb[56].mxu1 %v3723_v21  ;;  %v3717_v5 = vmul.f32 %v5389_v19, %v3617_v23  ;;  %vm3962_vm12 = vcmp.eq.s32.totalorder (!%p4663_p8), %v6092_v56, %v3961_v45  ;;  %vm3963_vm13 = vcmp.eq.s32.totalorder (!%p4663_p8), %v6108_v0, %v3961_v45  ;;  %vm3964_vm14 = vcmp.eq.s32.totalorder (!%p4663_p8), %v6099_v60, %v3961_v45  ;;  %v5425_v45 = vld [vmem:[%s5755_s16 + $0x68] ss:$16 sps:$4 sm:$0xff] (!%p4663_p8)  }
 0xe59   : > { %v5393_v24 = vpop.eup %5392  ;;  %v3718_v44 = vmul.f32 %v5391_v34, %v3619_v40 }
 0xe5a   : > { %v5395_v57 = vpop.eup %5394  ;;  %v3719_v49 = vmul.f32 %v5393_v24, %v3621_v48 }
 0xe5b   : > { %v3720_v39 = vmul.f32 %v5395_v57, %v3623_v1 }
 0xe5c   : > { %v3725_v42 = vpack.c.bf16 %v3719_v49, %v3717_v5 }
 0xe5d   : > { %v3726_v2 = vpack.c.bf16 %v3720_v39, %v3718_v44 }
 0xe5f   : > { %3910 = vmatprep.mubr.bf16.mxu1 %v3726_v2 }
 0xe60   : > { %3911 = vmatmul.mubr.bf16.gmra.mrb[60].mxu1 %v3725_v42 }
 0xee2   : > { %v4798_v33 = vpop.f32.mrb[52].mxu1 }
 0xee3   : > { %v4799_v15 = vpop.f32.mrb[53].mxu1 }
 0xee4   : > { %v4800_v6 = vadd.f32 %v4799_v15, %v4798_v33  ;;  %v4801_v27 = vpop.f32.mrb[54].mxu1 }
 0xee5   : > { %v4802_v37 = vpop.f32.mrb[55].mxu1 }
 0xee6   : > { %v3897_v47 = vadd.f32 %v4800_v6, %v4646_v52  ;;  %v4803_v9 = vadd.f32 %v4802_v37, %v4801_v27 }
 0xee8   : > { %v6687_v23 = vadd.f32 %v3897_v47, %v6574_v18  ;;  %v3900_v40 = vadd.f32 %v4803_v9, %v4646_v52 }
 0xeea   : > { %3925 = vst.msk [vmem:[#allocation2] sm:$0xff] %vm1418_vm2, %v6687_v23  ;;  %v3920_v48 = vadd.f32 %v3900_v40, %v6576_v38 }
 0xeec   : > { %3926 = vst.msk [vmem:[#allocation2 + $0x8] sm:$0xff] %vm1418_vm2, %v3920_v48 }
 0xf2b   : > { %v4804_v22 = vpop.f32.mrb[56].mxu1 }
 0xf2c   : > { %v4805_v1 = vpop.f32.mrb[57].mxu1 }
 0xf2d   : > { %v4806_v46 = vadd.f32 %v4805_v1, %v4804_v22  ;;  %v4807_v4 = vpop.f32.mrb[58].mxu1 }
 0xf2e   : > { %v4808_v63 = vpop.f32.mrb[59].mxu1 }
 0xf2f   : > { %v3905_v7 = vadd.f32 %v4806_v46, %v4646_v52  ;;  %v4809_v55 = vadd.f32 %v4808_v63, %v4807_v4 }
 0xf31   : > { %v3921_v36 = vadd.f32 %v3905_v7, %v6582_v26  ;;  %v3908_v31 = vadd.f32 %v4809_v55, %v4646_v52  ;;  %v5404_v55 = vld [vmem:[%s5755_s16 + $0xc] ss:$16 sps:$4 sm:$0xff] (!%p4663_p8)  }
 0xf32   : > { %4166 = vmatprep.subr.bf16.mxu1 (!%p4663_p8), %v5404_v55 }
 0xf33   : > { %3927 = vst.msk [vmem:[#allocation2 + $0x10] sm:$0xff] %vm1418_vm2, %v3921_v36  ;;  %v6696_v18 = vadd.f32 %v3908_v31, %v6584_v10  ;;  %v4810_v13 = vpop.f32.mrb[60].mxu1  ;;  %v3936_v10 = vstv (!%p4663_p8), %s3935_s30  ;;  %v5407_v31 = vld [vmem:[%s5755_s16 + $0x8] ss:$16 sps:$4 sm:$0xff] (!%p4663_p8)  }
 0xf34   : > { %v4811_v30 = vpop.f32.mrb[61].mxu1  ;;  %vm3937_vm3 = vcmp.eq.s32.totalorder (!%p4663_p8), %v6092_v56, %v3936_v10  ;;  %vm3938_vm4 = vcmp.eq.s32.totalorder (!%p4663_p8), %v6108_v0, %v3936_v10  ;;  %vm3939_vm11 = vcmp.eq.s32.totalorder (!%p4663_p8), %v6099_v60, %v3936_v10  ;;  %4167 = vmatpush1.bf16.msra.mxu1 (!%p4663_p8), %v5407_v31  ;;  %v5424_v10 = vld [vmem:[%s5755_s16 + $0x60] ss:$16 sps:$4 sm:$0xff] (!%p4663_p8)  }
 0xf35   : > { %3928 = vst.msk [vmem:[#allocation2 + $0x18] sm:$0xff] %vm1418_vm2, %v6696_v18  ;;  %v4812_v38 = vadd.f32 %v4811_v30, %v4810_v13  ;;  %v4813_v43 = vpop.f32.mrb[62].mxu1  ;;  %v3988_v15 = vrot.slane (!%p4663_p8), %v6696_v18, 7  ;;  %v5410_v13 = vld [vmem:[%s5755_s16 + $0x2c] ss:$16 sps:$4 sm:$0xff] (!%p4663_p8)  }
 0xf36   : > { %v4814_v54 = vpop.f32.mrb[63].mxu1  ;;  %v5412_v30 = vld [vmem:[%s5755_s16 + $0x20] ss:$16 sps:$4 sm:$0xff] (!%p4663_p8)   ;;  %4168 = vmatprep.subr.bf16.mxu1 (!%p4663_p8), %v5410_v13 }
 0xf37   : > { %v3913_v29 = vadd.f32 %v4812_v38, %v4646_v52  ;;  %v4815_v53 = vadd.f32 %v4814_v54, %v4813_v43  ;;  %3934 = sbr.rel (%p4663_p8) target bundleno = 4622 (0x120e), region = 116  ;;  %v3990_v9 = vsel (!%p4663_p8), %vm3985_vm15, %v6687_v23, %v3988_v15  ;;  %v5413_v38 = vld [vmem:[%s5755_s16 + $0x28] ss:$16 sps:$4 sm:$0xff] (!%p4663_p8)   ;;  %v5414_v43 = vld [vmem:[%s5755_s16 + $0x44] ss:$16 sps:$4 sm:$0xff] (!%p4663_p8)  }
 0xf38   : > { %v5416_v54 = vld [vmem:[%s5755_s16 + $0x4c] ss:$16 sps:$4 sm:$0xff] (!%p4663_p8)   ;;  %4169 = vmatpush1.bf16.msra.mxu1 (!%p4663_p8), %v5413_v38 }
 0xf39   : > { %v3923_v25 = vadd.f32 %v3913_v29, %v6590_v3  ;;  %v3916_v8 = vadd.f32 %v4815_v53, %v4646_v52  ;;  %v5509_v3 = vmov (!%p4663_p8), 0.0   ;;  %v5510_v29 = vmov (!%p4663_p8), 0   ;;  %v5418_v53 = vld [vmem:[%s5755_s16 + $0x40] ss:$16 sps:$4 sm:$0xff] (!%p4663_p8)   ;;  %4170 = vmatprep.subr.bf16.mxu1 (!%p4663_p8), %v5416_v54 }
 0xf3a   : > { %v4664_v58 = vsel (!%p4663_p8), %vm3937_vm3, 1.0, %v5509_v3  ;;  %v4666_v59 = vsel (!%p4663_p8), %vm3939_vm11, 1.0, %v5509_v3  ;;  %v4668_v61 = vsel (!%p4663_p8), %vm3962_vm12, 1.0, %v5509_v3  ;;  %v4669_v50 = vsel (!%p4663_p8), %vm3963_vm13, 1.0, %v5509_v3  ;;  %4157 = vmatprep.mubr.bf16.mxu0 (!%p4663_p8), %v5510_v29  ;;  %4198 = vmatprep.mubr.bf16.mxu1 (!%p4663_p8), %v5510_v29 }
 0xf3b   : > { %3929 = vst.msk [vmem:[#allocation2 + $0x20] sm:$0xff] %vm1418_vm2, %v3923_v25  ;;  %v3924_v26 = vadd.f32 %v3916_v8, %v6592_v17  ;;  %v4665_v17 = vsel (!%p4663_p8), %vm3938_vm4, 1.0, %v5509_v3  ;;  %v3946_v51 = vmul.f32 (!%p4663_p8), %v4664_v58, %v6687_v23  ;;  %v3948_v28 = vmul.f32 (!%p4663_p8), %v4666_v59, %v3921_v36  ;;  %v5402_v23 = vld [vmem:[%s5755_s16 + $0x4] ss:$16 sps:$4 sm:$0xff] (!%p4663_p8)   ;;  %v5406_v36 = vld [vmem:[%s5755_s16] ss:$16 sps:$4 sm:$0xff] (!%p4663_p8)  }
 0xf3c   : > { %v3947_v32 = vmul.f32 (!%p4663_p8), %v4665_v17, %v3920_v48  ;;  %v4670_v16 = vsel (!%p4663_p8), %vm3964_vm14, 1.0, %v5509_v3  ;;  %v3971_v41 = vmul.f32 (!%p4663_p8), %v4668_v61, %v6696_v18  ;;  %v3972_v0 = vmul.f32 (!%p4663_p8), %v4669_v50, %v3923_v25  ;;  %v5408_v18 = vld [vmem:[%s5755_s16 + $0x24] ss:$16 sps:$4 sm:$0xff] (!%p4663_p8)   ;;  %4125 = vmatprep.subr.bf16.mxu0 (!%p4663_p8), %v5402_v23  ;;  %v5419_v25 = vld [vmem:[%s5755_s16 + $0x48] ss:$16 sps:$4 sm:$0xff] (!%p4663_p8)  }
 0xf3d   : > { %3930 = vst.msk [vmem:[#allocation2 + $0x28] sm:$0xff] %vm1418_vm2, %v3924_v26  ;;  %v3949_v12 = vsel (!%p4663_p8), %vm1418_vm2, %v3946_v51, 0.0  ;;  %v3952_v11 = vsel (!%p4663_p8), %vm1418_vm2, %v3948_v28, 0.0  ;;  %v3973_v35 = vmul.f32 (!%p4663_p8), %v4670_v16, %v3924_v26  ;;  %4126 = vmatpush1.bf16.msra.mxu0 (!%p4663_p8), %v5406_v36  ;;  %v5420_v8 = vld [vmem:[%s5755_s16 + $0x64] ss:$16 sps:$4 sm:$0xff] (!%p4663_p8)   ;;  %4171 = vmatpush1.bf16.msra.mxu1 (!%p4663_p8), %v5419_v25 }
 0xf3e   : > { %v3950_v62 = vsel %vm1418_vm2, %v3947_v32, 0.0  ;;  %v3974_v21 = vsel %vm1418_vm2, %v3971_v41, 0.0  ;;  %v3975_v60 = vsel %vm1418_vm2, %v3972_v0, 0.0  ;;  %s3991_s1 = scalar_select %p1076_p2, 1, 0  ;;  %4127 = vmatprep.subr.bf16.mxu0 %v5408_v18 }
 0xf3f   : > { %v3951_v20 = vadd.f32 %v3950_v62, %v3949_v12  ;;  %v3977_v19 = vsel %vm1418_vm2, %v3973_v35, 0.0  ;;  %v3976_v34 = vadd.f32 %v3975_v60, %v3974_v21  ;;  %v5422_v26 = vld [vmem:[%s5755_s16 + $0x6c] ss:$16 sps:$4 sm:$0xff]   ;;  %v4671_v51 = vld [vmem:[%s6862_s2] ss:$0 sm:$0xff] }
 0xf40   : > { %v3992_v6 = vstv %s3991_s1  ;;  %4172 = vmatprep.subr.bf16.mxu1 %v5422_v26  ;;  %v4672_v28 = vld [vmem:[%s6864_s27] ss:$0 sm:$0xff] }
 0xf41   : > { %v3953_v14 = vadd.f32 %v3952_v11, %v3951_v20  ;;  %v3978_v57 = vadd.f32 %v3977_v19, %v3976_v34  ;;  %vm3993_vm0 = vcmp.eq.s32.totalorder %v3992_v6, 1  ;;  %4128 = vmatpush1.bf16.msra.mxu0 %v5412_v30  ;;  %4173 = vmatpush1.bf16.msra.mxu1 %v5425_v45 }
 0xf42   : > { %4129 = vmatprep.subr.bf16.mxu0 %v5414_v43 }
 0xf43   : > { %v3954_v24 = vrot.slane %v3953_v14, 4  ;;  %v3979_v49 = vrot.slane %v3978_v57, 4 }
 0xf45   : > { %v3955_v5 = vadd.f32 %v3954_v24, %v3953_v14  ;;  %v3980_v39 = vadd.f32 %v3979_v49, %v3978_v57  ;;  %4130 = vmatpush1.bf16.msra.mxu0 %v5418_v53 }
 0xf46   : > { %4131 = vmatprep.subr.bf16.mxu0 %v5420_v8 }
 0xf47   : > { %v3956_v44 = vrot.slane %v3955_v5, 2  ;;  %v3981_v2 = vrot.slane %v3980_v39, 2 }
 0xf49   : > { %v3957_v42 = vadd.f32 %v3956_v44, %v3955_v5  ;;  %v3982_v52 = vadd.f32 %v3981_v2, %v3980_v39  ;;  %4132 = vmatpush1.bf16.msra.mxu0 %v5424_v10 }
 0xf4b   : > { %v3958_v33 = vrot.slane %v3957_v42, 1  ;;  %v3983_v37 = vrot.slane %v3982_v52, 1 }
 0xf4d   : > { %v3959_v27 = vadd.f32 %v3958_v33, %v3957_v42  ;;  %v3984_v47 = vadd.f32 %v3983_v37, %v3982_v52  ;;  %v5511_v52 = vmov 1983009808  }
 0xf4e   : > { %v4234_v15 = vunpack.c.l.s4 %v5511_v52 }
 0xf4f   : > { %v3986_v40 = vsel %vm3985_vm15, %v3959_v27, %v3984_v47 }
 0xf50   : > { %v3994_v48 = vsel %vm3993_vm0, %v3986_v40, %v3990_v9  ;;  %v4235_v6 = vunpack.c.0.s8 %v4234_v15 }
 0xf51   : > { %v3998_v22 = vsel %vm3997_vm1, %v3994_v48, 0.0 }
 0xf52   : > { %3999 = vadd.xlane.f32.xlu0 %v3998_v22  ;;  %v4238_v37 = vsub.s32 %v4235_v6, %v6092_v56 }
 0xfdf   : > { %v4000_v1 = vpop.xlane.xlu0 %3999 }
 0xfe0   : > { %v4001_v46 = vmul.f32 0.015625, %v4000_v1 }
 0xfe2   : > { %v4002_v4 = vsub.f32 %v3994_v48, %v4001_v46 }
 0xfe4   : > { %v4003_v63 = vmul.f32 %v4002_v4, %v4002_v4 }
 0xfe6   : > { %v4004_v7 = vsel %vm3997_vm1, %v4003_v63, 0.0 }
 0xfe7   : > { %4005 = vadd.xlane.f32.xlu0 %v4004_v7 }
0x1074   : > { %v4006_v3 = vpop.xlane.xlu0 %4005 }
0x1075   : > { %v4007_v58 = vmul.f32 0.015625, %v4006_v3 }
0x1077   : > { %v4008_v17 = vadd.f32 1e-05, %v4007_v58 }
0x1079   : > { %5426 = vrsqrt.f32 %v4008_v17 }
0x1083   : > { %v5427_v59 = vpop.eup %5426 }
0x1084   : > { %v4010_v32 = vmul.f32 %v5427_v59, %v4002_v4 }
0x1086   : > { %v4017_v61 = vmul.f32 %v4671_v51, %v4010_v32 }
0x1088   : > { %v4024_v50 = vadd.f32 %v4672_v28, %v4017_v61 }
0x108a   : > { %v4025_v16 = vpack.c.bf16 %v4024_v50, %v4024_v50 }
0x108c   : > { %4689 = vmatmul.mubr.msk.bf16.vlgmr.msra.gmra.mrb[0].mxu0 %vm1418_vm2, %v4025_v16  ;;  %4690 = vmatmul.mubr.msk.bf16.vlgmr.msra.gmra.mrb[0].mxu1 %vm1418_vm2, %v4025_v16 }
0x115f   : > { %v4159_v12 = vpop.f32.mrb[0].mxu0  ;;  %v4200_v62 = vpop.f32.mrb[0].mxu1 }
0x1160   : > { %v4207_v11 = vmul.f32 %v4159_v12, %v4159_v12  ;;  %v4161_v41 = vpop.f32.mrb[1].mxu0  ;;  %v4202_v20 = vpop.f32.mrb[1].mxu1  ;;  %v4209_v0 = vmul.f32 %v4200_v62, %v4200_v62 }
0x1161   : > { %v4208_v35 = vmul.f32 %v4161_v41, %v4161_v41  ;;  %v4163_v21 = vpop.f32.mrb[2].mxu0  ;;  %v4204_v14 = vpop.f32.mrb[2].mxu1  ;;  %v4210_v57 = vmul.f32 %v4202_v20, %v4202_v20 }
0x1162   : > { %v4212_v60 = vsel %vm4211_vm6, %v4207_v11, 0.0  ;;  %v4164_v19 = vpop.f32.mrb[3].mxu0  ;;  %v4205_v34 = vpop.f32.mrb[3].mxu1  ;;  %v4215_v49 = vsel %vm4211_vm6, %v4209_v0, 0.0 }
0x1163   : > { %v4213_v24 = vsel %vm4211_vm6, %v4208_v35, 0.0  ;;  %v4217_v39 = vsel %vm4211_vm6, %v4210_v57, 0.0 }
0x1164   : > { %v4214_v5 = vadd.f32 %v4213_v24, %v4212_v60 }
0x1166   : > { %v4216_v44 = vadd.f32 %v4215_v49, %v4214_v5 }
0x1168   : > { %v4218_v42 = vadd.f32 %v4217_v39, %v4216_v44 }
0x116a   : > { %4219 = vadd.xlane.f32.xlu1 %v4218_v42 }
0x11f7   : > { %v4220_v2 = vpop.xlane.xlu1 %4219 }
0x11f8   : > { %v4221_v33 = vadd.f32 1e-12, %v4220_v2 }
0x11fa   : > { %5428 = vrsqrt.f32 %v4221_v33 }
0x1204   : > { %v5429_v27 = vpop.eup %5428 }
0x1205   : > { %v4223_v47 = vmul.f32 %v5429_v27, %v4159_v12  ;;  %v4224_v9 = vmul.f32 %v5429_v27, %v4161_v41  ;;  %v4225_v40 = vmul.f32 %v5429_v27, %v4200_v62  ;;  %v4226_v48 = vmul.f32 %v5429_v27, %v4202_v20 }
0x1207   : > { %v4231_v22 = vcombine.low %v4223_v47, %v4224_v9  ;;  %v4232_v1 = vcombine.low %v4225_v40, %v4226_v48 }
0x1209   : > { %v4239_v46 = vrot.slane %v4231_v22, %v4238_v37  ;;  %v4246_v4 = vrot.slane %v4232_v1, %v4238_v37 }
0x120b   : > { %v4247_v63 = vcombine.low %v4239_v46, %v4246_v4 }
0x120d   : > { %4249 = vst [vmem:[%s5760_s17] sm:$0xff] %v4247_v63 }
0x120e PF: > { %s6865_s16 = sld [smem:[#allocation9_spill]]  ;;  %s6866_s1 = sld [smem:[#allocation7_spill]] }
0x120f   : > { %s6867_s8 = sld [smem:[#allocation8_spill]]  ;;  %s6868_s28 = sld [smem:[#allocation10_spill]] }
0x1210   : > { %s6869_s29 = sld [smem:[#allocation11_spill]] }
0x1214   : > { %s43_s18 = sadd.s32 1, %s6865_s16  }
0x1215   : > { %p40_p9 = scmp.ge.s32.totalorder %s43_s18, 6  }
0x1217   :  { %42 = sbr.rel (!%p40_p9) target bundleno = 44 (0x2c), region = 192 }

</bundles_post_ra>
